<compile_context>
chip_gen: v7x
topology: tpu7x:2x2x1
jax: 0.10.0
libtpu: 0.0.40
codegen_flags: <defaults>
</compile_context>

<pallas_src>
import functools

import jax
import jax.numpy as jnp
from jax.experimental import pallas as pl
from jax.experimental.pallas import tpu as pltpu

EPS_BN = 1e-5
EPS_LN = 1e-5
LANE = 128


def _round_up(x, m):
    return (x + m - 1) // m * m


# --------------------------------------------------------------------------
# Kernel 1: fused MLP (BN folded) + LSTM input projection.
# Grid over time chunks ("parallel"); output is time-major pre-activations for the LSTM gates.
# --------------------------------------------------------------------------
def _mlp_gates_kernel(x_ref, w1, b1, w2, b2, wih, bih, o_ref):
    tt, b, c = x_ref.shape
    x = x_ref[...].reshape(tt * b, c).astype(jnp.bfloat16)
    y = jnp.dot(x, w1[...], preferred_element_type=jnp.float32) + b1[...]
    y = jnp.maximum(y, 0.0)                                   # Linear+BN folded, ReLU
    y = jnp.dot(y.astype(jnp.bfloat16), w2[...],
                preferred_element_type=jnp.float32) + b2[...]
    y = jnp.maximum(y, 0.0)                                   # Linear+BN folded, ReLU
    g = jnp.dot(y.astype(jnp.bfloat16), wih[...],
                preferred_element_type=jnp.float32) + bih[...]  # hoisted LSTM x-projection
    o_ref[...] = g.reshape(tt, b, g.shape[-1])


def mlp_gates_forward(x_tbc, p, *, tt):
    T, B, C = x_tbc.shape
    Hp = p["w1"].shape[1]
    G4 = p["wih"].shape[1]
    return pl.pallas_call(
        _mlp_gates_kernel,
        out_shape=jax.ShapeDtypeStruct((T, B, G4), jnp.float32),
        grid_spec=pltpu.PrefetchScalarGridSpec(
            num_scalar_prefetch=0,
            grid=(T // tt,),
            in_specs=[
                pl.BlockSpec((tt, B, C), lambda t: (t, 0, 0)),
                pl.BlockSpec((C, Hp), lambda t: (0, 0)),
                pl.BlockSpec((1, Hp), lambda t: (0, 0)),
                pl.BlockSpec((Hp, Hp), lambda t: (0, 0)),
                pl.BlockSpec((1, Hp), lambda t: (0, 0)),
                pl.BlockSpec((Hp, G4), lambda t: (0, 0)),
                pl.BlockSpec((1, G4), lambda t: (0, 0)),
            ],
            out_specs=pl.BlockSpec((tt, B, G4), lambda t: (t, 0, 0)),
        ),
        compiler_params=pltpu.CompilerParams(dimension_semantics=("parallel",)),
    )(x_tbc, p["w1"], p["b1"], p["w2"], p["b2"], p["wih"], p["bih"])


# --------------------------------------------------------------------------
# Kernel 2: LSTM recurrence. Only h @ Whh remains on the sequential path; the time axis is
# blocked (Tt steps per grid step, unrolled inner loop), h/c carried in VMEM scratch.
# Leading batch-shard axis is "parallel" (v7x megacore); shards carry independent state.
# --------------------------------------------------------------------------
def _lstm_kernel(gx_ref, whh_ref, o_ref, h_scr, c_scr):
    hp = h_scr.shape[-1]
    tt = gx_ref.shape[0]

    @pl.when(pl.program_id(1) == 0)            # start of this batch-shard's sequence
    def _():
        h_scr[...] = jnp.zeros_like(h_scr)
        c_scr[...] = jnp.zeros_like(c_scr)

    whh = whh_ref[...]                         # (Hp, 4Hp) bf16, resident across grid steps

    def step(j, carry):
        gates = gx_ref[j] + jnp.dot(h_scr[...].astype(jnp.bfloat16), whh,
                                    preferred_element_type=jnp.float32)
        i = jax.nn.sigmoid(gates[:, 0:hp])                 # lane-aligned gate slices
        f = jax.nn.sigmoid(gates[:, hp:2 * hp])
        g = jnp.tanh(gates[:, 2 * hp:3 * hp])
        o = jax.nn.sigmoid(gates[:, 3 * hp:4 * hp])
        c = f * c_scr[...] + i * g
        h = o * jnp.tanh(c)
        c_scr[...] = c
        h_scr[...] = h
        o_ref[j] = h
        return carry

    jax.lax.fori_loop(0, tt, step, 0, unroll=True)


def lstm_forward(gates_tbg, whh, hp, *, tt, n_bshards=1):
    T, B, G4 = gates_tbg.shape
    assert B % n_bshards == 0
    Bb = B // n_bshards
    return pl.pallas_call(
        _lstm_kernel,
        out_shape=jax.ShapeDtypeStruct((T, B, hp), jnp.float32),
        grid_spec=pltpu.PrefetchScalarGridSpec(
            num_scalar_prefetch=0,
            grid=(n_bshards, T // tt),
            in_specs=[
                pl.BlockSpec((tt, Bb, G4), lambda bs, tc: (tc, bs, 0)),
                pl.BlockSpec((hp, G4), lambda bs, tc: (0, 0)),
            ],
            out_specs=pl.BlockSpec((tt, Bb, hp), lambda bs, tc: (tc, bs, 0)),
            scratch_shapes=[pltpu.VMEM((Bb, hp), jnp.float32),
                            pltpu.VMEM((Bb, hp), jnp.float32)],
        ),
        compiler_params=pltpu.CompilerParams(
            dimension_semantics=("parallel", "arbitrary")),
    )(gates_tbg, whh)


# --------------------------------------------------------------------------
# Kernel 3: ModuleTransformer (1-head attention + LN + MLP + residual + LN).
# Whole batch per grid step: projections run on the flattened (B*T, Hp) slab (MXU-friendly M),
# only the (T, T) softmax-attention loops over batch. Padded lanes masked out of LayerNorm.
# --------------------------------------------------------------------------
def _tatt_kernel(x_ref, wqkv, bqkv, wo, bo, ln1g, ln1b, wm1, bm1, wm2, bm2,
                 ln2g, ln2b, o_ref, *, h_real):
    T, Bb, Hp = x_ref.shape
    scale = 1.0 / float(h_real) ** 0.5

    lane_mask = (jax.lax.broadcasted_iota(jnp.int32, (1, Hp), 1) < h_real
                 ).astype(jnp.float32)

    def layernorm(y, g, b):
        mu = jnp.sum(y, axis=-1, keepdims=True) * (1.0 / h_real)   # padded lanes are 0
        d = (y - mu) * lane_mask
        var = jnp.sum(d * d, axis=-1, keepdims=True) * (1.0 / h_real)
        return d * jax.lax.rsqrt(var + EPS_LN) * g + b

    x = x_ref[...].reshape(T * Bb, Hp)                              # rows in (t, b) order

    # Fused QKV projection on the whole slab.
    qkv = jnp.dot(x.astype(jnp.bfloat16), wqkv[...],
                  preferred_element_type=jnp.float32) + bqkv[...]
    q = qkv[:, 0:Hp].reshape(T, Bb, Hp).astype(jnp.bfloat16)
    k = qkv[:, Hp:2 * Hp].reshape(T, Bb, Hp).astype(jnp.bfloat16)
    v = qkv[:, 2 * Hp:3 * Hp].reshape(T, Bb, Hp).astype(jnp.bfloat16)

    # Per-batch (T, T) softmax attention.
    att_rows = []
    for b in range(Bb):
        qb, kb, vb = q[:, b, :], k[:, b, :], v[:, b, :]
        s = jax.lax.dot_general(qb, kb, (((1,), (1,)), ((), ())),
                                preferred_element_type=jnp.float32) * scale
        s = s - jnp.max(s, axis=-1, keepdims=True)
        e = jnp.exp(s)
        p = e * pl.reciprocal(jnp.sum(e, axis=-1, keepdims=True), approx=True)
        att_rows.append(jnp.dot(p.astype(jnp.bfloat16), vb,
                                preferred_element_type=jnp.float32))
    attn = jnp.stack(att_rows, axis=1).reshape(T * Bb, Hp)          # back to (t, b) row order

    attn = jnp.dot(attn.astype(jnp.bfloat16), wo[...],
                   preferred_element_type=jnp.float32) + bo[...]    # out_proj

    y1 = layernorm(attn, ln1g[...], ln1b[...])                      # dropout1 = identity (eval)
    m = jnp.maximum(jnp.dot(y1.astype(jnp.bfloat16), wm1[...],
                            preferred_element_type=jnp.float32) + bm1[...], 0.0)
    y2 = jnp.dot(m.astype(jnp.bfloat16), wm2[...],
                 preferred_element_type=jnp.float32) + bm2[...]
    out = layernorm(y1 + y2, ln2g[...], ln2b[...])                  # dropout2 = identity (eval)
    o_ref[...] = out.reshape(T, Bb, Hp)


def tatt_forward(hs_tbh, p, *, h_real):
    T, B, Hp = hs_tbh.shape
    Hm = p["wm1"].shape[1]
    Bb = B                      # all batch elements per grid step (chunks must be %8 if split)
    kern = functools.partial(_tatt_kernel, h_real=h_real)

    def const(shape):
        n = len(shape)
        return pl.BlockSpec(shape, lambda b, _n=n: (0,) * _n)

    return pl.pallas_call(
        kern,
        out_shape=jax.ShapeDtypeStruct((T, B, Hp), jnp.float32),
        grid_spec=pltpu.PrefetchScalarGridSpec(
            num_scalar_prefetch=0,
            grid=(B // Bb,),
            in_specs=[
                pl.BlockSpec((T, Bb, Hp), lambda b: (0, b, 0)),
                const((Hp, 3 * Hp)), const((1, 3 * Hp)),
                const((Hp, Hp)), const((1, Hp)),
                const((1, Hp)), const((1, Hp)),
                const((Hp, Hm)), const((1, Hm)),
                const((Hm, Hp)), const((1, Hp)),
                const((1, Hp)), const((1, Hp)),
            ],
            out_specs=pl.BlockSpec((T, Bb, Hp), lambda b: (0, b, 0)),
        ),
        compiler_params=pltpu.CompilerParams(dimension_semantics=("parallel",)),
    )(hs_tbh, p["wqkv"], p["bqkv"], p["wo"], p["bo"], p["ln1g"], p["ln1b"],
      p["wm1"], p["bm1"], p["wm2"], p["bm2"], p["ln2g"], p["ln2b"])


# --------------------------------------------------------------------------
# Full BrainEncoder forward.
# --------------------------------------------------------------------------
def brain_encoder_forward(x_btc, params, *, hidden):
    B, T, C = x_btc.shape
    hp = params["w1"].shape[1]
    tt = 8 if T % 8 == 0 else T
    x_tbc = jnp.transpose(x_btc, (1, 0, 2))               # 'b t c -> t b c' (tiny input tensor)
    gates = mlp_gates_forward(x_tbc, params, tt=tt)       # (T, B, 4*hp): MLP + x@Wih + b
    hs = lstm_forward(gates, params["whh"], hp, tt=tt)    # (T, B, hp)
    out = tatt_forward(hs, params, h_real=hidden)         # (T, B, hp)
    return out[..., :hidden]                              # drop lane padding -> (T, B, H)


# --------------------------------------------------------------------------
# Parameters: synthetic nn.Module-shaped weights, then folded / fused / padded for the kernels.
# --------------------------------------------------------------------------
def init_raw_params(key, n_region, hidden):
    keys = iter(jax.random.split(key, 40))

    def f(shape, s=0.1):
        return (s * jax.random.normal(next(keys), shape)).astype(jnp.float32)

    return dict(
        # MLP: Linear(C,H)+BN(H)+ReLU, Linear(H,H)+BN(H)+ReLU  (weights stored as x@W)
        w1=f((n_region, hidden)), b1=f((1, hidden)),
        g1=1.0 + f((1, hidden)), be1=f((1, hidden)),
        m1=f((1, hidden)), v1=1.0 + jnp.abs(f((1, hidden))),
        w2=f((hidden, hidden)), b2=f((1, hidden)),
        g2=1.0 + f((1, hidden)), be2=f((1, hidden)),
        m2=f((1, hidden)), v2=1.0 + jnp.abs(f((1, hidden))),
        # LSTM(H, H, 1): gate order i,f,g,o; bias = bias_ih + bias_hh
        wih=f((hidden, 4 * hidden)), whh=f((hidden, 4 * hidden)), bl=f((1, 4 * hidden)),
        # ModuleTransformer(H, 2H, num_heads=1)
        wq=f((hidden, hidden)), bq=f((1, hidden)),
        wk=f((hidden, hidden)), bk=f((1, hidden)),
        wv=f((hidden, hidden)), bv=f((1, hidden)),
        wo=f((hidden, hidden)), bo=f((1, hidden)),
        ln1g=1.0 + f((1, hidden)), ln1b=f((1, hidden)),
        wm1=f((hidden, 2 * hidden)), bm1=f((1, 2 * hidden)),
        wm2=f((2 * hidden, hidden)), bm2=f((1, hidden)),
        ln2g=1.0 + f((1, hidden)), ln2b=f((1, hidden)),
    )


def _pad2(a, rows, cols):
    out = jnp.zeros((rows, cols), a.dtype)
    return out.at[: a.shape[0], : a.shape[1]].set(a)


def _pad_gates(a, rows, hp):
    # (r, 4*h) -> (rows, 4*hp): each of the i,f,g,o gate blocks padded independently so the
    # in-kernel gate slices stay on 128-lane boundaries.
    h = a.shape[1] // 4
    return jnp.concatenate(
        [_pad2(a[:, i * h:(i + 1) * h], rows, hp) for i in range(4)], axis=1)


def prepare_params(raw, n_region, hidden):
    hp = _round_up(hidden, LANE)
    bf16 = jnp.bfloat16

    def bn_fold(w, b, g, be, m, v):
        s = g * jax.lax.rsqrt(v + EPS_BN)
        return w * s, (b - m) * s + be

    w1f, b1f = bn_fold(raw["w1"], raw["b1"], raw["g1"], raw["be1"], raw["m1"], raw["v1"])
    w2f, b2f = bn_fold(raw["w2"], raw["b2"], raw["g2"], raw["be2"], raw["m2"], raw["v2"])

    return dict(
        w1=_pad2(w1f, n_region, hp).astype(bf16), b1=_pad2(b1f, 1, hp),
        w2=_pad2(w2f, hp, hp).astype(bf16), b2=_pad2(b2f, 1, hp),
        wih=_pad_gates(raw["wih"], hp, hp).astype(bf16),
        whh=_pad_gates(raw["whh"], hp, hp).astype(bf16),
        bih=_pad_gates(raw["bl"], 1, hp),
        wqkv=jnp.concatenate([_pad2(raw["wq"], hp, hp), _pad2(raw["wk"], hp, hp),
                              _pad2(raw["wv"], hp, hp)], axis=1).astype(bf16),
        bqkv=jnp.concatenate([_pad2(raw["bq"], 1, hp), _pad2(raw["bk"], 1, hp),
                              _pad2(raw["bv"], 1, hp)], axis=1),
        wo=_pad2(raw["wo"], hp, hp).astype(bf16), bo=_pad2(raw["bo"], 1, hp),
        ln1g=_pad2(raw["ln1g"], 1, hp), ln1b=_pad2(raw["ln1b"], 1, hp),
        wm1=_pad2(raw["wm1"], hp, 2 * hp).astype(bf16), bm1=_pad2(raw["bm1"], 1, 2 * hp),
        wm2=_pad2(raw["wm2"], 2 * hp, hp).astype(bf16), bm2=_pad2(raw["bm2"], 1, hp),
        ln2g=_pad2(raw["ln2g"], 1, hp), ln2b=_pad2(raw["ln2b"], 1, hp),
    )


if __name__ == "__main__":
    B, T, C, H = 2, 16, 16, 32          # batch, timepoints, n_region, hidden_dim
    key = jax.random.PRNGKey(0)
    kx, kp = jax.random.split(key)
    x = jax.random.normal(kx, (B, T, C), dtype=jnp.float32)

    raw = init_raw_params(kp, C, H)
    params = prepare_params(raw, C, H)

    fwd = jax.jit(functools.partial(brain_encoder_forward, hidden=H))
    out = jax.block_until_ready(fwd(x, params))

    assert out.shape == (T, B, H), out.shape
    assert bool(jnp.all(jnp.isfinite(out)))
    print("KERNEL_OK")
</pallas_src>

<mosaic_0001>
module attributes {stable_mosaic.version = 11 : i64} {
  func.func @_tatt_kernel(%arg0: i32, %arg1: memref<16x2x128xf32, #tpu.memory_space<vmem>>, %arg2: memref<128x384xbf16, #tpu.memory_space<vmem>>, %arg3: memref<1x384xf32, #tpu.memory_space<vmem>>, %arg4: memref<128x128xbf16, #tpu.memory_space<vmem>>, %arg5: memref<1x128xf32, #tpu.memory_space<vmem>>, %arg6: memref<1x128xf32, #tpu.memory_space<vmem>>, %arg7: memref<1x128xf32, #tpu.memory_space<vmem>>, %arg8: memref<128x256xbf16, #tpu.memory_space<vmem>>, %arg9: memref<1x256xf32, #tpu.memory_space<vmem>>, %arg10: memref<256x128xbf16, #tpu.memory_space<vmem>>, %arg11: memref<1x128xf32, #tpu.memory_space<vmem>>, %arg12: memref<1x128xf32, #tpu.memory_space<vmem>>, %arg13: memref<1x128xf32, #tpu.memory_space<vmem>>, %arg14: memref<16x2x128xf32, #tpu.memory_space<vmem>>) attributes {dimension_semantics = [#tpu.dimension_semantics<parallel>], iteration_bounds = array<i64: 1>, scalar_prefetch = 0 : i64, scratch_operands = 0 : i64, tpu.core_type = #tpu.core_type<tc>, window_params = [{transform_indices = @transform_0, window_bounds = array<i64: 16, 2, 128>}, {pipeline_mode = #tpu.pipeline_mode<synchronous>, transform_indices = @transform_1, window_bounds = array<i64: 128, 384>}, {pipeline_mode = #tpu.pipeline_mode<synchronous>, transform_indices = @transform_2, window_bounds = array<i64: 1, 384>}, {pipeline_mode = #tpu.pipeline_mode<synchronous>, transform_indices = @transform_3, window_bounds = array<i64: 128, 128>}, {pipeline_mode = #tpu.pipeline_mode<synchronous>, transform_indices = @transform_4, window_bounds = array<i64: 1, 128>}, {pipeline_mode = #tpu.pipeline_mode<synchronous>, transform_indices = @transform_5, window_bounds = array<i64: 1, 128>}, {pipeline_mode = #tpu.pipeline_mode<synchronous>, transform_indices = @transform_6, window_bounds = array<i64: 1, 128>}, {pipeline_mode = #tpu.pipeline_mode<synchronous>, transform_indices = @transform_7, window_bounds = array<i64: 128, 256>}, {pipeline_mode = #tpu.pipeline_mode<synchronous>, transform_indices = @transform_8, window_bounds = array<i64: 1, 256>}, {pipeline_mode = #tpu.pipeline_mode<synchronous>, transform_indices = @transform_9, window_bounds = array<i64: 256, 128>}, {pipeline_mode = #tpu.pipeline_mode<synchronous>, transform_indices = @transform_10, window_bounds = array<i64: 1, 128>}, {pipeline_mode = #tpu.pipeline_mode<synchronous>, transform_indices = @transform_11, window_bounds = array<i64: 1, 128>}, {pipeline_mode = #tpu.pipeline_mode<synchronous>, transform_indices = @transform_12, window_bounds = array<i64: 1, 128>}, {transform_indices = @transform_13, window_bounds = array<i64: 16, 2, 128>}]} {
    %0 = tpu.iota {dimensions = array<i32: 1>} : vector<1x128xi32>
    %c32_i32 = arith.constant 32 : i32
    %1 = vector.broadcast %c32_i32 : i32 to vector<1x128xi32>
    %2 = arith.cmpi slt, %0, %1 : vector<1x128xi32>
    %3 = arith.extui %2 : vector<1x128xi1> to vector<1x128xi32>
    %4 = arith.sitofp %3 : vector<1x128xi32> to vector<1x128xf32>
    %c0 = arith.constant 0 : index
    %c0_0 = arith.constant 0 : index
    %c0_1 = arith.constant 0 : index
    %5 = vector.load %arg1[%c0, %c0_0, %c0_1] : memref<16x2x128xf32, #tpu.memory_space<vmem>>, vector<16x2x128xf32>
    %6 = vector.shape_cast %5 : vector<16x2x128xf32> to vector<32x128xf32>
    %7 = arith.truncf %6 : vector<32x128xf32> to vector<32x128xbf16>
    %c0_2 = arith.constant 0 : index
    %c0_3 = arith.constant 0 : index
    %8 = vector.load %arg2[%c0_2, %c0_3] : memref<128x384xbf16, #tpu.memory_space<vmem>>, vector<128x384xbf16>
    %cst = arith.constant dense<0.000000e+00> : vector<32x384xf32>
    %9 = tpu.matmul %7, %8, %cst {dimension_numbers = #tpu.dot_dimension_numbers<[1], [0], [0], [1], [0, 0, 1, 1], [], []>} : vector<32x128xbf16>, vector<128x384xbf16>, vector<32x384xf32> -> vector<32x384xf32>
    %c0_4 = arith.constant 0 : index
    %c0_5 = arith.constant 0 : index
    %10 = vector.load %arg3[%c0_4, %c0_5] : memref<1x384xf32, #tpu.memory_space<vmem>>, vector<1x384xf32>
    %11 = vector.broadcast %10 : vector<1x384xf32> to vector<32x384xf32>
    %12 = arith.addf %9, %11 : vector<32x384xf32>
    %13 = vector.extract_strided_slice %12 {offsets = [0, 0], sizes = [32, 128], strides = [1, 1]} : vector<32x384xf32> to vector<32x128xf32>
    %14 = vector.shape_cast %13 : vector<32x128xf32> to vector<16x2x128xf32>
    %15 = arith.truncf %14 : vector<16x2x128xf32> to vector<16x2x128xbf16>
    %16 = vector.extract_strided_slice %12 {offsets = [0, 128], sizes = [32, 128], strides = [1, 1]} : vector<32x384xf32> to vector<32x128xf32>
    %17 = vector.shape_cast %16 : vector<32x128xf32> to vector<16x2x128xf32>
    %18 = arith.truncf %17 : vector<16x2x128xf32> to vector<16x2x128xbf16>
    %19 = vector.extract_strided_slice %12 {offsets = [0, 256], sizes = [32, 128], strides = [1, 1]} : vector<32x384xf32> to vector<32x128xf32>
    %20 = vector.shape_cast %19 : vector<32x128xf32> to vector<16x2x128xf32>
    %21 = arith.truncf %20 : vector<16x2x128xf32> to vector<16x2x128xbf16>
    %22 = vector.extract_strided_slice %15 {offsets = [0, 0, 0], sizes = [16, 1, 128], strides = [1, 1, 1]} : vector<16x2x128xbf16> to vector<16x1x128xbf16>
    %23 = vector.shape_cast %22 : vector<16x1x128xbf16> to vector<16x128xbf16>
    %24 = vector.extract_strided_slice %18 {offsets = [0, 0, 0], sizes = [16, 1, 128], strides = [1, 1, 1]} : vector<16x2x128xbf16> to vector<16x1x128xbf16>
    %25 = vector.shape_cast %24 : vector<16x1x128xbf16> to vector<16x128xbf16>
    %26 = vector.extract_strided_slice %21 {offsets = [0, 0, 0], sizes = [16, 1, 128], strides = [1, 1, 1]} : vector<16x2x128xbf16> to vector<16x1x128xbf16>
    %27 = vector.shape_cast %26 : vector<16x1x128xbf16> to vector<16x128xbf16>
    %cst_6 = arith.constant dense<0.000000e+00> : vector<16x16xf32>
    %28 = tpu.matmul %23, %25, %cst_6 {dimension_numbers = #tpu.dot_dimension_numbers<[1], [1], [0], [0], [0, 0, 1, 0], [], []>} : vector<16x128xbf16>, vector<16x128xbf16>, vector<16x16xf32> -> vector<16x16xf32>
    %cst_7 = arith.constant 0.176776692 : f32
    %29 = vector.broadcast %cst_7 : f32 to vector<16x16xf32>
    %30 = arith.mulf %28, %29 : vector<16x16xf32>
    %cst_8 = arith.constant dense<0xFF800000> : vector<16xf32>
    %31 = vector.multi_reduction <maximumf>, %30, %cst_8 [1] : vector<16x16xf32> to vector<16xf32>
    %32 = vector.shape_cast %31 : vector<16xf32> to vector<16x1xf32>
    %33 = vector.broadcast %32 : vector<16x1xf32> to vector<16x16xf32>
    %34 = arith.subf %30, %33 : vector<16x16xf32>
    %35 = math.exp %34 : vector<16x16xf32>
    %cst_9 = arith.constant dense<0.000000e+00> : vector<16xf32>
    %36 = vector.multi_reduction <add>, %35, %cst_9 [1] : vector<16x16xf32> to vector<16xf32>
    %37 = vector.shape_cast %36 : vector<16xf32> to vector<16x1xf32>
    %38 = tpu.reciprocal %37 {approx = true} : vector<16x1xf32> -> vector<16x1xf32>
    %39 = vector.broadcast %38 : vector<16x1xf32> to vector<16x16xf32>
    %40 = arith.mulf %35, %39 : vector<16x16xf32>
    %41 = arith.truncf %40 : vector<16x16xf32> to vector<16x16xbf16>
    %cst_10 = arith.constant dense<0.000000e+00> : vector<16x128xf32>
    %42 = tpu.matmul %41, %27, %cst_10 {dimension_numbers = #tpu.dot_dimension_numbers<[1], [0], [0], [1], [0, 0, 1, 1], [], []>} : vector<16x16xbf16>, vector<16x128xbf16>, vector<16x128xf32> -> vector<16x128xf32>
    %43 = vector.extract_strided_slice %15 {offsets = [0, 1, 0], sizes = [16, 1, 128], strides = [1, 1, 1]} : vector<16x2x128xbf16> to vector<16x1x128xbf16>
    %44 = vector.shape_cast %43 : vector<16x1x128xbf16> to vector<16x128xbf16>
    %45 = vector.extract_strided_slice %18 {offsets = [0, 1, 0], sizes = [16, 1, 128], strides = [1, 1, 1]} : vector<16x2x128xbf16> to vector<16x1x128xbf16>
    %46 = vector.shape_cast %45 : vector<16x1x128xbf16> to vector<16x128xbf16>
    %47 = vector.extract_strided_slice %21 {offsets = [0, 1, 0], sizes = [16, 1, 128], strides = [1, 1, 1]} : vector<16x2x128xbf16> to vector<16x1x128xbf16>
    %48 = vector.shape_cast %47 : vector<16x1x128xbf16> to vector<16x128xbf16>
    %cst_11 = arith.constant dense<0.000000e+00> : vector<16x16xf32>
    %49 = tpu.matmul %44, %46, %cst_11 {dimension_numbers = #tpu.dot_dimension_numbers<[1], [1], [0], [0], [0, 0, 1, 0], [], []>} : vector<16x128xbf16>, vector<16x128xbf16>, vector<16x16xf32> -> vector<16x16xf32>
    %cst_12 = arith.constant 0.176776692 : f32
    %50 = vector.broadcast %cst_12 : f32 to vector<16x16xf32>
    %51 = arith.mulf %49, %50 : vector<16x16xf32>
    %cst_13 = arith.constant dense<0xFF800000> : vector<16xf32>
    %52 = vector.multi_reduction <maximumf>, %51, %cst_13 [1] : vector<16x16xf32> to vector<16xf32>
    %53 = vector.shape_cast %52 : vector<16xf32> to vector<16x1xf32>
    %54 = vector.broadcast %53 : vector<16x1xf32> to vector<16x16xf32>
    %55 = arith.subf %51, %54 : vector<16x16xf32>
    %56 = math.exp %55 : vector<16x16xf32>
    %cst_14 = arith.constant dense<0.000000e+00> : vector<16xf32>
    %57 = vector.multi_reduction <add>, %56, %cst_14 [1] : vector<16x16xf32> to vector<16xf32>
    %58 = vector.shape_cast %57 : vector<16xf32> to vector<16x1xf32>
    %59 = tpu.reciprocal %58 {approx = true} : vector<16x1xf32> -> vector<16x1xf32>
    %60 = vector.broadcast %59 : vector<16x1xf32> to vector<16x16xf32>
    %61 = arith.mulf %56, %60 : vector<16x16xf32>
    %62 = arith.truncf %61 : vector<16x16xf32> to vector<16x16xbf16>
    %cst_15 = arith.constant dense<0.000000e+00> : vector<16x128xf32>
    %63 = tpu.matmul %62, %48, %cst_15 {dimension_numbers = #tpu.dot_dimension_numbers<[1], [0], [0], [1], [0, 0, 1, 1], [], []>} : vector<16x16xbf16>, vector<16x128xbf16>, vector<16x128xf32> -> vector<16x128xf32>
    %64 = vector.shape_cast %42 : vector<16x128xf32> to vector<16x1x128xf32>
    %65 = vector.shape_cast %63 : vector<16x128xf32> to vector<16x1x128xf32>
    %66 = tpu.concatenate %64, %65 in 1 : vector<16x1x128xf32>, vector<16x1x128xf32> -> vector<16x2x128xf32>
    %67 = vector.shape_cast %66 : vector<16x2x128xf32> to vector<32x128xf32>
    %68 = arith.truncf %67 : vector<32x128xf32> to vector<32x128xbf16>
    %c0_16 = arith.constant 0 : index
    %c0_17 = arith.constant 0 : index
    %69 = vector.load %arg4[%c0_16, %c0_17] : memref<128x128xbf16, #tpu.memory_space<vmem>>, vector<128x128xbf16>
    %cst_18 = arith.constant dense<0.000000e+00> : vector<32x128xf32>
    %70 = tpu.matmul %68, %69, %cst_18 {dimension_numbers = #tpu.dot_dimension_numbers<[1], [0], [0], [1], [0, 0, 1, 1], [], []>} : vector<32x128xbf16>, vector<128x128xbf16>, vector<32x128xf32> -> vector<32x128xf32>
    %c0_19 = arith.constant 0 : index
    %c0_20 = arith.constant 0 : index
    %71 = vector.load %arg5[%c0_19, %c0_20] : memref<1x128xf32, #tpu.memory_space<vmem>>, vector<1x128xf32>
    %72 = vector.broadcast %71 : vector<1x128xf32> to vector<32x128xf32>
    %73 = arith.addf %70, %72 : vector<32x128xf32>
    %c0_21 = arith.constant 0 : index
    %c0_22 = arith.constant 0 : index
    %74 = vector.load %arg6[%c0_21, %c0_22] : memref<1x128xf32, #tpu.memory_space<vmem>>, vector<1x128xf32>
    %c0_23 = arith.constant 0 : index
    %c0_24 = arith.constant 0 : index
    %75 = vector.load %arg7[%c0_23, %c0_24] : memref<1x128xf32, #tpu.memory_space<vmem>>, vector<1x128xf32>
    %cst_25 = arith.constant dense<0.000000e+00> : vector<32xf32>
    %76 = vector.multi_reduction <add>, %73, %cst_25 [1] : vector<32x128xf32> to vector<32xf32>
    %77 = vector.shape_cast %76 : vector<32xf32> to vector<32x1xf32>
    %cst_26 = arith.constant 3.125000e-02 : f32
    %78 = vector.broadcast %cst_26 : f32 to vector<32x1xf32>
    %79 = arith.mulf %77, %78 : vector<32x1xf32>
    %80 = vector.broadcast %79 : vector<32x1xf32> to vector<32x128xf32>
    %81 = arith.subf %73, %80 : vector<32x128xf32>
    %82 = vector.broadcast %4 : vector<1x128xf32> to vector<32x128xf32>
    %83 = arith.mulf %81, %82 : vector<32x128xf32>
    %84 = arith.mulf %83, %83 : vector<32x128xf32>
    %cst_27 = arith.constant dense<0.000000e+00> : vector<32xf32>
    %85 = vector.multi_reduction <add>, %84, %cst_27 [1] : vector<32x128xf32> to vector<32xf32>
    %86 = vector.shape_cast %85 : vector<32xf32> to vector<32x1xf32>
    %cst_28 = arith.constant 3.125000e-02 : f32
    %87 = vector.broadcast %cst_28 : f32 to vector<32x1xf32>
    %88 = arith.mulf %86, %87 : vector<32x1xf32>
    %cst_29 = arith.constant 9.99999974E-6 : f32
    %89 = vector.broadcast %cst_29 : f32 to vector<32x1xf32>
    %90 = arith.addf %88, %89 : vector<32x1xf32>
    %91 = math.rsqrt %90 : vector<32x1xf32>
    %92 = vector.broadcast %91 : vector<32x1xf32> to vector<32x128xf32>
    %93 = arith.mulf %83, %92 : vector<32x128xf32>
    %94 = vector.broadcast %74 : vector<1x128xf32> to vector<32x128xf32>
    %95 = arith.mulf %93, %94 : vector<32x128xf32>
    %96 = vector.broadcast %75 : vector<1x128xf32> to vector<32x128xf32>
    %97 = arith.addf %95, %96 : vector<32x128xf32>
    %98 = arith.truncf %97 : vector<32x128xf32> to vector<32x128xbf16>
    %c0_30 = arith.constant 0 : index
    %c0_31 = arith.constant 0 : index
    %99 = vector.load %arg8[%c0_30, %c0_31] : memref<128x256xbf16, #tpu.memory_space<vmem>>, vector<128x256xbf16>
    %cst_32 = arith.constant dense<0.000000e+00> : vector<32x256xf32>
    %100 = tpu.matmul %98, %99, %cst_32 {dimension_numbers = #tpu.dot_dimension_numbers<[1], [0], [0], [1], [0, 0, 1, 1], [], []>} : vector<32x128xbf16>, vector<128x256xbf16>, vector<32x256xf32> -> vector<32x256xf32>
    %c0_33 = arith.constant 0 : index
    %c0_34 = arith.constant 0 : index
    %101 = vector.load %arg9[%c0_33, %c0_34] : memref<1x256xf32, #tpu.memory_space<vmem>>, vector<1x256xf32>
    %102 = vector.broadcast %101 : vector<1x256xf32> to vector<32x256xf32>
    %103 = arith.addf %100, %102 : vector<32x256xf32>
    %cst_35 = arith.constant 0.000000e+00 : f32
    %104 = vector.broadcast %cst_35 : f32 to vector<32x256xf32>
    %105 = arith.maximumf %103, %104 : vector<32x256xf32>
    %106 = arith.truncf %105 : vector<32x256xf32> to vector<32x256xbf16>
    %c0_36 = arith.constant 0 : index
    %c0_37 = arith.constant 0 : index
    %107 = vector.load %arg10[%c0_36, %c0_37] : memref<256x128xbf16, #tpu.memory_space<vmem>>, vector<256x128xbf16>
    %cst_38 = arith.constant dense<0.000000e+00> : vector<32x128xf32>
    %108 = tpu.matmul %106, %107, %cst_38 {dimension_numbers = #tpu.dot_dimension_numbers<[1], [0], [0], [1], [0, 0, 1, 1], [], []>} : vector<32x256xbf16>, vector<256x128xbf16>, vector<32x128xf32> -> vector<32x128xf32>
    %c0_39 = arith.constant 0 : index
    %c0_40 = arith.constant 0 : index
    %109 = vector.load %arg11[%c0_39, %c0_40] : memref<1x128xf32, #tpu.memory_space<vmem>>, vector<1x128xf32>
    %110 = vector.broadcast %109 : vector<1x128xf32> to vector<32x128xf32>
    %111 = arith.addf %108, %110 : vector<32x128xf32>
    %112 = arith.addf %97, %111 : vector<32x128xf32>
    %c0_41 = arith.constant 0 : index
    %c0_42 = arith.constant 0 : index
    %113 = vector.load %arg12[%c0_41, %c0_42] : memref<1x128xf32, #tpu.memory_space<vmem>>, vector<1x128xf32>
    %c0_43 = arith.constant 0 : index
    %c0_44 = arith.constant 0 : index
    %114 = vector.load %arg13[%c0_43, %c0_44] : memref<1x128xf32, #tpu.memory_space<vmem>>, vector<1x128xf32>
    %cst_45 = arith.constant dense<0.000000e+00> : vector<32xf32>
    %115 = vector.multi_reduction <add>, %112, %cst_45 [1] : vector<32x128xf32> to vector<32xf32>
    %116 = vector.shape_cast %115 : vector<32xf32> to vector<32x1xf32>
    %cst_46 = arith.constant 3.125000e-02 : f32
    %117 = vector.broadcast %cst_46 : f32 to vector<32x1xf32>
    %118 = arith.mulf %116, %117 : vector<32x1xf32>
    %119 = vector.broadcast %118 : vector<32x1xf32> to vector<32x128xf32>
    %120 = arith.subf %112, %119 : vector<32x128xf32>
    %121 = vector.broadcast %4 : vector<1x128xf32> to vector<32x128xf32>
    %122 = arith.mulf %120, %121 : vector<32x128xf32>
    %123 = arith.mulf %122, %122 : vector<32x128xf32>
    %cst_47 = arith.constant dense<0.000000e+00> : vector<32xf32>
    %124 = vector.multi_reduction <add>, %123, %cst_47 [1] : vector<32x128xf32> to vector<32xf32>
    %125 = vector.shape_cast %124 : vector<32xf32> to vector<32x1xf32>
    %cst_48 = arith.constant 3.125000e-02 : f32
    %126 = vector.broadcast %cst_48 : f32 to vector<32x1xf32>
    %127 = arith.mulf %125, %126 : vector<32x1xf32>
    %cst_49 = arith.constant 9.99999974E-6 : f32
    %128 = vector.broadcast %cst_49 : f32 to vector<32x1xf32>
    %129 = arith.addf %127, %128 : vector<32x1xf32>
    %130 = math.rsqrt %129 : vector<32x1xf32>
    %131 = vector.broadcast %130 : vector<32x1xf32> to vector<32x128xf32>
    %132 = arith.mulf %122, %131 : vector<32x128xf32>
    %133 = vector.broadcast %113 : vector<1x128xf32> to vector<32x128xf32>
    %134 = arith.mulf %132, %133 : vector<32x128xf32>
    %135 = vector.broadcast %114 : vector<1x128xf32> to vector<32x128xf32>
    %136 = arith.addf %134, %135 : vector<32x128xf32>
    %137 = vector.shape_cast %136 : vector<32x128xf32> to vector<16x2x128xf32>
    %c0_50 = arith.constant 0 : index
    %c0_51 = arith.constant 0 : index
    %c0_52 = arith.constant 0 : index
    %138 = vector.load %arg14[%c0_50, %c0_51, %c0_52] : memref<16x2x128xf32, #tpu.memory_space<vmem>>, vector<16x2x128xf32>
    tpu.vector_store %arg14[%c0_50, %c0_51, %c0_52], %137 {strides = array<i32>} : memref<16x2x128xf32, #tpu.memory_space<vmem>>, vector<16x2x128xf32>,
    return
  }
  func.func @transform_0(%arg0: i32) -> (i32, i32, i32) {
    %c0_i32 = arith.constant 0 : i32
    %c0_i32_0 = arith.constant 0 : i32
    %c0_i32_1 = arith.constant 0 : i32
    return %c0_i32, %arg0, %c0_i32_0 : i32, i32, i32
  }
  func.func @transform_1(%arg0: i32) -> (i32, i32) {
    %c0_i32 = arith.constant 0 : i32
    %c0_i32_0 = arith.constant 0 : i32
    %c0_i32_1 = arith.constant 0 : i32
    return %c0_i32, %c0_i32_0 : i32, i32
  }
  func.func @transform_2(%arg0: i32) -> (i32, i32) {
    %c0_i32 = arith.constant 0 : i32
    %c0_i32_0 = arith.constant 0 : i32
    %c0_i32_1 = arith.constant 0 : i32
    return %c0_i32, %c0_i32_0 : i32, i32
  }
  func.func @transform_3(%arg0: i32) -> (i32, i32) {
    %c0_i32 = arith.constant 0 : i32
    %c0_i32_0 = arith.constant 0 : i32
    %c0_i32_1 = arith.constant 0 : i32
    return %c0_i32, %c0_i32_0 : i32, i32
  }
  func.func @transform_4(%arg0: i32) -> (i32, i32) {
    %c0_i32 = arith.constant 0 : i32
    %c0_i32_0 = arith.constant 0 : i32
    %c0_i32_1 = arith.constant 0 : i32
    return %c0_i32, %c0_i32_0 : i32, i32
  }
  func.func @transform_5(%arg0: i32) -> (i32, i32) {
    %c0_i32 = arith.constant 0 : i32
    %c0_i32_0 = arith.constant 0 : i32
    %c0_i32_1 = arith.constant 0 : i32
    return %c0_i32, %c0_i32_0 : i32, i32
  }
  func.func @transform_6(%arg0: i32) -> (i32, i32) {
    %c0_i32 = arith.constant 0 : i32
    %c0_i32_0 = arith.constant 0 : i32
    %c0_i32_1 = arith.constant 0 : i32
    return %c0_i32, %c0_i32_0 : i32, i32
  }
  func.func @transform_7(%arg0: i32) -> (i32, i32) {
    %c0_i32 = arith.constant 0 : i32
    %c0_i32_0 = arith.constant 0 : i32
    %c0_i32_1 = arith.constant 0 : i32
    return %c0_i32, %c0_i32_0 : i32, i32
  }
  func.func @transform_8(%arg0: i32) -> (i32, i32) {
    %c0_i32 = arith.constant 0 : i32
    %c0_i32_0 = arith.constant 0 : i32
    %c0_i32_1 = arith.constant 0 : i32
    return %c0_i32, %c0_i32_0 : i32, i32
  }
  func.func @transform_9(%arg0: i32) -> (i32, i32) {
    %c0_i32 = arith.constant 0 : i32
    %c0_i32_0 = arith.constant 0 : i32
    %c0_i32_1 = arith.constant 0 : i32
    return %c0_i32, %c0_i32_0 : i32, i32
  }
  func.func @transform_10(%arg0: i32) -> (i32, i32) {
    %c0_i32 = arith.constant 0 : i32
    %c0_i32_0 = arith.constant 0 : i32
    %c0_i32_1 = arith.constant 0 : i32
    return %c0_i32, %c0_i32_0 : i32, i32
  }
  func.func @transform_11(%arg0: i32) -> (i32, i32) {
    %c0_i32 = arith.constant 0 : i32
    %c0_i32_0 = arith.constant 0 : i32
    %c0_i32_1 = arith.constant 0 : i32
    return %c0_i32, %c0_i32_0 : i32, i32
  }
  func.func @transform_12(%arg0: i32) -> (i32, i32) {
    %c0_i32 = arith.constant 0 : i32
    %c0_i32_0 = arith.constant 0 : i32
    %c0_i32_1 = arith.constant 0 : i32
    return %c0_i32, %c0_i32_0 : i32, i32
  }
  func.func @transform_13(%arg0: i32) -> (i32, i32, i32) {
    %c0_i32 = arith.constant 0 : i32
    %c0_i32_0 = arith.constant 0 : i32
    %c0_i32_1 = arith.constant 0 : i32
    return %c0_i32, %arg0, %c0_i32_0 : i32, i32, i32
  }
}

module attributes {stable_mosaic.version = 11 : i64} {
  func.func @_mlp_gates_kernel(%arg0: i32, %arg1: memref<8x2x16xf32, #tpu.memory_space<vmem>>, %arg2: memref<16x128xbf16, #tpu.memory_space<vmem>>, %arg3: memref<1x128xf32, #tpu.memory_space<vmem>>, %arg4: memref<128x128xbf16, #tpu.memory_space<vmem>>, %arg5: memref<1x128xf32, #tpu.memory_space<vmem>>, %arg6: memref<128x512xbf16, #tpu.memory_space<vmem>>, %arg7: memref<1x512xf32, #tpu.memory_space<vmem>>, %arg8: memref<8x2x512xf32, #tpu.memory_space<vmem>>) attributes {dimension_semantics = [#tpu.dimension_semantics<parallel>], iteration_bounds = array<i64: 2>, scalar_prefetch = 0 : i64, scratch_operands = 0 : i64, tpu.core_type = #tpu.core_type<tc>, window_params = [{transform_indices = @transform_0, window_bounds = array<i64: 8, 2, 16>}, {pipeline_mode = #tpu.pipeline_mode<synchronous>, transform_indices = @transform_1, window_bounds = array<i64: 16, 128>}, {pipeline_mode = #tpu.pipeline_mode<synchronous>, transform_indices = @transform_2, window_bounds = array<i64: 1, 128>}, {pipeline_mode = #tpu.pipeline_mode<synchronous>, transform_indices = @transform_3, window_bounds = array<i64: 128, 128>}, {pipeline_mode = #tpu.pipeline_mode<synchronous>, transform_indices = @transform_4, window_bounds = array<i64: 1, 128>}, {pipeline_mode = #tpu.pipeline_mode<synchronous>, transform_indices = @transform_5, window_bounds = array<i64: 128, 512>}, {pipeline_mode = #tpu.pipeline_mode<synchronous>, transform_indices = @transform_6, window_bounds = array<i64: 1, 512>}, {transform_indices = @transform_7, window_bounds = array<i64: 8, 2, 512>}]} {
    %c0 = arith.constant 0 : index
    %c0_0 = arith.constant 0 : index
    %c0_1 = arith.constant 0 : index
    %0 = vector.load %arg1[%c0, %c0_0, %c0_1] : memref<8x2x16xf32, #tpu.memory_space<vmem>>, vector<8x2x16xf32>
    %1 = vector.shape_cast %0 : vector<8x2x16xf32> to vector<16x16xf32>
    %2 = arith.truncf %1 : vector<16x16xf32> to vector<16x16xbf16>
    %c0_2 = arith.constant 0 : index
    %c0_3 = arith.constant 0 : index
    %3 = vector.load %arg2[%c0_2, %c0_3] : memref<16x128xbf16, #tpu.memory_space<vmem>>, vector<16x128xbf16>
    %cst = arith.constant dense<0.000000e+00> : vector<16x128xf32>
    %4 = tpu.matmul %2, %3, %cst {dimension_numbers = #tpu.dot_dimension_numbers<[1], [0], [0], [1], [0, 0, 1, 1], [], []>} : vector<16x16xbf16>, vector<16x128xbf16>, vector<16x128xf32> -> vector<16x128xf32>
    %c0_4 = arith.constant 0 : index
    %c0_5 = arith.constant 0 : index
    %5 = vector.load %arg3[%c0_4, %c0_5] : memref<1x128xf32, #tpu.memory_space<vmem>>, vector<1x128xf32>
    %6 = vector.broadcast %5 : vector<1x128xf32> to vector<16x128xf32>
    %7 = arith.addf %4, %6 : vector<16x128xf32>
    %cst_6 = arith.constant 0.000000e+00 : f32
    %8 = vector.broadcast %cst_6 : f32 to vector<16x128xf32>
    %9 = arith.maximumf %7, %8 : vector<16x128xf32>
    %10 = arith.truncf %9 : vector<16x128xf32> to vector<16x128xbf16>
    %c0_7 = arith.constant 0 : index
    %c0_8 = arith.constant 0 : index
    %11 = vector.load %arg4[%c0_7, %c0_8] : memref<128x128xbf16, #tpu.memory_space<vmem>>, vector<128x128xbf16>
    %cst_9 = arith.constant dense<0.000000e+00> : vector<16x128xf32>
    %12 = tpu.matmul %10, %11, %cst_9 {dimension_numbers = #tpu.dot_dimension_numbers<[1], [0], [0], [1], [0, 0, 1, 1], [], []>} : vector<16x128xbf16>, vector<128x128xbf16>, vector<16x128xf32> -> vector<16x128xf32>
    %c0_10 = arith.constant 0 : index
    %c0_11 = arith.constant 0 : index
    %13 = vector.load %arg5[%c0_10, %c0_11] : memref<1x128xf32, #tpu.memory_space<vmem>>, vector<1x128xf32>
    %14 = vector.broadcast %13 : vector<1x128xf32> to vector<16x128xf32>
    %15 = arith.addf %12, %14 : vector<16x128xf32>
    %cst_12 = arith.constant 0.000000e+00 : f32
    %16 = vector.broadcast %cst_12 : f32 to vector<16x128xf32>
    %17 = arith.maximumf %15, %16 : vector<16x128xf32>
    %18 = arith.truncf %17 : vector<16x128xf32> to vector<16x128xbf16>
    %c0_13 = arith.constant 0 : index
    %c0_14 = arith.constant 0 : index
    %19 = vector.load %arg6[%c0_13, %c0_14] : memref<128x512xbf16, #tpu.memory_space<vmem>>, vector<128x512xbf16>
    %cst_15 = arith.constant dense<0.000000e+00> : vector<16x512xf32>
    %20 = tpu.matmul %18, %19, %cst_15 {dimension_numbers = #tpu.dot_dimension_numbers<[1], [0], [0], [1], [0, 0, 1, 1], [], []>} : vector<16x128xbf16>, vector<128x512xbf16>, vector<16x512xf32> -> vector<16x512xf32>
    %c0_16 = arith.constant 0 : index
    %c0_17 = arith.constant 0 : index
    %21 = vector.load %arg7[%c0_16, %c0_17] : memref<1x512xf32, #tpu.memory_space<vmem>>, vector<1x512xf32>
    %22 = vector.broadcast %21 : vector<1x512xf32> to vector<16x512xf32>
    %23 = arith.addf %20, %22 : vector<16x512xf32>
    %24 = vector.shape_cast %23 : vector<16x512xf32> to vector<8x2x512xf32>
    %c0_18 = arith.constant 0 : index
    %c0_19 = arith.constant 0 : index
    %c0_20 = arith.constant 0 : index
    %25 = vector.load %arg8[%c0_18, %c0_19, %c0_20] : memref<8x2x512xf32, #tpu.memory_space<vmem>>, vector<8x2x512xf32>
    tpu.vector_store %arg8[%c0_18, %c0_19, %c0_20], %24 {strides = array<i32>} : memref<8x2x512xf32, #tpu.memory_space<vmem>>, vector<8x2x512xf32>,
    return
  }
  func.func @transform_0(%arg0: i32) -> (i32, i32, i32) {
    %c0_i32 = arith.constant 0 : i32
    %c0_i32_0 = arith.constant 0 : i32
    %c0_i32_1 = arith.constant 0 : i32
    return %arg0, %c0_i32, %c0_i32_0 : i32, i32, i32
  }
  func.func @transform_1(%arg0: i32) -> (i32, i32) {
    %c0_i32 = arith.constant 0 : i32
    %c0_i32_0 = arith.constant 0 : i32
    %c0_i32_1 = arith.constant 0 : i32
    return %c0_i32, %c0_i32_0 : i32, i32
  }
  func.func @transform_2(%arg0: i32) -> (i32, i32) {
    %c0_i32 = arith.constant 0 : i32
    %c0_i32_0 = arith.constant 0 : i32
    %c0_i32_1 = arith.constant 0 : i32
    return %c0_i32, %c0_i32_0 : i32, i32
  }
  func.func @transform_3(%arg0: i32) -> (i32, i32) {
    %c0_i32 = arith.constant 0 : i32
    %c0_i32_0 = arith.constant 0 : i32
    %c0_i32_1 = arith.constant 0 : i32
    return %c0_i32, %c0_i32_0 : i32, i32
  }
  func.func @transform_4(%arg0: i32) -> (i32, i32) {
    %c0_i32 = arith.constant 0 : i32
    %c0_i32_0 = arith.constant 0 : i32
    %c0_i32_1 = arith.constant 0 : i32
    return %c0_i32, %c0_i32_0 : i32, i32
  }
  func.func @transform_5(%arg0: i32) -> (i32, i32) {
    %c0_i32 = arith.constant 0 : i32
    %c0_i32_0 = arith.constant 0 : i32
    %c0_i32_1 = arith.constant 0 : i32
    return %c0_i32, %c0_i32_0 : i32, i32
  }
  func.func @transform_6(%arg0: i32) -> (i32, i32) {
    %c0_i32 = arith.constant 0 : i32
    %c0_i32_0 = arith.constant 0 : i32
    %c0_i32_1 = arith.constant 0 : i32
    return %c0_i32, %c0_i32_0 : i32, i32
  }
  func.func @transform_7(%arg0: i32) -> (i32, i32, i32) {
    %c0_i32 = arith.constant 0 : i32
    %c0_i32_0 = arith.constant 0 : i32
    %c0_i32_1 = arith.constant 0 : i32
    return %arg0, %c0_i32, %c0_i32_0 : i32, i32, i32
  }
}

module attributes {stable_mosaic.version = 11 : i64} {
  func.func @_lstm_kernel(%arg0: i32, %arg1: i32, %arg2: memref<8x2x512xf32, #tpu.memory_space<vmem>>, %arg3: memref<128x512xbf16, #tpu.memory_space<vmem>>, %arg4: memref<8x2x128xf32, #tpu.memory_space<vmem>>, %arg5: memref<2x128xf32, #tpu.memory_space<vmem>>, %arg6: memref<2x128xf32, #tpu.memory_space<vmem>>) attributes {dimension_semantics = [#tpu.dimension_semantics<parallel>, #tpu.dimension_semantics<arbitrary>], iteration_bounds = array<i64: 1, 2>, scalar_prefetch = 0 : i64, scratch_operands = 2 : i64, tpu.core_type = #tpu.core_type<tc>, window_params = [{transform_indices = @transform_0, window_bounds = array<i64: 8, 2, 512>}, {pipeline_mode = #tpu.pipeline_mode<synchronous>, transform_indices = @transform_1, window_bounds = array<i64: 128, 512>}, {transform_indices = @transform_2, window_bounds = array<i64: 8, 2, 128>}]} {
    %c0_i32 = arith.constant 0 : i32
    %0 = arith.cmpi eq, %arg1, %c0_i32 : i32
    %1 = arith.extui %0 : i1 to i32
    %c0_i32_0 = arith.constant 0 : i32
    %2 = arith.cmpi ne, %1, %c0_i32_0 : i32
    scf.if %2 {
      %cst_130 = arith.constant 0.000000e+00 : f32
      %316 = vector.broadcast %cst_130 : f32 to vector<2x128xf32>
      %c0_131 = arith.constant 0 : index
      %c0_132 = arith.constant 0 : index
      %317 = vector.load %arg5[%c0_131, %c0_132] : memref<2x128xf32, #tpu.memory_space<vmem>>, vector<2x128xf32>
      tpu.vector_store %arg5[%c0_131, %c0_132], %316 {strides = array<i32>} : memref<2x128xf32, #tpu.memory_space<vmem>>, vector<2x128xf32>,
      %cst_133 = arith.constant 0.000000e+00 : f32
      %318 = vector.broadcast %cst_133 : f32 to vector<2x128xf32>
      %c0_134 = arith.constant 0 : index
      %c0_135 = arith.constant 0 : index
      %319 = vector.load %arg6[%c0_134, %c0_135] : memref<2x128xf32, #tpu.memory_space<vmem>>, vector<2x128xf32>
      tpu.vector_store %arg6[%c0_134, %c0_135], %318 {strides = array<i32>} : memref<2x128xf32, #tpu.memory_space<vmem>>, vector<2x128xf32>,
    } else {
    }
    %c0 = arith.constant 0 : index
    %c0_1 = arith.constant 0 : index
    %3 = vector.load %arg3[%c0, %c0_1] : memref<128x512xbf16, #tpu.memory_space<vmem>>, vector<128x512xbf16>
    %c0_i32_2 = arith.constant 0 : i32
    %4 = arith.index_cast %c0_i32_2 : i32 to index
    %c0_3 = arith.constant 0 : index
    %c0_4 = arith.constant 0 : index
    %5 = vector.load %arg2[%4, %c0_3, %c0_4] : memref<8x2x512xf32, #tpu.memory_space<vmem>>, vector<1x2x512xf32>
    %6 = vector.shape_cast %5 : vector<1x2x512xf32> to vector<2x512xf32>
    %c0_5 = arith.constant 0 : index
    %c0_6 = arith.constant 0 : index
    %7 = vector.load %arg5[%c0_5, %c0_6] : memref<2x128xf32, #tpu.memory_space<vmem>>, vector<2x128xf32>
    %8 = arith.truncf %7 : vector<2x128xf32> to vector<2x128xbf16>
    %cst = arith.constant dense<0.000000e+00> : vector<2x512xf32>
    %9 = tpu.matmul %8, %3, %cst {dimension_numbers = #tpu.dot_dimension_numbers<[1], [0], [0], [1], [0, 0, 1, 1], [], []>} : vector<2x128xbf16>, vector<128x512xbf16>, vector<2x512xf32> -> vector<2x512xf32>
    %10 = arith.addf %6, %9 : vector<2x512xf32>
    %11 = vector.extract_strided_slice %10 {offsets = [0, 0], sizes = [2, 128], strides = [1, 1]} : vector<2x512xf32> to vector<2x128xf32>
    %12 = arith.negf %11 : vector<2x128xf32>
    %13 = math.exp %12 : vector<2x128xf32>
    %cst_7 = arith.constant 1.000000e+00 : f32
    %14 = vector.broadcast %cst_7 : f32 to vector<2x128xf32>
    %15 = arith.addf %14, %13 : vector<2x128xf32>
    %16 = arith.divf %14, %15 : vector<2x128xf32>
    %17 = vector.extract_strided_slice %10 {offsets = [0, 128], sizes = [2, 128], strides = [1, 1]} : vector<2x512xf32> to vector<2x128xf32>
    %18 = arith.negf %17 : vector<2x128xf32>
    %19 = math.exp %18 : vector<2x128xf32>
    %cst_8 = arith.constant 1.000000e+00 : f32
    %20 = vector.broadcast %cst_8 : f32 to vector<2x128xf32>
    %21 = arith.addf %20, %19 : vector<2x128xf32>
    %22 = arith.divf %20, %21 : vector<2x128xf32>
    %23 = vector.extract_strided_slice %10 {offsets = [0, 256], sizes = [2, 128], strides = [1, 1]} : vector<2x512xf32> to vector<2x128xf32>
    %24 = math.tanh %23 : vector<2x128xf32>
    %25 = vector.extract_strided_slice %10 {offsets = [0, 384], sizes = [2, 128], strides = [1, 1]} : vector<2x512xf32> to vector<2x128xf32>
    %26 = arith.negf %25 : vector<2x128xf32>
    %27 = math.exp %26 : vector<2x128xf32>
    %cst_9 = arith.constant 1.000000e+00 : f32
    %28 = vector.broadcast %cst_9 : f32 to vector<2x128xf32>
    %29 = arith.addf %28, %27 : vector<2x128xf32>
    %30 = arith.divf %28, %29 : vector<2x128xf32>
    %c0_10 = arith.constant 0 : index
    %c0_11 = arith.constant 0 : index
    %31 = vector.load %arg6[%c0_10, %c0_11] : memref<2x128xf32, #tpu.memory_space<vmem>>, vector<2x128xf32>
    %32 = arith.mulf %22, %31 : vector<2x128xf32>
    %33 = arith.mulf %16, %24 : vector<2x128xf32>
    %34 = arith.addf %32, %33 : vector<2x128xf32>
    %35 = math.tanh %34 : vector<2x128xf32>
    %36 = arith.mulf %30, %35 : vector<2x128xf32>
    %c0_12 = arith.constant 0 : index
    %c0_13 = arith.constant 0 : index
    %37 = vector.load %arg6[%c0_12, %c0_13] : memref<2x128xf32, #tpu.memory_space<vmem>>, vector<2x128xf32>
    tpu.vector_store %arg6[%c0_12, %c0_13], %34 {strides = array<i32>} : memref<2x128xf32, #tpu.memory_space<vmem>>, vector<2x128xf32>,
    %c0_14 = arith.constant 0 : index
    %c0_15 = arith.constant 0 : index
    %38 = vector.load %arg5[%c0_14, %c0_15] : memref<2x128xf32, #tpu.memory_space<vmem>>, vector<2x128xf32>
    tpu.vector_store %arg5[%c0_14, %c0_15], %36 {strides = array<i32>} : memref<2x128xf32, #tpu.memory_space<vmem>>, vector<2x128xf32>,
    %39 = arith.index_cast %c0_i32_2 : i32 to index
    %c0_16 = arith.constant 0 : index
    %c0_17 = arith.constant 0 : index
    %40 = vector.load %arg4[%39, %c0_16, %c0_17] : memref<8x2x128xf32, #tpu.memory_space<vmem>>, vector<1x2x128xf32>
    %41 = vector.shape_cast %40 : vector<1x2x128xf32> to vector<2x128xf32>
    %42 = vector.shape_cast %36 : vector<2x128xf32> to vector<1x2x128xf32>
    tpu.vector_store %arg4[%39, %c0_16, %c0_17], %42 {strides = array<i32>} : memref<8x2x128xf32, #tpu.memory_space<vmem>>, vector<1x2x128xf32>,
    %c1_i32 = arith.constant 1 : i32
    %43 = arith.index_cast %c1_i32 : i32 to index
    %c0_18 = arith.constant 0 : index
    %c0_19 = arith.constant 0 : index
    %44 = vector.load %arg2[%43, %c0_18, %c0_19] : memref<8x2x512xf32, #tpu.memory_space<vmem>>, vector<1x2x512xf32>
    %45 = vector.shape_cast %44 : vector<1x2x512xf32> to vector<2x512xf32>
    %c0_20 = arith.constant 0 : index
    %c0_21 = arith.constant 0 : index
    %46 = vector.load %arg5[%c0_20, %c0_21] : memref<2x128xf32, #tpu.memory_space<vmem>>, vector<2x128xf32>
    %47 = arith.truncf %46 : vector<2x128xf32> to vector<2x128xbf16>
    %cst_22 = arith.constant dense<0.000000e+00> : vector<2x512xf32>
    %48 = tpu.matmul %47, %3, %cst_22 {dimension_numbers = #tpu.dot_dimension_numbers<[1], [0], [0], [1], [0, 0, 1, 1], [], []>} : vector<2x128xbf16>, vector<128x512xbf16>, vector<2x512xf32> -> vector<2x512xf32>
    %49 = arith.addf %45, %48 : vector<2x512xf32>
    %50 = vector.extract_strided_slice %49 {offsets = [0, 0], sizes = [2, 128], strides = [1, 1]} : vector<2x512xf32> to vector<2x128xf32>
    %51 = arith.negf %50 : vector<2x128xf32>
    %52 = math.exp %51 : vector<2x128xf32>
    %cst_23 = arith.constant 1.000000e+00 : f32
    %53 = vector.broadcast %cst_23 : f32 to vector<2x128xf32>
    %54 = arith.addf %53, %52 : vector<2x128xf32>
    %55 = arith.divf %53, %54 : vector<2x128xf32>
    %56 = vector.extract_strided_slice %49 {offsets = [0, 128], sizes = [2, 128], strides = [1, 1]} : vector<2x512xf32> to vector<2x128xf32>
    %57 = arith.negf %56 : vector<2x128xf32>
    %58 = math.exp %57 : vector<2x128xf32>
    %cst_24 = arith.constant 1.000000e+00 : f32
    %59 = vector.broadcast %cst_24 : f32 to vector<2x128xf32>
    %60 = arith.addf %59, %58 : vector<2x128xf32>
    %61 = arith.divf %59, %60 : vector<2x128xf32>
    %62 = vector.extract_strided_slice %49 {offsets = [0, 256], sizes = [2, 128], strides = [1, 1]} : vector<2x512xf32> to vector<2x128xf32>
    %63 = math.tanh %62 : vector<2x128xf32>
    %64 = vector.extract_strided_slice %49 {offsets = [0, 384], sizes = [2, 128], strides = [1, 1]} : vector<2x512xf32> to vector<2x128xf32>
    %65 = arith.negf %64 : vector<2x128xf32>
    %66 = math.exp %65 : vector<2x128xf32>
    %cst_25 = arith.constant 1.000000e+00 : f32
    %67 = vector.broadcast %cst_25 : f32 to vector<2x128xf32>
    %68 = arith.addf %67, %66 : vector<2x128xf32>
    %69 = arith.divf %67, %68 : vector<2x128xf32>
    %c0_26 = arith.constant 0 : index
    %c0_27 = arith.constant 0 : index
    %70 = vector.load %arg6[%c0_26, %c0_27] : memref<2x128xf32, #tpu.memory_space<vmem>>, vector<2x128xf32>
    %71 = arith.mulf %61, %70 : vector<2x128xf32>
    %72 = arith.mulf %55, %63 : vector<2x128xf32>
    %73 = arith.addf %71, %72 : vector<2x128xf32>
    %74 = math.tanh %73 : vector<2x128xf32>
    %75 = arith.mulf %69, %74 : vector<2x128xf32>
    %c0_28 = arith.constant 0 : index
    %c0_29 = arith.constant 0 : index
    %76 = vector.load %arg6[%c0_28, %c0_29] : memref<2x128xf32, #tpu.memory_space<vmem>>, vector<2x128xf32>
    tpu.vector_store %arg6[%c0_28, %c0_29], %73 {strides = array<i32>} : memref<2x128xf32, #tpu.memory_space<vmem>>, vector<2x128xf32>,
    %c0_30 = arith.constant 0 : index
    %c0_31 = arith.constant 0 : index
    %77 = vector.load %arg5[%c0_30, %c0_31] : memref<2x128xf32, #tpu.memory_space<vmem>>, vector<2x128xf32>
    tpu.vector_store %arg5[%c0_30, %c0_31], %75 {strides = array<i32>} : memref<2x128xf32, #tpu.memory_space<vmem>>, vector<2x128xf32>,
    %78 = arith.index_cast %c1_i32 : i32 to index
    %c0_32 = arith.constant 0 : index
    %c0_33 = arith.constant 0 : index
    %79 = vector.load %arg4[%78, %c0_32, %c0_33] : memref<8x2x128xf32, #tpu.memory_space<vmem>>, vector<1x2x128xf32>
    %80 = vector.shape_cast %79 : vector<1x2x128xf32> to vector<2x128xf32>
    %81 = vector.shape_cast %75 : vector<2x128xf32> to vector<1x2x128xf32>
    tpu.vector_store %arg4[%78, %c0_32, %c0_33], %81 {strides = array<i32>} : memref<8x2x128xf32, #tpu.memory_space<vmem>>, vector<1x2x128xf32>,
    %c2_i32 = arith.constant 2 : i32
    %82 = arith.index_cast %c2_i32 : i32 to index
    %c0_34 = arith.constant 0 : index
    %c0_35 = arith.constant 0 : index
    %83 = vector.load %arg2[%82, %c0_34, %c0_35] : memref<8x2x512xf32, #tpu.memory_space<vmem>>, vector<1x2x512xf32>
    %84 = vector.shape_cast %83 : vector<1x2x512xf32> to vector<2x512xf32>
    %c0_36 = arith.constant 0 : index
    %c0_37 = arith.constant 0 : index
    %85 = vector.load %arg5[%c0_36, %c0_37] : memref<2x128xf32, #tpu.memory_space<vmem>>, vector<2x128xf32>
    %86 = arith.truncf %85 : vector<2x128xf32> to vector<2x128xbf16>
    %cst_38 = arith.constant dense<0.000000e+00> : vector<2x512xf32>
    %87 = tpu.matmul %86, %3, %cst_38 {dimension_numbers = #tpu.dot_dimension_numbers<[1], [0], [0], [1], [0, 0, 1, 1], [], []>} : vector<2x128xbf16>, vector<128x512xbf16>, vector<2x512xf32> -> vector<2x512xf32>
    %88 = arith.addf %84, %87 : vector<2x512xf32>
    %89 = vector.extract_strided_slice %88 {offsets = [0, 0], sizes = [2, 128], strides = [1, 1]} : vector<2x512xf32> to vector<2x128xf32>
    %90 = arith.negf %89 : vector<2x128xf32>
    %91 = math.exp %90 : vector<2x128xf32>
    %cst_39 = arith.constant 1.000000e+00 : f32
    %92 = vector.broadcast %cst_39 : f32 to vector<2x128xf32>
    %93 = arith.addf %92, %91 : vector<2x128xf32>
    %94 = arith.divf %92, %93 : vector<2x128xf32>
    %95 = vector.extract_strided_slice %88 {offsets = [0, 128], sizes = [2, 128], strides = [1, 1]} : vector<2x512xf32> to vector<2x128xf32>
    %96 = arith.negf %95 : vector<2x128xf32>
    %97 = math.exp %96 : vector<2x128xf32>
    %cst_40 = arith.constant 1.000000e+00 : f32
    %98 = vector.broadcast %cst_40 : f32 to vector<2x128xf32>
    %99 = arith.addf %98, %97 : vector<2x128xf32>
    %100 = arith.divf %98, %99 : vector<2x128xf32>
    %101 = vector.extract_strided_slice %88 {offsets = [0, 256], sizes = [2, 128], strides = [1, 1]} : vector<2x512xf32> to vector<2x128xf32>
    %102 = math.tanh %101 : vector<2x128xf32>
    %103 = vector.extract_strided_slice %88 {offsets = [0, 384], sizes = [2, 128], strides = [1, 1]} : vector<2x512xf32> to vector<2x128xf32>
    %104 = arith.negf %103 : vector<2x128xf32>
    %105 = math.exp %104 : vector<2x128xf32>
    %cst_41 = arith.constant 1.000000e+00 : f32
    %106 = vector.broadcast %cst_41 : f32 to vector<2x128xf32>
    %107 = arith.addf %106, %105 : vector<2x128xf32>
    %108 = arith.divf %106, %107 : vector<2x128xf32>
    %c0_42 = arith.constant 0 : index
    %c0_43 = arith.constant 0 : index
    %109 = vector.load %arg6[%c0_42, %c0_43] : memref<2x128xf32, #tpu.memory_space<vmem>>, vector<2x128xf32>
    %110 = arith.mulf %100, %109 : vector<2x128xf32>
    %111 = arith.mulf %94, %102 : vector<2x128xf32>
    %112 = arith.addf %110, %111 : vector<2x128xf32>
    %113 = math.tanh %112 : vector<2x128xf32>
    %114 = arith.mulf %108, %113 : vector<2x128xf32>
    %c0_44 = arith.constant 0 : index
    %c0_45 = arith.constant 0 : index
    %115 = vector.load %arg6[%c0_44, %c0_45] : memref<2x128xf32, #tpu.memory_space<vmem>>, vector<2x128xf32>
    tpu.vector_store %arg6[%c0_44, %c0_45], %112 {strides = array<i32>} : memref<2x128xf32, #tpu.memory_space<vmem>>, vector<2x128xf32>,
    %c0_46 = arith.constant 0 : index
    %c0_47 = arith.constant 0 : index
    %116 = vector.load %arg5[%c0_46, %c0_47] : memref<2x128xf32, #tpu.memory_space<vmem>>, vector<2x128xf32>
    tpu.vector_store %arg5[%c0_46, %c0_47], %114 {strides = array<i32>} : memref<2x128xf32, #tpu.memory_space<vmem>>, vector<2x128xf32>,
    %117 = arith.index_cast %c2_i32 : i32 to index
    %c0_48 = arith.constant 0 : index
    %c0_49 = arith.constant 0 : index
    %118 = vector.load %arg4[%117, %c0_48, %c0_49] : memref<8x2x128xf32, #tpu.memory_space<vmem>>, vector<1x2x128xf32>
    %119 = vector.shape_cast %118 : vector<1x2x128xf32> to vector<2x128xf32>
    %120 = vector.shape_cast %114 : vector<2x128xf32> to vector<1x2x128xf32>
    tpu.vector_store %arg4[%117, %c0_48, %c0_49], %120 {strides = array<i32>} : memref<8x2x128xf32, #tpu.memory_space<vmem>>, vector<1x2x128xf32>,
    %c3_i32 = arith.constant 3 : i32
    %121 = arith.index_cast %c3_i32 : i32 to index
    %c0_50 = arith.constant 0 : index
    %c0_51 = arith.constant 0 : index
    %122 = vector.load %arg2[%121, %c0_50, %c0_51] : memref<8x2x512xf32, #tpu.memory_space<vmem>>, vector<1x2x512xf32>
    %123 = vector.shape_cast %122 : vector<1x2x512xf32> to vector<2x512xf32>
    %c0_52 = arith.constant 0 : index
    %c0_53 = arith.constant 0 : index
    %124 = vector.load %arg5[%c0_52, %c0_53] : memref<2x128xf32, #tpu.memory_space<vmem>>, vector<2x128xf32>
    %125 = arith.truncf %124 : vector<2x128xf32> to vector<2x128xbf16>
    %cst_54 = arith.constant dense<0.000000e+00> : vector<2x512xf32>
    %126 = tpu.matmul %125, %3, %cst_54 {dimension_numbers = #tpu.dot_dimension_numbers<[1], [0], [0], [1], [0, 0, 1, 1], [], []>} : vector<2x128xbf16>, vector<128x512xbf16>, vector<2x512xf32> -> vector<2x512xf32>
    %127 = arith.addf %123, %126 : vector<2x512xf32>
    %128 = vector.extract_strided_slice %127 {offsets = [0, 0], sizes = [2, 128], strides = [1, 1]} : vector<2x512xf32> to vector<2x128xf32>
    %129 = arith.negf %128 : vector<2x128xf32>
    %130 = math.exp %129 : vector<2x128xf32>
    %cst_55 = arith.constant 1.000000e+00 : f32
    %131 = vector.broadcast %cst_55 : f32 to vector<2x128xf32>
    %132 = arith.addf %131, %130 : vector<2x128xf32>
    %133 = arith.divf %131, %132 : vector<2x128xf32>
    %134 = vector.extract_strided_slice %127 {offsets = [0, 128], sizes = [2, 128], strides = [1, 1]} : vector<2x512xf32> to vector<2x128xf32>
    %135 = arith.negf %134 : vector<2x128xf32>
    %136 = math.exp %135 : vector<2x128xf32>
    %cst_56 = arith.constant 1.000000e+00 : f32
    %137 = vector.broadcast %cst_56 : f32 to vector<2x128xf32>
    %138 = arith.addf %137, %136 : vector<2x128xf32>
    %139 = arith.divf %137, %138 : vector<2x128xf32>
    %140 = vector.extract_strided_slice %127 {offsets = [0, 256], sizes = [2, 128], strides = [1, 1]} : vector<2x512xf32> to vector<2x128xf32>
    %141 = math.tanh %140 : vector<2x128xf32>
    %142 = vector.extract_strided_slice %127 {offsets = [0, 384], sizes = [2, 128], strides = [1, 1]} : vector<2x512xf32> to vector<2x128xf32>
    %143 = arith.negf %142 : vector<2x128xf32>
    %144 = math.exp %143 : vector<2x128xf32>
    %cst_57 = arith.constant 1.000000e+00 : f32
    %145 = vector.broadcast %cst_57 : f32 to vector<2x128xf32>
    %146 = arith.addf %145, %144 : vector<2x128xf32>
    %147 = arith.divf %145, %146 : vector<2x128xf32>
    %c0_58 = arith.constant 0 : index
    %c0_59 = arith.constant 0 : index
    %148 = vector.load %arg6[%c0_58, %c0_59] : memref<2x128xf32, #tpu.memory_space<vmem>>, vector<2x128xf32>
    %149 = arith.mulf %139, %148 : vector<2x128xf32>
    %150 = arith.mulf %133, %141 : vector<2x128xf32>
    %151 = arith.addf %149, %150 : vector<2x128xf32>
    %152 = math.tanh %151 : vector<2x128xf32>
    %153 = arith.mulf %147, %152 : vector<2x128xf32>
    %c0_60 = arith.constant 0 : index
    %c0_61 = arith.constant 0 : index
    %154 = vector.load %arg6[%c0_60, %c0_61] : memref<2x128xf32, #tpu.memory_space<vmem>>, vector<2x128xf32>
    tpu.vector_store %arg6[%c0_60, %c0_61], %151 {strides = array<i32>} : memref<2x128xf32, #tpu.memory_space<vmem>>, vector<2x128xf32>,
    %c0_62 = arith.constant 0 : index
    %c0_63 = arith.constant 0 : index
    %155 = vector.load %arg5[%c0_62, %c0_63] : memref<2x128xf32, #tpu.memory_space<vmem>>, vector<2x128xf32>
    tpu.vector_store %arg5[%c0_62, %c0_63], %153 {strides = array<i32>} : memref<2x128xf32, #tpu.memory_space<vmem>>, vector<2x128xf32>,
    %156 = arith.index_cast %c3_i32 : i32 to index
    %c0_64 = arith.constant 0 : index
    %c0_65 = arith.constant 0 : index
    %157 = vector.load %arg4[%156, %c0_64, %c0_65] : memref<8x2x128xf32, #tpu.memory_space<vmem>>, vector<1x2x128xf32>
    %158 = vector.shape_cast %157 : vector<1x2x128xf32> to vector<2x128xf32>
    %159 = vector.shape_cast %153 : vector<2x128xf32> to vector<1x2x128xf32>
    tpu.vector_store %arg4[%156, %c0_64, %c0_65], %159 {strides = array<i32>} : memref<8x2x128xf32, #tpu.memory_space<vmem>>, vector<1x2x128xf32>,
    %c4_i32 = arith.constant 4 : i32
    %160 = arith.index_cast %c4_i32 : i32 to index
    %c0_66 = arith.constant 0 : index
    %c0_67 = arith.constant 0 : index
    %161 = vector.load %arg2[%160, %c0_66, %c0_67] : memref<8x2x512xf32, #tpu.memory_space<vmem>>, vector<1x2x512xf32>
    %162 = vector.shape_cast %161 : vector<1x2x512xf32> to vector<2x512xf32>
    %c0_68 = arith.constant 0 : index
    %c0_69 = arith.constant 0 : index
    %163 = vector.load %arg5[%c0_68, %c0_69] : memref<2x128xf32, #tpu.memory_space<vmem>>, vector<2x128xf32>
    %164 = arith.truncf %163 : vector<2x128xf32> to vector<2x128xbf16>
    %cst_70 = arith.constant dense<0.000000e+00> : vector<2x512xf32>
    %165 = tpu.matmul %164, %3, %cst_70 {dimension_numbers = #tpu.dot_dimension_numbers<[1], [0], [0], [1], [0, 0, 1, 1], [], []>} : vector<2x128xbf16>, vector<128x512xbf16>, vector<2x512xf32> -> vector<2x512xf32>
    %166 = arith.addf %162, %165 : vector<2x512xf32>
    %167 = vector.extract_strided_slice %166 {offsets = [0, 0], sizes = [2, 128], strides = [1, 1]} : vector<2x512xf32> to vector<2x128xf32>
    %168 = arith.negf %167 : vector<2x128xf32>
    %169 = math.exp %168 : vector<2x128xf32>
    %cst_71 = arith.constant 1.000000e+00 : f32
    %170 = vector.broadcast %cst_71 : f32 to vector<2x128xf32>
    %171 = arith.addf %170, %169 : vector<2x128xf32>
    %172 = arith.divf %170, %171 : vector<2x128xf32>
    %173 = vector.extract_strided_slice %166 {offsets = [0, 128], sizes = [2, 128], strides = [1, 1]} : vector<2x512xf32> to vector<2x128xf32>
    %174 = arith.negf %173 : vector<2x128xf32>
    %175 = math.exp %174 : vector<2x128xf32>
    %cst_72 = arith.constant 1.000000e+00 : f32
    %176 = vector.broadcast %cst_72 : f32 to vector<2x128xf32>
    %177 = arith.addf %176, %175 : vector<2x128xf32>
    %178 = arith.divf %176, %177 : vector<2x128xf32>
    %179 = vector.extract_strided_slice %166 {offsets = [0, 256], sizes = [2, 128], strides = [1, 1]} : vector<2x512xf32> to vector<2x128xf32>
    %180 = math.tanh %179 : vector<2x128xf32>
    %181 = vector.extract_strided_slice %166 {offsets = [0, 384], sizes = [2, 128], strides = [1, 1]} : vector<2x512xf32> to vector<2x128xf32>
    %182 = arith.negf %181 : vector<2x128xf32>
    %183 = math.exp %182 : vector<2x128xf32>
    %cst_73 = arith.constant 1.000000e+00 : f32
    %184 = vector.broadcast %cst_73 : f32 to vector<2x128xf32>
    %185 = arith.addf %184, %183 : vector<2x128xf32>
    %186 = arith.divf %184, %185 : vector<2x128xf32>
    %c0_74 = arith.constant 0 : index
    %c0_75 = arith.constant 0 : index
    %187 = vector.load %arg6[%c0_74, %c0_75] : memref<2x128xf32, #tpu.memory_space<vmem>>, vector<2x128xf32>
    %188 = arith.mulf %178, %187 : vector<2x128xf32>
    %189 = arith.mulf %172, %180 : vector<2x128xf32>
    %190 = arith.addf %188, %189 : vector<2x128xf32>
    %191 = math.tanh %190 : vector<2x128xf32>
    %192 = arith.mulf %186, %191 : vector<2x128xf32>
    %c0_76 = arith.constant 0 : index
    %c0_77 = arith.constant 0 : index
    %193 = vector.load %arg6[%c0_76, %c0_77] : memref<2x128xf32, #tpu.memory_space<vmem>>, vector<2x128xf32>
    tpu.vector_store %arg6[%c0_76, %c0_77], %190 {strides = array<i32>} : memref<2x128xf32, #tpu.memory_space<vmem>>, vector<2x128xf32>,
    %c0_78 = arith.constant 0 : index
    %c0_79 = arith.constant 0 : index
    %194 = vector.load %arg5[%c0_78, %c0_79] : memref<2x128xf32, #tpu.memory_space<vmem>>, vector<2x128xf32>
    tpu.vector_store %arg5[%c0_78, %c0_79], %192 {strides = array<i32>} : memref<2x128xf32, #tpu.memory_space<vmem>>, vector<2x128xf32>,
    %195 = arith.index_cast %c4_i32 : i32 to index
    %c0_80 = arith.constant 0 : index
    %c0_81 = arith.constant 0 : index
    %196 = vector.load %arg4[%195, %c0_80, %c0_81] : memref<8x2x128xf32, #tpu.memory_space<vmem>>, vector<1x2x128xf32>
    %197 = vector.shape_cast %196 : vector<1x2x128xf32> to vector<2x128xf32>
    %198 = vector.shape_cast %192 : vector<2x128xf32> to vector<1x2x128xf32>
    tpu.vector_store %arg4[%195, %c0_80, %c0_81], %198 {strides = array<i32>} : memref<8x2x128xf32, #tpu.memory_space<vmem>>, vector<1x2x128xf32>,
    %c5_i32 = arith.constant 5 : i32
    %199 = arith.index_cast %c5_i32 : i32 to index
    %c0_82 = arith.constant 0 : index
    %c0_83 = arith.constant 0 : index
    %200 = vector.load %arg2[%199, %c0_82, %c0_83] : memref<8x2x512xf32, #tpu.memory_space<vmem>>, vector<1x2x512xf32>
    %201 = vector.shape_cast %200 : vector<1x2x512xf32> to vector<2x512xf32>
    %c0_84 = arith.constant 0 : index
    %c0_85 = arith.constant 0 : index
    %202 = vector.load %arg5[%c0_84, %c0_85] : memref<2x128xf32, #tpu.memory_space<vmem>>, vector<2x128xf32>
    %203 = arith.truncf %202 : vector<2x128xf32> to vector<2x128xbf16>
    %cst_86 = arith.constant dense<0.000000e+00> : vector<2x512xf32>
    %204 = tpu.matmul %203, %3, %cst_86 {dimension_numbers = #tpu.dot_dimension_numbers<[1], [0], [0], [1], [0, 0, 1, 1], [], []>} : vector<2x128xbf16>, vector<128x512xbf16>, vector<2x512xf32> -> vector<2x512xf32>
    %205 = arith.addf %201, %204 : vector<2x512xf32>
    %206 = vector.extract_strided_slice %205 {offsets = [0, 0], sizes = [2, 128], strides = [1, 1]} : vector<2x512xf32> to vector<2x128xf32>
    %207 = arith.negf %206 : vector<2x128xf32>
    %208 = math.exp %207 : vector<2x128xf32>
    %cst_87 = arith.constant 1.000000e+00 : f32
    %209 = vector.broadcast %cst_87 : f32 to vector<2x128xf32>
    %210 = arith.addf %209, %208 : vector<2x128xf32>
    %211 = arith.divf %209, %210 : vector<2x128xf32>
    %212 = vector.extract_strided_slice %205 {offsets = [0, 128], sizes = [2, 128], strides = [1, 1]} : vector<2x512xf32> to vector<2x128xf32>
    %213 = arith.negf %212 : vector<2x128xf32>
    %214 = math.exp %213 : vector<2x128xf32>
    %cst_88 = arith.constant 1.000000e+00 : f32
    %215 = vector.broadcast %cst_88 : f32 to vector<2x128xf32>
    %216 = arith.addf %215, %214 : vector<2x128xf32>
    %217 = arith.divf %215, %216 : vector<2x128xf32>
    %218 = vector.extract_strided_slice %205 {offsets = [0, 256], sizes = [2, 128], strides = [1, 1]} : vector<2x512xf32> to vector<2x128xf32>
    %219 = math.tanh %218 : vector<2x128xf32>
    %220 = vector.extract_strided_slice %205 {offsets = [0, 384], sizes = [2, 128], strides = [1, 1]} : vector<2x512xf32> to vector<2x128xf32>
    %221 = arith.negf %220 : vector<2x128xf32>
    %222 = math.exp %221 : vector<2x128xf32>
    %cst_89 = arith.constant 1.000000e+00 : f32
    %223 = vector.broadcast %cst_89 : f32 to vector<2x128xf32>
    %224 = arith.addf %223, %222 : vector<2x128xf32>
    %225 = arith.divf %223, %224 : vector<2x128xf32>
    %c0_90 = arith.constant 0 : index
    %c0_91 = arith.constant 0 : index
    %226 = vector.load %arg6[%c0_90, %c0_91] : memref<2x128xf32, #tpu.memory_space<vmem>>, vector<2x128xf32>
    %227 = arith.mulf %217, %226 : vector<2x128xf32>
    %228 = arith.mulf %211, %219 : vector<2x128xf32>
    %229 = arith.addf %227, %228 : vector<2x128xf32>
    %230 = math.tanh %229 : vector<2x128xf32>
    %231 = arith.mulf %225, %230 : vector<2x128xf32>
    %c0_92 = arith.constant 0 : index
    %c0_93 = arith.constant 0 : index
    %232 = vector.load %arg6[%c0_92, %c0_93] : memref<2x128xf32, #tpu.memory_space<vmem>>, vector<2x128xf32>
    tpu.vector_store %arg6[%c0_92, %c0_93], %229 {strides = array<i32>} : memref<2x128xf32, #tpu.memory_space<vmem>>, vector<2x128xf32>,
    %c0_94 = arith.constant 0 : index
    %c0_95 = arith.constant 0 : index
    %233 = vector.load %arg5[%c0_94, %c0_95] : memref<2x128xf32, #tpu.memory_space<vmem>>, vector<2x128xf32>
    tpu.vector_store %arg5[%c0_94, %c0_95], %231 {strides = array<i32>} : memref<2x128xf32, #tpu.memory_space<vmem>>, vector<2x128xf32>,
    %234 = arith.index_cast %c5_i32 : i32 to index
    %c0_96 = arith.constant 0 : index
    %c0_97 = arith.constant 0 : index
    %235 = vector.load %arg4[%234, %c0_96, %c0_97] : memref<8x2x128xf32, #tpu.memory_space<vmem>>, vector<1x2x128xf32>
    %236 = vector.shape_cast %235 : vector<1x2x128xf32> to vector<2x128xf32>
    %237 = vector.shape_cast %231 : vector<2x128xf32> to vector<1x2x128xf32>
    tpu.vector_store %arg4[%234, %c0_96, %c0_97], %237 {strides = array<i32>} : memref<8x2x128xf32, #tpu.memory_space<vmem>>, vector<1x2x128xf32>,
    %c6_i32 = arith.constant 6 : i32
    %238 = arith.index_cast %c6_i32 : i32 to index
    %c0_98 = arith.constant 0 : index
    %c0_99 = arith.constant 0 : index
    %239 = vector.load %arg2[%238, %c0_98, %c0_99] : memref<8x2x512xf32, #tpu.memory_space<vmem>>, vector<1x2x512xf32>
    %240 = vector.shape_cast %239 : vector<1x2x512xf32> to vector<2x512xf32>
    %c0_100 = arith.constant 0 : index
    %c0_101 = arith.constant 0 : index
    %241 = vector.load %arg5[%c0_100, %c0_101] : memref<2x128xf32, #tpu.memory_space<vmem>>, vector<2x128xf32>
    %242 = arith.truncf %241 : vector<2x128xf32> to vector<2x128xbf16>
    %cst_102 = arith.constant dense<0.000000e+00> : vector<2x512xf32>
    %243 = tpu.matmul %242, %3, %cst_102 {dimension_numbers = #tpu.dot_dimension_numbers<[1], [0], [0], [1], [0, 0, 1, 1], [], []>} : vector<2x128xbf16>, vector<128x512xbf16>, vector<2x512xf32> -> vector<2x512xf32>
    %244 = arith.addf %240, %243 : vector<2x512xf32>
    %245 = vector.extract_strided_slice %244 {offsets = [0, 0], sizes = [2, 128], strides = [1, 1]} : vector<2x512xf32> to vector<2x128xf32>
    %246 = arith.negf %245 : vector<2x128xf32>
    %247 = math.exp %246 : vector<2x128xf32>
    %cst_103 = arith.constant 1.000000e+00 : f32
    %248 = vector.broadcast %cst_103 : f32 to vector<2x128xf32>
    %249 = arith.addf %248, %247 : vector<2x128xf32>
    %250 = arith.divf %248, %249 : vector<2x128xf32>
    %251 = vector.extract_strided_slice %244 {offsets = [0, 128], sizes = [2, 128], strides = [1, 1]} : vector<2x512xf32> to vector<2x128xf32>
    %252 = arith.negf %251 : vector<2x128xf32>
    %253 = math.exp %252 : vector<2x128xf32>
    %cst_104 = arith.constant 1.000000e+00 : f32
    %254 = vector.broadcast %cst_104 : f32 to vector<2x128xf32>
    %255 = arith.addf %254, %253 : vector<2x128xf32>
    %256 = arith.divf %254, %255 : vector<2x128xf32>
    %257 = vector.extract_strided_slice %244 {offsets = [0, 256], sizes = [2, 128], strides = [1, 1]} : vector<2x512xf32> to vector<2x128xf32>
    %258 = math.tanh %257 : vector<2x128xf32>
    %259 = vector.extract_strided_slice %244 {offsets = [0, 384], sizes = [2, 128], strides = [1, 1]} : vector<2x512xf32> to vector<2x128xf32>
    %260 = arith.negf %259 : vector<2x128xf32>
    %261 = math.exp %260 : vector<2x128xf32>
    %cst_105 = arith.constant 1.000000e+00 : f32
    %262 = vector.broadcast %cst_105 : f32 to vector<2x128xf32>
    %263 = arith.addf %262, %261 : vector<2x128xf32>
    %264 = arith.divf %262, %263 : vector<2x128xf32>
    %c0_106 = arith.constant 0 : index
    %c0_107 = arith.constant 0 : index
    %265 = vector.load %arg6[%c0_106, %c0_107] : memref<2x128xf32, #tpu.memory_space<vmem>>, vector<2x128xf32>
    %266 = arith.mulf %256, %265 : vector<2x128xf32>
    %267 = arith.mulf %250, %258 : vector<2x128xf32>
    %268 = arith.addf %266, %267 : vector<2x128xf32>
    %269 = math.tanh %268 : vector<2x128xf32>
    %270 = arith.mulf %264, %269 : vector<2x128xf32>
    %c0_108 = arith.constant 0 : index
    %c0_109 = arith.constant 0 : index
    %271 = vector.load %arg6[%c0_108, %c0_109] : memref<2x128xf32, #tpu.memory_space<vmem>>, vector<2x128xf32>
    tpu.vector_store %arg6[%c0_108, %c0_109], %268 {strides = array<i32>} : memref<2x128xf32, #tpu.memory_space<vmem>>, vector<2x128xf32>,
    %c0_110 = arith.constant 0 : index
    %c0_111 = arith.constant 0 : index
    %272 = vector.load %arg5[%c0_110, %c0_111] : memref<2x128xf32, #tpu.memory_space<vmem>>, vector<2x128xf32>
    tpu.vector_store %arg5[%c0_110, %c0_111], %270 {strides = array<i32>} : memref<2x128xf32, #tpu.memory_space<vmem>>, vector<2x128xf32>,
    %273 = arith.index_cast %c6_i32 : i32 to index
    %c0_112 = arith.constant 0 : index
    %c0_113 = arith.constant 0 : index
    %274 = vector.load %arg4[%273, %c0_112, %c0_113] : memref<8x2x128xf32, #tpu.memory_space<vmem>>, vector<1x2x128xf32>
    %275 = vector.shape_cast %274 : vector<1x2x128xf32> to vector<2x128xf32>
    %276 = vector.shape_cast %270 : vector<2x128xf32> to vector<1x2x128xf32>
    tpu.vector_store %arg4[%273, %c0_112, %c0_113], %276 {strides = array<i32>} : memref<8x2x128xf32, #tpu.memory_space<vmem>>, vector<1x2x128xf32>,
    %c7_i32 = arith.constant 7 : i32
    %277 = arith.index_cast %c7_i32 : i32 to index
    %c0_114 = arith.constant 0 : index
    %c0_115 = arith.constant 0 : index
    %278 = vector.load %arg2[%277, %c0_114, %c0_115] : memref<8x2x512xf32, #tpu.memory_space<vmem>>, vector<1x2x512xf32>
    %279 = vector.shape_cast %278 : vector<1x2x512xf32> to vector<2x512xf32>
    %c0_116 = arith.constant 0 : index
    %c0_117 = arith.constant 0 : index
    %280 = vector.load %arg5[%c0_116, %c0_117] : memref<2x128xf32, #tpu.memory_space<vmem>>, vector<2x128xf32>
    %281 = arith.truncf %280 : vector<2x128xf32> to vector<2x128xbf16>
    %cst_118 = arith.constant dense<0.000000e+00> : vector<2x512xf32>
    %282 = tpu.matmul %281, %3, %cst_118 {dimension_numbers = #tpu.dot_dimension_numbers<[1], [0], [0], [1], [0, 0, 1, 1], [], []>} : vector<2x128xbf16>, vector<128x512xbf16>, vector<2x512xf32> -> vector<2x512xf32>
    %283 = arith.addf %279, %282 : vector<2x512xf32>
    %284 = vector.extract_strided_slice %283 {offsets = [0, 0], sizes = [2, 128], strides = [1, 1]} : vector<2x512xf32> to vector<2x128xf32>
    %285 = arith.negf %284 : vector<2x128xf32>
    %286 = math.exp %285 : vector<2x128xf32>
    %cst_119 = arith.constant 1.000000e+00 : f32
    %287 = vector.broadcast %cst_119 : f32 to vector<2x128xf32>
    %288 = arith.addf %287, %286 : vector<2x128xf32>
    %289 = arith.divf %287, %288 : vector<2x128xf32>
    %290 = vector.extract_strided_slice %283 {offsets = [0, 128], sizes = [2, 128], strides = [1, 1]} : vector<2x512xf32> to vector<2x128xf32>
    %291 = arith.negf %290 : vector<2x128xf32>
    %292 = math.exp %291 : vector<2x128xf32>
    %cst_120 = arith.constant 1.000000e+00 : f32
    %293 = vector.broadcast %cst_120 : f32 to vector<2x128xf32>
    %294 = arith.addf %293, %292 : vector<2x128xf32>
    %295 = arith.divf %293, %294 : vector<2x128xf32>
    %296 = vector.extract_strided_slice %283 {offsets = [0, 256], sizes = [2, 128], strides = [1, 1]} : vector<2x512xf32> to vector<2x128xf32>
    %297 = math.tanh %296 : vector<2x128xf32>
    %298 = vector.extract_strided_slice %283 {offsets = [0, 384], sizes = [2, 128], strides = [1, 1]} : vector<2x512xf32> to vector<2x128xf32>
    %299 = arith.negf %298 : vector<2x128xf32>
    %300 = math.exp %299 : vector<2x128xf32>
    %cst_121 = arith.constant 1.000000e+00 : f32
    %301 = vector.broadcast %cst_121 : f32 to vector<2x128xf32>
    %302 = arith.addf %301, %300 : vector<2x128xf32>
    %303 = arith.divf %301, %302 : vector<2x128xf32>
    %c0_122 = arith.constant 0 : index
    %c0_123 = arith.constant 0 : index
    %304 = vector.load %arg6[%c0_122, %c0_123] : memref<2x128xf32, #tpu.memory_space<vmem>>, vector<2x128xf32>
    %305 = arith.mulf %295, %304 : vector<2x128xf32>
    %306 = arith.mulf %289, %297 : vector<2x128xf32>
    %307 = arith.addf %305, %306 : vector<2x128xf32>
    %308 = math.tanh %307 : vector<2x128xf32>
    %309 = arith.mulf %303, %308 : vector<2x128xf32>
    %c0_124 = arith.constant 0 : index
    %c0_125 = arith.constant 0 : index
    %310 = vector.load %arg6[%c0_124, %c0_125] : memref<2x128xf32, #tpu.memory_space<vmem>>, vector<2x128xf32>
    tpu.vector_store %arg6[%c0_124, %c0_125], %307 {strides = array<i32>} : memref<2x128xf32, #tpu.memory_space<vmem>>, vector<2x128xf32>,
    %c0_126 = arith.constant 0 : index
    %c0_127 = arith.constant 0 : index
    %311 = vector.load %arg5[%c0_126, %c0_127] : memref<2x128xf32, #tpu.memory_space<vmem>>, vector<2x128xf32>
    tpu.vector_store %arg5[%c0_126, %c0_127], %309 {strides = array<i32>} : memref<2x128xf32, #tpu.memory_space<vmem>>, vector<2x128xf32>,
    %312 = arith.index_cast %c7_i32 : i32 to index
    %c0_128 = arith.constant 0 : index
    %c0_129 = arith.constant 0 : index
    %313 = vector.load %arg4[%312, %c0_128, %c0_129] : memref<8x2x128xf32, #tpu.memory_space<vmem>>, vector<1x2x128xf32>
    %314 = vector.shape_cast %313 : vector<1x2x128xf32> to vector<2x128xf32>
    %315 = vector.shape_cast %309 : vector<2x128xf32> to vector<1x2x128xf32>
    tpu.vector_store %arg4[%312, %c0_128, %c0_129], %315 {strides = array<i32>} : memref<8x2x128xf32, #tpu.memory_space<vmem>>, vector<1x2x128xf32>,
    %c8_i32 = arith.constant 8 : i32
    return
  }
  func.func @transform_0(%arg0: i32, %arg1: i32) -> (i32, i32, i32) {
    %c0_i32 = arith.constant 0 : i32
    %c0_i32_0 = arith.constant 0 : i32
    return %arg1, %arg0, %c0_i32 : i32, i32, i32
  }
  func.func @transform_1(%arg0: i32, %arg1: i32) -> (i32, i32) {
    %c0_i32 = arith.constant 0 : i32
    %c0_i32_0 = arith.constant 0 : i32
    %c0_i32_1 = arith.constant 0 : i32
    return %c0_i32, %c0_i32_0 : i32, i32
  }
  func.func @transform_2(%arg0: i32, %arg1: i32) -> (i32, i32, i32) {
    %c0_i32 = arith.constant 0 : i32
    %c0_i32_0 = arith.constant 0 : i32
    return %arg1, %arg0, %c0_i32 : i32, i32, i32
  }
}

</mosaic_0001>

<bundles_post_ra>
// kernel: brain_encoder_forward.3
= control target key start
LH: loop header
LB: loop body
LE: loop exit
PB: predicated region body
PF: predicated region fallthrough
CT: control target
= control target key end

     0   :  { %12 = vsyncpa [#allocation3], 0  ;;  %s1262_s24 = smov 0   ;;  %s1382_s0 = inlined_call_operand.vmem [shape: f32[16,2,16], index: 0, kind: input, shape index: {}]   ;;  %s1383_s1 = inlined_call_operand.vmem [shape: bf16[16,128], index: 1, kind: input, shape index: {}]   ;;  %s1384_s2 = inlined_call_operand.vmem [shape: f32[1,128], index: 2, kind: input, shape index: {}]   ;;  %s1385_s3 = inlined_call_operand.vmem [shape: bf16[128,128], index: 3, kind: input, shape index: {}]   ;;  %s1386_s4 = inlined_call_operand.vmem [shape: f32[1,128], index: 4, kind: input, shape index: {}]   ;;  %s1387_s5 = inlined_call_operand.hbm [shape: bf16[128,512], index: 5, kind: input, shape index: {}]   ;;  %s1388_s6 = inlined_call_operand.vmem [shape: f32[1,512], index: 6, kind: input, shape index: {}]   ;;  %s1389_s7 = inlined_call_operand.vmem [shape: f32[16,2,512], index: 7, kind: output, shape index: {}]  }
   0x1 LB: > { %s997_s25 = sadd.s32 4294967295, %s1213_s24   ;;  %p999_p0 = scmp.ge.s32.totalorder %s1213_s24, 1  ;;  %s1213_s24 = sphi %s1262_s24, %s18_s24  }
   0x2   : > { %p201_p1 = scmp.lt.s32.totalorder %s1213_s24, 3  ;;  %s1215_s26 = smov [#allocation2]  }
   0x3   : > { %s225_s27 = sshll.u32 %s1215_s26, 4  ;;  %p1276_p3 = scmp.eq.s32.totalorder %s997_s25, 0  ;;  %s226_s27 = int_to_ptr.vmem [resolvable:$true] %s225_s27 }
   0x4   : > { %p1270_p2 = pnand %p999_p0, %p201_p1  ;;  %s1175_s10 = scalar_lea.hbm %s1387_s5, 4096 }
   0x5   : > { %s1394_s29 = scalar_select %p1276_p3, 1, 0 }
   0x6   : > { %s1393_s28 = scalar_select %p1270_p2, 1, 0 }
   0x7   : > { %p1097_p4 = pneg %p1270_p2  ;;  %p1176_p6 = scmp.ne.s32.totalorder %s1387_s5, %s1175_s10 }
   0x8   : > { %p1182_p10 = scmp.lt.u32.totalorder %s1175_s10, %s1387_s5 }
   0x9   : > { %p1284_p5 = pnand %p1276_p3, %p1097_p4 }
   0xb   : > { %p1177_p7 = pneg %p1284_p5 }
   0xd   : > { %p1178_p8 = pnand %p1177_p7, %p1176_p6 }
   0xf   : > { %p1179_p9 = pneg %p1178_p8 }
  0x11   : > { %p1184_p11 = pnand %p1182_p10, %p1179_p9 }
  0x13   : > { %1187 = shalt.err (!%p1184_p11)
}
  0x14   : > { %s1188_s15 = scalar_lea.vmem %s226_s27, 4096  ;;  %p1196_p1 = scmp.lt.s32.totalorder %s226_s27, %s226_s27 }
  0x15   : > { %p1189_p12 = scmp.ne.s32.totalorder %s226_s27, %s1188_s15  ;;  %p1197_p4 = scmp.lt.s32.totalorder %s1188_s15, %s1188_s15 }
  0x17   : > { %p1191_p13 = pnand %p1189_p12, %p1177_p7  ;;  %p1198_p3 = por %p1197_p4, %p1196_p1 }
  0x19   : > { %p1192_p0 = pneg %p1191_p13 }
  0x1b   : > { %p1199_p2 = pnand %p1198_p3, %p1192_p0 }
  0x1d   : > { %1202 = shalt.err (!%p1199_p2)
}
  0x1e   : > { %s1216_s16 = smov 256   ;;  %s1217_s17 = smov 16  }
  0x1f   : > { %1100 = dma.hbm_to_vmem [thread:$0]  (!%p1284_p5), %s1387_s5, 4096, %s226_s27, [#allocation3], %s1216_s16, %s1216_s16, %s1217_s17  }
  0x20   : > { %p1396_p6 = scmp.ne.s32.totalorder %s1393_s28, 0 }
  0x21   : > { %p1397_p8 = scmp.ne.s32.totalorder (!%p1396_p6), %s1394_s29, 0 }
  0x22   : > { %253 = sbr.rel (%p1396_p6) target bundleno = 725 (0x2d5), region = 48 }
  0x29   : > { %1208 = dma.done.wait (%p1397_p8), [#allocation3], 4096  }
  0x2a   : > { %1210 = vsyncadd (%p1397_p8), [#allocation3], 4294963200  ;;  %s1004_s20 = sshll.u32 %s997_s25, 3  ;;  %v321_v0 = vlaneseq  ;;  %v1218_v1 = vmov 0.0   ;;  %vm1219_vm0 = vmmov 0   ;;  %v1118_v6 = vld [vmem:[%s1383_s1] sm:$0xff]  }
  0x2b   : > { %1067 = vmatprep.subr.bf16.mxu0 %v1218_v1  ;;  %1069 = vmatprep.mubr.msk.bf16.mxu0 %vm1219_vm0, %v1218_v1  ;;  %p287_p2 = scmp.lt.s32.totalorder %s1004_s20, 15  ;;  %v1220_v2 = vmov 1983009808   ;;  %v1119_v21 = vld [vmem:[%s1385_s3] sm:$0xff]   ;;  %v1120_v25 = vld [vmem:[%s1385_s3 + $0x8] sm:$0xff]   ;;  %vm368_vm1 = vcmask 130048  }
  0x2c   : > { %v319_v3 = vunpack.c.l.s4 %v1220_v2  ;;  %1073 = vmatprep.subr.bf16.mxu1 %v1218_v1  ;;  %1089 = vmatprep.mubr.msk.bf16.mxu1 %vm1219_vm0, %v1218_v1  ;;  %v1314_v4 = vshrl.u32 %v321_v0, 7  ;;  %v1121_v28 = vld [vmem:[%s1385_s3 + $0x10] sm:$0xff]   ;;  %v1122_v30 = vld [vmem:[%s1385_s3 + $0x18] sm:$0xff]   ;;  %v1123_v31 = vld [vmem:[%s1385_s3 + $0x20] sm:$0xff]  }
  0x2d   : > { %s1399_s20 = smov (!%p287_p2, %s1004_s20), 15  ;;  %1068 = vmatpush3.bf16.msra.mxu0 %v1118_v6  ;;  %1074 = vmatpush3.bf16.msra.mxu1 %v1119_v21  ;;  %v1124_v32 = vld [vmem:[%s1385_s3 + $0x28] sm:$0xff]   ;;  %v1125_v33 = vld [vmem:[%s1385_s3 + $0x30] sm:$0xff]   ;;  %v1126_v34 = vld [vmem:[%s1385_s3 + $0x38] sm:$0xff]  }
  0x2e   : > { %v320_v5 = vunpack.c.0.s8 %v319_v3  ;;  %s1005_s21 = sshll.u32 %s1399_s20, 1  ;;  %1075 = vmatprep.subr.bf16.mxu1 %v1218_v1  ;;  %v1127_v35 = vld [vmem:[#allocation2] ss:$16 sps:$4 sm:$0xff]   ;;  %v1129_v36 = vld [vmem:[#allocation2 + $0x4] ss:$16 sps:$4 sm:$0xff]   ;;  %s1055_s29 = sshll.u32 %s1399_s20, 3 }
  0x2f   : > { %s290_s25 = scalar_lea.vmem %s1382_s0, %s1005_s21  ;;  %v1132_v37 = vld [vmem:[#allocation2 + $0xc] ss:$16 sps:$4 sm:$0xff]   ;;  %v1135_v38 = vld [vmem:[#allocation2 + $0x24] ss:$16 sps:$4 sm:$0xff]   ;;  %745 = vmatprep.subr.bf16.mxu0 %v1129_v36  ;;  %v1133_v39 = vld [vmem:[#allocation2 + $0x20] ss:$16 sps:$4 sm:$0xff]   ;;  %s297_s9 = scalar_lea.vmem %s1389_s7, %s1055_s29 }
  0x30   : > { %v1324_v7 = vsub.s32 %v320_v5, %v1314_v4  ;;  %v300_v8 = vld [vmem:[%s290_s25] sm:$0x3]  ;;  %v301_v9 = vld [vmem:[%s290_s25 + $0x2] sm:$0x3]  ;;  %v302_v10 = vld [vmem:[%s290_s25 + $0x4] sm:$0x3] }
  0x31   : > { %v303_v11 = vld [vmem:[%s290_s25 + $0x6] sm:$0x3]  ;;  %v304_v12 = vld [vmem:[%s290_s25 + $0x8] sm:$0x3]  ;;  %v305_v13 = vld [vmem:[%s290_s25 + $0xa] sm:$0x3]  ;;  %v316_v14 = vcombine.low %v300_v8, %v301_v9  ;;  %1076 = vmatpush3.bf16.msra.mxu1 %v1120_v25 }
  0x32   : > { %v306_v15 = vld [vmem:[%s290_s25 + $0xc] sm:$0x3]  ;;  %v307_v16 = vld [vmem:[%s290_s25 + $0xe] sm:$0x3]  ;;  %v317_v17 = vcombine.low %v302_v10, %v303_v11  ;;  %v333_v18 = vcombine.low %v304_v12, %v305_v13  ;;  %1077 = vmatprep.subr.bf16.mxu1 %v1218_v1  ;;  %v1141_v40 = vld [vmem:[#allocation2 + $0x44] ss:$16 sps:$4 sm:$0xff]  }
  0x33   : > { %v324_v19 = vrot.slane %v316_v14, %v1324_v7  ;;  %v334_v20 = vcombine.low %v306_v15, %v307_v16  ;;  %v1139_v41 = vld [vmem:[#allocation2 + $0x40] ss:$16 sps:$4 sm:$0xff]   ;;  %v1147_v42 = vld [vmem:[#allocation2 + $0x64] ss:$16 sps:$4 sm:$0xff]   ;;  %v1130_v57 = vld [vmem:[#allocation2 + $0x8] ss:$16 sps:$4 sm:$0xff]  }
  0x34   : > { %v331_v22 = vrot.slane %v317_v17, %v1324_v7  ;;  %v341_v23 = vrot.slane %v333_v18, %v1324_v7  ;;  %v1145_v43 = vld [vmem:[#allocation2 + $0x60] ss:$16 sps:$4 sm:$0xff]   ;;  %v1153_v44 = vld [vmem:[#allocation2 + $0x84] ss:$16 sps:$4 sm:$0xff]   ;;  %v1138_v59 = vld [vmem:[#allocation2 + $0x2c] ss:$16 sps:$4 sm:$0xff]  }
  0x35   : > { %v348_v24 = vrot.slane %v334_v20, %v1324_v7  ;;  %1078 = vmatpush3.bf16.msra.mxu1 %v1121_v28  ;;  %v1151_v45 = vld [vmem:[#allocation2 + $0x80] ss:$16 sps:$4 sm:$0xff]   ;;  %v1159_v46 = vld [vmem:[#allocation2 + $0xa4] ss:$16 sps:$4 sm:$0xff]   ;;  %v1136_v60 = vld [vmem:[#allocation2 + $0x28] ss:$16 sps:$4 sm:$0xff]  }
  0x36   : > { %v332_v26 = vcombine.low %v324_v19, %v331_v22  ;;  %1079 = vmatprep.subr.bf16.mxu1 %v1218_v1  ;;  %v1157_v47 = vld [vmem:[#allocation2 + $0xa0] ss:$16 sps:$4 sm:$0xff]   ;;  %v1144_v61 = vld [vmem:[#allocation2 + $0x4c] ss:$16 sps:$4 sm:$0xff]   ;;  %v1142_v62 = vld [vmem:[#allocation2 + $0x48] ss:$16 sps:$4 sm:$0xff]  }
  0x37   : > { %v349_v27 = vcombine.low %v341_v23, %v348_v24  ;;  %v1009_v48 = vld [vmem:[%s1384_s2] ss:$0 sm:$0xff]  ;;  %v1150_v63 = vld [vmem:[#allocation2 + $0x6c] ss:$16 sps:$4 sm:$0xff]   ;;  %v1148_v0 = vld [vmem:[#allocation2 + $0x68] ss:$16 sps:$4 sm:$0xff]  }
  0x38   : > { %v1154_v2 = vld [vmem:[#allocation2 + $0x88] ss:$16 sps:$4 sm:$0xff]   ;;  %v1162_v3 = vld [vmem:[#allocation2 + $0xac] ss:$16 sps:$4 sm:$0xff]   ;;  %v1165_v6 = vld [vmem:[#allocation2 + $0xc4] ss:$16 sps:$4 sm:$0xff]  }
  0x39   : > { %v352_v29 = vpack.c.bf16 %v349_v27, %v332_v26  ;;  %1080 = vmatpush3.bf16.msra.mxu1 %v1122_v30  ;;  %v1160_v5 = vld [vmem:[#allocation2 + $0xa8] ss:$16 sps:$4 sm:$0xff]   ;;  %v1168_v8 = vld [vmem:[#allocation2 + $0xcc] ss:$16 sps:$4 sm:$0xff]   ;;  %v1163_v9 = vld [vmem:[#allocation2 + $0xc0] ss:$16 sps:$4 sm:$0xff]  }
  0x3a   : > { %1081 = vmatprep.subr.bf16.mxu1 %v1218_v1  ;;  %v1166_v10 = vld [vmem:[#allocation2 + $0xc8] ss:$16 sps:$4 sm:$0xff]   ;;  %v1171_v11 = vld [vmem:[#allocation2 + $0xe4] ss:$16 sps:$4 sm:$0xff]   ;;  %v1174_v12 = vld [vmem:[#allocation2 + $0xec] ss:$16 sps:$4 sm:$0xff]  }
  0x3b   : > { %1070 = vmatmul.mubr.msk.bf16.vlgmr.msra.gmra.mrb[0].mxu0 %vm368_vm1, %v352_v29  ;;  %v1169_v13 = vld [vmem:[#allocation2 + $0xe0] ss:$16 sps:$4 sm:$0xff]   ;;  %v1172_v14 = vld [vmem:[#allocation2 + $0xe8] ss:$16 sps:$4 sm:$0xff]   ;;  %v1221_v15 = vmov 0   ;;  %v567_v26 = vsub.s32 0, %v1314_v4 }
  0x3c   : > { %746 = vmatpush1.bf16.msra.mxu0 %v1127_v35  ;;  %777 = vmatprep.mubr.bf16.mxu0 %v1221_v15  ;;  %v1012_v16 = vld [vmem:[%s1386_s4] ss:$0 sm:$0xff]  ;;  %v575_v27 = vsub.s32 2, %v1314_v4  ;;  %v571_v29 = vsub.s32 1, %v1314_v4  ;;  %v579_v30 = vsub.s32 3, %v1314_v4 }
  0x3d   : > { %1082 = vmatpush3.bf16.msra.mxu1 %v1123_v31  ;;  %747 = vmatprep.subr.bf16.mxu0 %v1135_v38  ;;  %v563_v28 = vld [vmem:[%s1388_s6] sm:$0xf] }
  0x3e   : > { %1083 = vmatprep.subr.bf16.mxu1 %v1218_v1  ;;  %v568_v31 = vrot.slane %v563_v28, %v567_v26 }
  0x40   : > { %748 = vmatpush1.bf16.msra.mxu0 %v1133_v39 }
  0x41   : > { %1084 = vmatpush3.bf16.msra.mxu1 %v1124_v32  ;;  %749 = vmatprep.subr.bf16.mxu0 %v1141_v40  ;;  %v576_v32 = vrot.slane %v563_v28, %v575_v27 }
  0x42   : > { %1085 = vmatprep.subr.bf16.mxu1 %v1218_v1 }
  0x44   : > { %750 = vmatpush1.bf16.msra.mxu0 %v1139_v41 }
  0x45   : > { %1086 = vmatpush3.bf16.msra.mxu1 %v1125_v33  ;;  %751 = vmatprep.subr.bf16.mxu0 %v1147_v42  ;;  %v572_v33 = vrot.slane %v563_v28, %v571_v29 }
  0x46   : > { %1087 = vmatprep.subr.bf16.mxu1 %v1218_v1  ;;  %v1156_v1 = vld [vmem:[#allocation2 + $0x8c] ss:$16 sps:$4 sm:$0xff]  }
  0x48   : > { %752 = vmatpush1.bf16.msra.mxu0 %v1145_v43 }
  0x49   : > { %1088 = vmatpush3.bf16.msra.mxu1 %v1126_v34  ;;  %753 = vmatprep.subr.bf16.mxu0 %v1153_v44  ;;  %v580_v34 = vrot.slane %v563_v28, %v579_v30 }
  0x4a   : > { %788 = vmatprep.subr.bf16.mxu1 %v1132_v37 }
  0x4c   : > { %754 = vmatpush1.bf16.msra.mxu0 %v1151_v45 }
  0x4d   : > { %755 = vmatprep.subr.bf16.mxu0 %v1159_v46 }
  0x50   : > { %756 = vmatpush1.bf16.msra.mxu0 %v1157_v47 }
  0x51   : > { %757 = vmatprep.subr.bf16.mxu0 %v1165_v6 }
  0x54   : > { %758 = vmatpush1.bf16.msra.mxu0 %v1163_v9 }
  0x55   : > { %759 = vmatprep.subr.bf16.mxu0 %v1171_v11 }
  0x58   : > { %760 = vmatpush1.bf16.msra.mxu0 %v1169_v13 }
 0x10e   : > { %v406_v49 = vpop.f32.mrb[0].mxu0 }
 0x10f   : > { %v407_v50 = vadd.f32 %v1009_v48, %v406_v49  ;;  %v1071_v51 = vpop.f32.mrb[1].mxu0 }
 0x110   : > { %v409_v52 = vpop.f32.mrb[2].mxu0 }
 0x111   : > { %v410_v53 = vadd.f32 %v1009_v48, %v409_v52  ;;  %v1072_v54 = vpop.f32.mrb[3].mxu0  ;;  %v413_v55 = vmax.f32 %v407_v50, 0.0 }
 0x113   : > { %v414_v56 = vmax.f32 %v410_v53, 0.0 }
 0x115   : > { %v415_v58 = vpack.c.bf16 %v414_v56, %v413_v55 }
 0x117   : > { %1090 = vmatmul.mubr.bf16.vlgmr.msra.gmra.mrb[0].mxu1 %v415_v58 }
 0x118   : > { %789 = vmatpush1.bf16.msra.mxu1 %v1130_v57  ;;  %820 = vmatprep.mubr.bf16.mxu1 %v1221_v15 }
 0x119   : > { %790 = vmatprep.subr.bf16.mxu1 %v1138_v59 }
 0x11c   : > { %791 = vmatpush1.bf16.msra.mxu1 %v1136_v60 }
 0x11d   : > { %792 = vmatprep.subr.bf16.mxu1 %v1144_v61 }
 0x120   : > { %793 = vmatpush1.bf16.msra.mxu1 %v1142_v62 }
 0x121   : > { %794 = vmatprep.subr.bf16.mxu1 %v1150_v63 }
 0x124   : > { %795 = vmatpush1.bf16.msra.mxu1 %v1148_v0 }
 0x125   : > { %796 = vmatprep.subr.bf16.mxu1 %v1156_v1 }
 0x128   : > { %797 = vmatpush1.bf16.msra.mxu1 %v1154_v2 }
 0x129   : > { %798 = vmatprep.subr.bf16.mxu1 %v1162_v3 }
 0x12c   : > { %799 = vmatpush1.bf16.msra.mxu1 %v1160_v5 }
 0x12d   : > { %800 = vmatprep.subr.bf16.mxu1 %v1168_v8 }
 0x130   : > { %801 = vmatpush1.bf16.msra.mxu1 %v1166_v10 }
 0x131   : > { %802 = vmatprep.subr.bf16.mxu1 %v1174_v12 }
 0x134   : > { %803 = vmatpush1.bf16.msra.mxu1 %v1172_v14 }
 0x1ea   : > { %v521_v17 = vpop.f32.mrb[0].mxu1 }
 0x1eb   : > { %v522_v18 = vadd.f32 %v1012_v16, %v521_v17  ;;  %v1091_v19 = vpop.f32.mrb[1].mxu1 }
 0x1ec   : > { %v524_v20 = vpop.f32.mrb[2].mxu1 }
 0x1ed   : > { %v525_v21 = vadd.f32 %v1012_v16, %v524_v20  ;;  %v1092_v22 = vpop.f32.mrb[3].mxu1  ;;  %v528_v23 = vmax.f32 %v522_v18, 0.0 }
 0x1ef   : > { %v529_v24 = vmax.f32 %v525_v21, 0.0 }
 0x1f1   : > { %v530_v25 = vpack.c.bf16 %v529_v24, %v528_v23 }
 0x1f3   : > { %778 = vmatmul.mubr.bf16.vlgmr.msra.gmra.mrb[4].mxu0 %v530_v25  ;;  %821 = vmatmul.mubr.bf16.vlgmr.msra.gmra.mrb[4].mxu1 %v530_v25 }
 0x2c6   : > { %v779_v35 = vpop.f32.mrb[4].mxu0  ;;  %v822_v36 = vpop.f32.mrb[4].mxu1 }
 0x2c7   : > { %v780_v37 = vadd.f32 %v779_v35, %v568_v31  ;;  %v823_v38 = vadd.f32 %v822_v36, %v576_v32  ;;  %v781_v39 = vpop.f32.mrb[5].mxu0  ;;  %v824_v40 = vpop.f32.mrb[5].mxu1 }
 0x2c8   : > { %v782_v41 = vadd.f32 %v781_v39, %v572_v33  ;;  %v825_v42 = vadd.f32 %v824_v40, %v580_v34  ;;  %v783_v43 = vpop.f32.mrb[6].mxu0  ;;  %v826_v44 = vpop.f32.mrb[6].mxu1 }
 0x2c9   : > { %v784_v45 = vadd.f32 %v783_v43, %v568_v31  ;;  %v827_v46 = vadd.f32 %v826_v44, %v576_v32  ;;  %v785_v47 = vpop.f32.mrb[7].mxu0  ;;  %v828_v48 = vpop.f32.mrb[7].mxu1 }
 0x2ca   : > { %v839_v4 = vcombine.low %v780_v37, %v782_v41  ;;  %v840_v49 = vcombine.high %v780_v37, %v782_v41  ;;  %v841_v50 = vcombine.low %v823_v38, %v825_v42  ;;  %v842_v51 = vcombine.high %v823_v38, %v825_v42 }
 0x2cb   : > { %v786_v52 = vadd.f32 %v785_v47, %v572_v33  ;;  %v829_v53 = vadd.f32 %v828_v48, %v580_v34 }
 0x2cc   : > { %v849_v54 = vrot.slane %v839_v4, %v1324_v7  ;;  %v856_v55 = vrot.slane %v840_v49, %v1324_v7  ;;  %v863_v56 = vrot.slane %v841_v50, %v1324_v7  ;;  %v870_v57 = vrot.slane %v842_v51, %v1324_v7 }
 0x2cd   : > { %v875_v58 = vcombine.low %v784_v45, %v786_v52  ;;  %v876_v59 = vcombine.high %v784_v45, %v786_v52  ;;  %v877_v60 = vcombine.low %v827_v46, %v829_v53  ;;  %v878_v61 = vcombine.high %v827_v46, %v829_v53 }
 0x2ce   : > { %v871_v62 = vcombine.low %v849_v54, %v863_v56  ;;  %v872_v63 = vcombine.high %v849_v54, %v863_v56  ;;  %v873_v0 = vcombine.low %v856_v55, %v870_v57  ;;  %v874_v1 = vcombine.high %v856_v55, %v870_v57 }
 0x2cf   : > { %v885_v2 = vrot.slane %v875_v58, %v1324_v7  ;;  %v892_v3 = vrot.slane %v876_v59, %v1324_v7  ;;  %v899_v5 = vrot.slane %v877_v60, %v1324_v7  ;;  %v906_v6 = vrot.slane %v878_v61, %v1324_v7 }
 0x2d0   : > { %919 = vst [vmem:[%s297_s9] sm:$0xff] %v871_v62  ;;  %920 = vst [vmem:[%s297_s9 + $0x8] sm:$0xff] %v872_v63 }
 0x2d1   : > { %921 = vst [vmem:[%s297_s9 + $0x10] sm:$0xff] %v873_v0  ;;  %922 = vst [vmem:[%s297_s9 + $0x18] sm:$0xff] %v874_v1  ;;  %v907_v8 = vcombine.low %v885_v2, %v899_v5  ;;  %v908_v9 = vcombine.high %v885_v2, %v899_v5  ;;  %v909_v10 = vcombine.low %v892_v3, %v906_v6 }
 0x2d2   : > { %v910_v11 = vcombine.high %v892_v3, %v906_v6 }
 0x2d3   : > { %923 = vst [vmem:[%s297_s9 + $0x20] sm:$0xff] %v907_v8  ;;  %924 = vst [vmem:[%s297_s9 + $0x28] sm:$0xff] %v908_v9 }
 0x2d4   : > { %925 = vst [vmem:[%s297_s9 + $0x30] sm:$0xff] %v909_v10  ;;  %926 = vst [vmem:[%s297_s9 + $0x38] sm:$0xff] %v910_v11 }
 0x2d5 PF: > { %s18_s24 = sadd.s32 1, %s1213_s24  }
 0x2d6   : > { %p15_p3 = scmp.ge.s32.totalorder %s18_s24, 4  }
 0x2d8   :  { %17 = sbr.rel (!%p15_p3) target bundleno = 1 (0x1), region = 83 }
 0x2df   :  { %951 = vsyncpa [#allocation3], 1 }
 0x2e0   :  { %953 = vsyncpa [#allocation3 + $0x1], 1 }

// kernel: brain_encoder_forward.4
= control target key start
LH: loop header
LB: loop body
LE: loop exit
PB: predicated region body
PF: predicated region fallthrough
CT: control target
= control target key end

     0   :  { %s1986_s9 = smov 0   ;;  %s1988_s10 = smov 0   ;;  %s2589_s0 = inlined_call_operand.vmem [shape: f32[16,2,512], index: 0, kind: input, shape index: {}]   ;;  %s2590_s1 = inlined_call_operand.vmem [shape: bf16[128,512], index: 1, kind: input, shape index: {}]   ;;  %s2591_s2 = inlined_call_operand.vmem [shape: f32[16,2,128], index: 2, kind: output, shape index: {}]  }
   0x1   :  { %s1990_s11 = smov 0  }
   0x2 LB: > { %s21_s12 = sadd.s32 1, %s1962_s10  ;;  %p1629_p0 = scmp.ge.s32.totalorder %s1966_s11, 1  ;;  %s1966_s11 = sphi %s1990_s11, %s12_s11   ;;  %s1962_s10 = sphi %s1988_s10, %s2593_s10   ;;  %s1958_s9 = sphi %s1986_s9, %s2592_s9  }
   0x3   : > { %p22_p1 = scmp.ge.s32.totalorder %s21_s12, 2  ;;  %p134_p2 = scmp.lt.s32.totalorder %s1966_s11, 3 }
   0x5   : > { %s2595_s12 = smov (%p22_p1, %s21_s12), 0  ;;  %p135_p3 = pnand %p1629_p0, %p134_p2 }
   0x6   : > { %s1630_s13 = sshll.u32 (!%p135_p3), %s1958_s9, 3  ;;  %p1635_p5 = scmp.ne.s32.totalorder (!%p135_p3), %s1958_s9, 0 }
   0x7   : > { %138 = sbr.rel (%p135_p3) target bundleno = 2254 (0x8ce), region = 28  ;;  %p165_p4 = scmp.lt.s32.totalorder (!%p135_p3), %s1630_s13, 15 }
   0xe   : > { %s2597_s13 = smov (!%p165_p4, %s1630_s13), 15  ;;  %188 = sbr.rel (%p1635_p5) target bundleno = 21 (0x15), region = 32 }
   0xf   : > { %s1708_s14 = sshll.u32 %s2597_s13, 3  ;;  %s1634_s15 = sshll.u32 %s2597_s13, 1  ;;  %v1968_v0 = vmov (!%p1635_p5), 0.0  }
  0x10   : > { %s2007_s18 = scalar_lea.vmem %s2589_s0, %s1708_s14  ;;  %s2012_s21 = scalar_lea.vmem %s2591_s2, %s1634_s15  ;;  %189 = vst [vmem:[#allocation2] sm:$0x3] (!%p1635_p5), %v1968_v0  ;;  %190 = vst [vmem:[#allocation3] sm:$0x3] (!%p1635_p5), %v1968_v0 }
  0x15 PF: > { %v2017_v1 = vld [vmem:[%s2590_s1 + $0x4] ss:$16 sps:$4 sm:$0xff]   ;;  %v2022_v2 = vld [vmem:[%s2590_s1 + $0xc] ss:$16 sps:$4 sm:$0xff]   ;;  %v1969_v3 = vmov 0   ;;  %v477_v38 = vlaneseq }
  0x16   : > { %418 = vmatprep.mubr.bf16.mxu0 %v1969_v3  ;;  %459 = vmatprep.mubr.bf16.mxu1 %v1969_v3  ;;  %v2030_v4 = vld [vmem:[%s2590_s1] ss:$16 sps:$4 sm:$0xff]   ;;  %v2035_v5 = vld [vmem:[%s2590_s1 + $0x8] ss:$16 sps:$4 sm:$0xff]   ;;  %v2041_v6 = vld [vmem:[%s2590_s1 + $0x24] ss:$16 sps:$4 sm:$0xff]  }
  0x17   : > { %386 = vmatprep.subr.bf16.mxu0 %v2017_v1  ;;  %427 = vmatprep.subr.bf16.mxu1 %v2022_v2  ;;  %v2048_v7 = vld [vmem:[%s2590_s1 + $0x2c] ss:$16 sps:$4 sm:$0xff]   ;;  %v2053_v8 = vld [vmem:[%s2590_s1 + $0x20] ss:$16 sps:$4 sm:$0xff]   ;;  %v2059_v9 = vld [vmem:[%s2590_s1 + $0x28] ss:$16 sps:$4 sm:$0xff]  }
  0x18   : > { %387 = vmatpush1.bf16.msra.mxu0 %v2030_v4  ;;  %428 = vmatpush1.bf16.msra.mxu1 %v2035_v5  ;;  %v2065_v10 = vld [vmem:[%s2590_s1 + $0x44] ss:$16 sps:$4 sm:$0xff]   ;;  %v2070_v11 = vld [vmem:[%s2590_s1 + $0x4c] ss:$16 sps:$4 sm:$0xff]   ;;  %v2075_v12 = vld [vmem:[%s2590_s1 + $0x40] ss:$16 sps:$4 sm:$0xff]  }
  0x19   : > { %388 = vmatprep.subr.bf16.mxu0 %v2041_v6  ;;  %429 = vmatprep.subr.bf16.mxu1 %v2048_v7  ;;  %v2080_v13 = vld [vmem:[%s2590_s1 + $0x48] ss:$16 sps:$4 sm:$0xff]   ;;  %v2087_v14 = vld [vmem:[%s2590_s1 + $0x64] ss:$16 sps:$4 sm:$0xff]   ;;  %v2094_v15 = vld [vmem:[%s2590_s1 + $0x6c] ss:$16 sps:$4 sm:$0xff]  }
  0x1a   : > { %v2099_v16 = vld [vmem:[%s2590_s1 + $0x60] ss:$16 sps:$4 sm:$0xff]   ;;  %v2106_v17 = vld [vmem:[%s2590_s1 + $0x68] ss:$16 sps:$4 sm:$0xff]   ;;  %v2111_v18 = vld [vmem:[%s2590_s1 + $0x84] ss:$16 sps:$4 sm:$0xff]  }
  0x1b   : > { %v2118_v19 = vld [vmem:[%s2590_s1 + $0x8c] ss:$16 sps:$4 sm:$0xff]   ;;  %v2123_v20 = vld [vmem:[%s2590_s1 + $0x80] ss:$16 sps:$4 sm:$0xff]   ;;  %v2128_v21 = vld [vmem:[%s2590_s1 + $0x88] ss:$16 sps:$4 sm:$0xff]  }
  0x1c   : > { %389 = vmatpush1.bf16.msra.mxu0 %v2053_v8  ;;  %430 = vmatpush1.bf16.msra.mxu1 %v2059_v9  ;;  %v2135_v22 = vld [vmem:[%s2590_s1 + $0xa4] ss:$16 sps:$4 sm:$0xff]   ;;  %v2142_v23 = vld [vmem:[%s2590_s1 + $0xac] ss:$16 sps:$4 sm:$0xff]   ;;  %v2149_v24 = vld [vmem:[%s2590_s1 + $0xa0] ss:$16 sps:$4 sm:$0xff]  }
  0x1d   : > { %390 = vmatprep.subr.bf16.mxu0 %v2065_v10  ;;  %431 = vmatprep.subr.bf16.mxu1 %v2070_v11  ;;  %v2154_v25 = vld [vmem:[%s2590_s1 + $0xa8] ss:$16 sps:$4 sm:$0xff]   ;;  %v2161_v26 = vld [vmem:[%s2590_s1 + $0xc4] ss:$16 sps:$4 sm:$0xff]   ;;  %v2166_v27 = vld [vmem:[%s2590_s1 + $0xcc] ss:$16 sps:$4 sm:$0xff]  }
  0x1e   : > { %v2173_v28 = vld [vmem:[%s2590_s1 + $0xc0] ss:$16 sps:$4 sm:$0xff]   ;;  %v2178_v29 = vld [vmem:[%s2590_s1 + $0xc8] ss:$16 sps:$4 sm:$0xff]   ;;  %v2185_v30 = vld [vmem:[%s2590_s1 + $0xe4] ss:$16 sps:$4 sm:$0xff]  }
  0x1f   : > { %v2190_v31 = vld [vmem:[%s2590_s1 + $0xec] ss:$16 sps:$4 sm:$0xff]   ;;  %v2197_v32 = vld [vmem:[%s2590_s1 + $0xe0] ss:$16 sps:$4 sm:$0xff]   ;;  %v2202_v33 = vld [vmem:[%s2590_s1 + $0xe8] ss:$16 sps:$4 sm:$0xff]  }
  0x20   : > { %391 = vmatpush1.bf16.msra.mxu0 %v2075_v12  ;;  %432 = vmatpush1.bf16.msra.mxu1 %v2080_v13  ;;  %v224_v34 = vld [vmem:[#allocation2] sm:$0x3]  ;;  %v1970_v36 = vmov 1983009808   ;;  %v478_v40 = vshrl.u32 %v477_v38, 7 }
  0x21   : > { %392 = vmatprep.subr.bf16.mxu0 %v2087_v14  ;;  %433 = vmatprep.subr.bf16.mxu1 %v2094_v15  ;;  %v225_v35 = vpack.c.bf16 %v224_v34, %v224_v34  ;;  %v475_v37 = vunpack.c.l.s4 %v1970_v36  ;;  %v223_v54 = vld [vmem:[%s2007_s18] sm:$0xff] }
  0x22   : > { %v517_v38 = vld [vmem:[#allocation3] sm:$0x3] }
  0x23   : > { %v476_v39 = vunpack.c.0.s8 %v475_v37 }
  0x24   : > { %393 = vmatpush1.bf16.msra.mxu0 %v2099_v16  ;;  %434 = vmatpush1.bf16.msra.mxu1 %v2106_v17 }
  0x25   : > { %394 = vmatprep.subr.bf16.mxu0 %v2111_v18  ;;  %435 = vmatprep.subr.bf16.mxu1 %v2118_v19  ;;  %v2244_v43 = vsub.s32 %v476_v39, %v478_v40 }
  0x28   : > { %395 = vmatpush1.bf16.msra.mxu0 %v2123_v20  ;;  %436 = vmatpush1.bf16.msra.mxu1 %v2128_v21 }
  0x29   : > { %396 = vmatprep.subr.bf16.mxu0 %v2135_v22  ;;  %437 = vmatprep.subr.bf16.mxu1 %v2142_v23 }
  0x2c   : > { %397 = vmatpush1.bf16.msra.mxu0 %v2149_v24  ;;  %438 = vmatpush1.bf16.msra.mxu1 %v2154_v25 }
  0x2d   : > { %398 = vmatprep.subr.bf16.mxu0 %v2161_v26  ;;  %439 = vmatprep.subr.bf16.mxu1 %v2166_v27 }
  0x30   : > { %399 = vmatpush1.bf16.msra.mxu0 %v2173_v28  ;;  %440 = vmatpush1.bf16.msra.mxu1 %v2178_v29 }
  0x31   : > { %400 = vmatprep.subr.bf16.mxu0 %v2185_v30  ;;  %441 = vmatprep.subr.bf16.mxu1 %v2190_v31 }
  0x34   : > { %401 = vmatpush1.bf16.msra.mxu0 %v2197_v32  ;;  %442 = vmatpush1.bf16.msra.mxu1 %v2202_v33 }
  0x35   : > { %530 = vmatprep.subr.bf16.mxu0 %v2017_v1  ;;  %571 = vmatprep.subr.bf16.mxu1 %v2022_v2 }
  0x37   : > { %419 = vmatmul.mubr.bf16.vlgmr.msra.gmra.mrb[0].mxu0 %v225_v35  ;;  %460 = vmatmul.mubr.bf16.vlgmr.msra.gmra.mrb[0].mxu1 %v225_v35 }
  0x38   : > { %531 = vmatpush1.bf16.msra.mxu0 %v2030_v4  ;;  %572 = vmatpush1.bf16.msra.mxu1 %v2035_v5 }
  0x39   : > { %532 = vmatprep.subr.bf16.mxu0 %v2041_v6  ;;  %573 = vmatprep.subr.bf16.mxu1 %v2048_v7 }
  0x3a   : > { %562 = vmatprep.mubr.bf16.mxu0 %v1969_v3  ;;  %603 = vmatprep.mubr.bf16.mxu1 %v1969_v3 }
  0x3c   : > { %533 = vmatpush1.bf16.msra.mxu0 %v2053_v8  ;;  %574 = vmatpush1.bf16.msra.mxu1 %v2059_v9 }
  0x3d   : > { %534 = vmatprep.subr.bf16.mxu0 %v2065_v10  ;;  %575 = vmatprep.subr.bf16.mxu1 %v2070_v11 }
  0x40   : > { %535 = vmatpush1.bf16.msra.mxu0 %v2075_v12  ;;  %576 = vmatpush1.bf16.msra.mxu1 %v2080_v13 }
  0x41   : > { %536 = vmatprep.subr.bf16.mxu0 %v2087_v14  ;;  %577 = vmatprep.subr.bf16.mxu1 %v2094_v15 }
  0x44   : > { %537 = vmatpush1.bf16.msra.mxu0 %v2099_v16  ;;  %578 = vmatpush1.bf16.msra.mxu1 %v2106_v17 }
  0x45   : > { %538 = vmatprep.subr.bf16.mxu0 %v2111_v18  ;;  %579 = vmatprep.subr.bf16.mxu1 %v2118_v19 }
  0x48   : > { %539 = vmatpush1.bf16.msra.mxu0 %v2123_v20  ;;  %580 = vmatpush1.bf16.msra.mxu1 %v2128_v21 }
  0x49   : > { %540 = vmatprep.subr.bf16.mxu0 %v2135_v22  ;;  %581 = vmatprep.subr.bf16.mxu1 %v2142_v23 }
  0x4c   : > { %541 = vmatpush1.bf16.msra.mxu0 %v2149_v24  ;;  %582 = vmatpush1.bf16.msra.mxu1 %v2154_v25 }
  0x4d   : > { %542 = vmatprep.subr.bf16.mxu0 %v2161_v26  ;;  %583 = vmatprep.subr.bf16.mxu1 %v2166_v27 }
  0x50   : > { %543 = vmatpush1.bf16.msra.mxu0 %v2173_v28  ;;  %584 = vmatpush1.bf16.msra.mxu1 %v2178_v29 }
  0x51   : > { %544 = vmatprep.subr.bf16.mxu0 %v2185_v30  ;;  %585 = vmatprep.subr.bf16.mxu1 %v2190_v31 }
  0x54   : > { %545 = vmatpush1.bf16.msra.mxu0 %v2197_v32  ;;  %586 = vmatpush1.bf16.msra.mxu1 %v2202_v33 }
  0x55   : > { %675 = vmatprep.subr.bf16.mxu0 %v2017_v1  ;;  %716 = vmatprep.subr.bf16.mxu1 %v2022_v2 }
 0x10a   : > { %v420_v41 = vpop.f32.mrb[0].mxu0  ;;  %v461_v42 = vpop.f32.mrb[0].mxu1 }
 0x10b   : > { %v422_v44 = vpop.f32.mrb[1].mxu0  ;;  %v463_v45 = vpop.f32.mrb[1].mxu1 }
 0x10c   : > { %v472_v46 = vcombine.low %v420_v41, %v422_v44  ;;  %v473_v47 = vcombine.low %v461_v42, %v463_v45  ;;  %v424_v48 = vpop.f32.mrb[2].mxu0  ;;  %v465_v49 = vpop.f32.mrb[2].mxu1 }
 0x10d   : > { %v425_v50 = vpop.f32.mrb[3].mxu0  ;;  %v466_v51 = vpop.f32.mrb[3].mxu1 }
 0x10e   : > { %v480_v52 = vrot.slane %v472_v46, %v2244_v43  ;;  %v487_v53 = vrot.slane %v473_v47, %v2244_v43 }
 0x110   : > { %v488_v55 = vcombine.low %v480_v52, %v487_v53 }
 0x112   : > { %v490_v56 = vadd.f32 %v488_v55, %v223_v54 }
 0x114   : > { %v1668_v57 = vmul.f32 -1.442695, %v490_v56  ;;  %v498_v58 = vrot.slane %v490_v56, 2  ;;  %v509_v60 = vrot.slane %v490_v56, 6  ;;  %v506_v63 = vrot.slane %v490_v56, 4 }
 0x116   : > { %1784 = vpow2.f32 %v1668_v57  ;;  %v1669_v59 = vmul.f32 -1.442695, %v498_v58  ;;  %v1670_v61 = vmul.f32 -1.442695, %v509_v60 }
 0x118   : > { %1786 = vpow2.f32 %v1669_v59 }
 0x119   : > { %1788 = vpow2.f32 %v1670_v61 }
 0x120   : > { %v1785_v62 = vpop.eup %1784 }
 0x121   : > { %v494_v0 = vadd.f32 1.0, %v1785_v62 }
 0x122   : > { %v1787_v34 = vpop.eup %1786 }
 0x123   : > { %1790 = vrcp.f32 %v494_v0  ;;  %v503_v35 = vadd.f32 1.0, %v1787_v34  ;;  %v1789_v36 = vpop.eup %1788 }
 0x124   : > { %1792 = vtanh.f32 %v506_v63  ;;  %v514_v41 = vadd.f32 1.0, %v1789_v36  ;;  %v1671_v63 = vld [vmem:[%s2007_s18 + $0x8] sm:$0xff] }
 0x125   : > { %1794 = vrcp.f32 %v503_v35 }
 0x126   : > { %1796 = vrcp.f32 %v514_v41 }
 0x12d   : > { %v1791_v37 = vpop.eup %1790 }
 0x12e   : > { %v1793_v39 = vpop.eup %1792 }
 0x12f   : > { %v1795_v40 = vpop.eup %1794  ;;  %v519_v44 = vmul.f32 %v1793_v39, %v1791_v37 }
 0x130   : > { %v518_v42 = vmul.f32 %v1795_v40, %v517_v38  ;;  %v1797_v46 = vpop.eup %1796 }
 0x132   : > { %v520_v45 = vadd.f32 %v519_v44, %v518_v42 }
 0x134   : > { %1798 = vtanh.f32 %v520_v45  ;;  %523 = vst [vmem:[#allocation3] sm:$0x3] %v520_v45 }
 0x13e   : > { %v1799_v47 = vpop.eup %1798 }
 0x13f   : > { %v522_v48 = vmul.f32 %v1799_v47, %v1797_v46 }
 0x141   : > { %524 = vst [vmem:[#allocation2] sm:$0x3] %v522_v48  ;;  %525 = vst [vmem:[%s2012_s21] sm:$0x3] %v522_v48 }
 0x148   : > { %v528_v49 = vld [vmem:[#allocation2] sm:$0x3] }
 0x149   : > { %v529_v50 = vpack.c.bf16 %v528_v49, %v528_v49 }
 0x14b   : > { %563 = vmatmul.mubr.bf16.vlgmr.msra.gmra.mrb[4].mxu0 %v529_v50  ;;  %604 = vmatmul.mubr.bf16.vlgmr.msra.gmra.mrb[4].mxu1 %v529_v50 }
 0x14c   : > { %676 = vmatpush1.bf16.msra.mxu0 %v2030_v4  ;;  %717 = vmatpush1.bf16.msra.mxu1 %v2035_v5 }
 0x14d   : > { %677 = vmatprep.subr.bf16.mxu0 %v2041_v6  ;;  %718 = vmatprep.subr.bf16.mxu1 %v2048_v7 }
 0x14e   : > { %707 = vmatprep.mubr.bf16.mxu0 %v1969_v3  ;;  %748 = vmatprep.mubr.bf16.mxu1 %v1969_v3 }
 0x150   : > { %678 = vmatpush1.bf16.msra.mxu0 %v2053_v8  ;;  %719 = vmatpush1.bf16.msra.mxu1 %v2059_v9 }
 0x151   : > { %679 = vmatprep.subr.bf16.mxu0 %v2065_v10  ;;  %720 = vmatprep.subr.bf16.mxu1 %v2070_v11 }
 0x154   : > { %680 = vmatpush1.bf16.msra.mxu0 %v2075_v12  ;;  %721 = vmatpush1.bf16.msra.mxu1 %v2080_v13 }
 0x155   : > { %681 = vmatprep.subr.bf16.mxu0 %v2087_v14  ;;  %722 = vmatprep.subr.bf16.mxu1 %v2094_v15 }
 0x158   : > { %682 = vmatpush1.bf16.msra.mxu0 %v2099_v16  ;;  %723 = vmatpush1.bf16.msra.mxu1 %v2106_v17 }
 0x159   : > { %683 = vmatprep.subr.bf16.mxu0 %v2111_v18  ;;  %724 = vmatprep.subr.bf16.mxu1 %v2118_v19 }
 0x15c   : > { %684 = vmatpush1.bf16.msra.mxu0 %v2123_v20  ;;  %725 = vmatpush1.bf16.msra.mxu1 %v2128_v21 }
 0x15d   : > { %685 = vmatprep.subr.bf16.mxu0 %v2135_v22  ;;  %726 = vmatprep.subr.bf16.mxu1 %v2142_v23 }
 0x160   : > { %686 = vmatpush1.bf16.msra.mxu0 %v2149_v24  ;;  %727 = vmatpush1.bf16.msra.mxu1 %v2154_v25 }
 0x161   : > { %687 = vmatprep.subr.bf16.mxu0 %v2161_v26  ;;  %728 = vmatprep.subr.bf16.mxu1 %v2166_v27 }
 0x164   : > { %688 = vmatpush1.bf16.msra.mxu0 %v2173_v28  ;;  %729 = vmatpush1.bf16.msra.mxu1 %v2178_v29 }
 0x165   : > { %689 = vmatprep.subr.bf16.mxu0 %v2185_v30  ;;  %730 = vmatprep.subr.bf16.mxu1 %v2190_v31 }
 0x168   : > { %690 = vmatpush1.bf16.msra.mxu0 %v2197_v32  ;;  %731 = vmatpush1.bf16.msra.mxu1 %v2202_v33 }
 0x169   : > { %820 = vmatprep.subr.bf16.mxu0 %v2017_v1  ;;  %861 = vmatprep.subr.bf16.mxu1 %v2022_v2 }
 0x21e   : > { %v564_v51 = vpop.f32.mrb[4].mxu0  ;;  %v605_v52 = vpop.f32.mrb[4].mxu1 }
 0x21f   : > { %v566_v53 = vpop.f32.mrb[5].mxu0  ;;  %v607_v54 = vpop.f32.mrb[5].mxu1 }
 0x220   : > { %v616_v55 = vcombine.low %v564_v51, %v566_v53  ;;  %v617_v56 = vcombine.low %v605_v52, %v607_v54  ;;  %v568_v57 = vpop.f32.mrb[6].mxu0  ;;  %v609_v58 = vpop.f32.mrb[6].mxu1  ;;  %v661_v51 = vld [vmem:[#allocation3] sm:$0x3] }
 0x221   : > { %v569_v59 = vpop.f32.mrb[7].mxu0  ;;  %v610_v60 = vpop.f32.mrb[7].mxu1 }
 0x222   : > { %v624_v61 = vrot.slane %v616_v55, %v2244_v43  ;;  %v631_v62 = vrot.slane %v617_v56, %v2244_v43 }
 0x224   : > { %v632_v0 = vcombine.low %v624_v61, %v631_v62 }
 0x226   : > { %v634_v34 = vadd.f32 %v1671_v63, %v632_v0 }
 0x228   : > { %v1672_v35 = vmul.f32 -1.442695, %v634_v34  ;;  %v642_v36 = vrot.slane %v634_v34, 2  ;;  %v653_v38 = vrot.slane %v634_v34, 6  ;;  %v650_v41 = vrot.slane %v634_v34, 4 }
 0x22a   : > { %1800 = vpow2.f32 %v1672_v35  ;;  %v1673_v37 = vmul.f32 -1.442695, %v642_v36  ;;  %v1674_v39 = vmul.f32 -1.442695, %v653_v38 }
 0x22c   : > { %1802 = vpow2.f32 %v1673_v37 }
 0x22d   : > { %1804 = vpow2.f32 %v1674_v39 }
 0x234   : > { %v1801_v40 = vpop.eup %1800 }
 0x235   : > { %v638_v42 = vadd.f32 1.0, %v1801_v40 }
 0x236   : > { %v1803_v44 = vpop.eup %1802 }
 0x237   : > { %1806 = vrcp.f32 %v638_v42  ;;  %v647_v45 = vadd.f32 1.0, %v1803_v44  ;;  %v1805_v46 = vpop.eup %1804 }
 0x238   : > { %1808 = vtanh.f32 %v650_v41  ;;  %v658_v50 = vadd.f32 1.0, %v1805_v46  ;;  %v1676_v41 = vld [vmem:[%s2007_s18 + $0x10] sm:$0xff] }
 0x239   : > { %1810 = vrcp.f32 %v647_v45 }
 0x23a   : > { %1812 = vrcp.f32 %v658_v50 }
 0x241   : > { %v1807_v47 = vpop.eup %1806 }
 0x242   : > { %v1809_v48 = vpop.eup %1808 }
 0x243   : > { %v1811_v49 = vpop.eup %1810  ;;  %v663_v53 = vmul.f32 %v1809_v48, %v1807_v47 }
 0x244   : > { %v662_v52 = vmul.f32 %v1811_v49, %v661_v51  ;;  %v1813_v55 = vpop.eup %1812 }
 0x246   : > { %v664_v54 = vadd.f32 %v663_v53, %v662_v52 }
 0x248   : > { %1814 = vtanh.f32 %v664_v54  ;;  %667 = vst [vmem:[#allocation3] sm:$0x3] %v664_v54 }
 0x252   : > { %v1815_v56 = vpop.eup %1814 }
 0x253   : > { %v666_v57 = vmul.f32 %v1815_v56, %v1813_v55 }
 0x255   : > { %668 = vst [vmem:[#allocation2] sm:$0x3] %v666_v57  ;;  %1675 = vst [vmem:[%s2012_s21 + $0x2] sm:$0x3] %v666_v57 }
 0x25c   : > { %v673_v58 = vld [vmem:[#allocation2] sm:$0x3] }
 0x25d   : > { %v674_v59 = vpack.c.bf16 %v673_v58, %v673_v58 }
 0x25f   : > { %708 = vmatmul.mubr.bf16.vlgmr.msra.gmra.mrb[8].mxu0 %v674_v59  ;;  %749 = vmatmul.mubr.bf16.vlgmr.msra.gmra.mrb[8].mxu1 %v674_v59 }
 0x260   : > { %821 = vmatpush1.bf16.msra.mxu0 %v2030_v4  ;;  %862 = vmatpush1.bf16.msra.mxu1 %v2035_v5 }
 0x261   : > { %822 = vmatprep.subr.bf16.mxu0 %v2041_v6  ;;  %863 = vmatprep.subr.bf16.mxu1 %v2048_v7 }
 0x262   : > { %852 = vmatprep.mubr.bf16.mxu0 %v1969_v3  ;;  %893 = vmatprep.mubr.bf16.mxu1 %v1969_v3 }
 0x264   : > { %823 = vmatpush1.bf16.msra.mxu0 %v2053_v8  ;;  %864 = vmatpush1.bf16.msra.mxu1 %v2059_v9 }
 0x265   : > { %824 = vmatprep.subr.bf16.mxu0 %v2065_v10  ;;  %865 = vmatprep.subr.bf16.mxu1 %v2070_v11 }
 0x268   : > { %825 = vmatpush1.bf16.msra.mxu0 %v2075_v12  ;;  %866 = vmatpush1.bf16.msra.mxu1 %v2080_v13 }
 0x269   : > { %826 = vmatprep.subr.bf16.mxu0 %v2087_v14  ;;  %867 = vmatprep.subr.bf16.mxu1 %v2094_v15 }
 0x26c   : > { %827 = vmatpush1.bf16.msra.mxu0 %v2099_v16  ;;  %868 = vmatpush1.bf16.msra.mxu1 %v2106_v17 }
 0x26d   : > { %828 = vmatprep.subr.bf16.mxu0 %v2111_v18  ;;  %869 = vmatprep.subr.bf16.mxu1 %v2118_v19 }
 0x270   : > { %829 = vmatpush1.bf16.msra.mxu0 %v2123_v20  ;;  %870 = vmatpush1.bf16.msra.mxu1 %v2128_v21 }
 0x271   : > { %830 = vmatprep.subr.bf16.mxu0 %v2135_v22  ;;  %871 = vmatprep.subr.bf16.mxu1 %v2142_v23 }
 0x274   : > { %831 = vmatpush1.bf16.msra.mxu0 %v2149_v24  ;;  %872 = vmatpush1.bf16.msra.mxu1 %v2154_v25 }
 0x275   : > { %832 = vmatprep.subr.bf16.mxu0 %v2161_v26  ;;  %873 = vmatprep.subr.bf16.mxu1 %v2166_v27 }
 0x278   : > { %833 = vmatpush1.bf16.msra.mxu0 %v2173_v28  ;;  %874 = vmatpush1.bf16.msra.mxu1 %v2178_v29 }
 0x279   : > { %834 = vmatprep.subr.bf16.mxu0 %v2185_v30  ;;  %875 = vmatprep.subr.bf16.mxu1 %v2190_v31 }
 0x27c   : > { %835 = vmatpush1.bf16.msra.mxu0 %v2197_v32  ;;  %876 = vmatpush1.bf16.msra.mxu1 %v2202_v33 }
 0x27d   : > { %965 = vmatprep.subr.bf16.mxu0 %v2017_v1  ;;  %1006 = vmatprep.subr.bf16.mxu1 %v2022_v2 }
 0x332   : > { %v709_v60 = vpop.f32.mrb[8].mxu0  ;;  %v750_v61 = vpop.f32.mrb[8].mxu1 }
 0x333   : > { %v711_v62 = vpop.f32.mrb[9].mxu0  ;;  %v752_v63 = vpop.f32.mrb[9].mxu1 }
 0x334   : > { %v761_v0 = vcombine.low %v709_v60, %v711_v62  ;;  %v762_v34 = vcombine.low %v750_v61, %v752_v63  ;;  %v713_v35 = vpop.f32.mrb[10].mxu0  ;;  %v754_v36 = vpop.f32.mrb[10].mxu1  ;;  %v806_v60 = vld [vmem:[#allocation3] sm:$0x3] }
 0x335   : > { %v714_v37 = vpop.f32.mrb[11].mxu0  ;;  %v755_v38 = vpop.f32.mrb[11].mxu1 }
 0x336   : > { %v769_v39 = vrot.slane %v761_v0, %v2244_v43  ;;  %v776_v40 = vrot.slane %v762_v34, %v2244_v43 }
 0x338   : > { %v777_v42 = vcombine.low %v769_v39, %v776_v40 }
 0x33a   : > { %v779_v44 = vadd.f32 %v1676_v41, %v777_v42 }
 0x33c   : > { %v1677_v45 = vmul.f32 -1.442695, %v779_v44  ;;  %v787_v46 = vrot.slane %v779_v44, 2  ;;  %v798_v48 = vrot.slane %v779_v44, 6  ;;  %v795_v51 = vrot.slane %v779_v44, 4 }
 0x33e   : > { %1816 = vpow2.f32 %v1677_v45  ;;  %v1678_v47 = vmul.f32 -1.442695, %v787_v46  ;;  %v1679_v49 = vmul.f32 -1.442695, %v798_v48 }
 0x340   : > { %1818 = vpow2.f32 %v1678_v47 }
 0x341   : > { %1820 = vpow2.f32 %v1679_v49 }
 0x348   : > { %v1817_v50 = vpop.eup %1816 }
 0x349   : > { %v783_v52 = vadd.f32 1.0, %v1817_v50 }
 0x34a   : > { %v1819_v53 = vpop.eup %1818 }
 0x34b   : > { %1822 = vrcp.f32 %v783_v52  ;;  %v792_v54 = vadd.f32 1.0, %v1819_v53  ;;  %v1821_v55 = vpop.eup %1820 }
 0x34c   : > { %1824 = vtanh.f32 %v795_v51  ;;  %v803_v59 = vadd.f32 1.0, %v1821_v55  ;;  %v1681_v51 = vld [vmem:[%s2007_s18 + $0x18] sm:$0xff] }
 0x34d   : > { %1826 = vrcp.f32 %v792_v54 }
 0x34e   : > { %1828 = vrcp.f32 %v803_v59 }
 0x355   : > { %v1823_v56 = vpop.eup %1822 }
 0x356   : > { %v1825_v57 = vpop.eup %1824 }
 0x357   : > { %v1827_v58 = vpop.eup %1826  ;;  %v808_v62 = vmul.f32 %v1825_v57, %v1823_v56 }
 0x358   : > { %v807_v61 = vmul.f32 %v1827_v58, %v806_v60  ;;  %v1829_v0 = vpop.eup %1828 }
 0x35a   : > { %v809_v63 = vadd.f32 %v808_v62, %v807_v61 }
 0x35c   : > { %1830 = vtanh.f32 %v809_v63  ;;  %812 = vst [vmem:[#allocation3] sm:$0x3] %v809_v63 }
 0x366   : > { %v1831_v34 = vpop.eup %1830 }
 0x367   : > { %v811_v35 = vmul.f32 %v1831_v34, %v1829_v0 }
 0x369   : > { %813 = vst [vmem:[#allocation2] sm:$0x3] %v811_v35  ;;  %1680 = vst [vmem:[%s2012_s21 + $0x4] sm:$0x3] %v811_v35 }
 0x370   : > { %v818_v36 = vld [vmem:[#allocation2] sm:$0x3] }
 0x371   : > { %v819_v37 = vpack.c.bf16 %v818_v36, %v818_v36 }
 0x373   : > { %853 = vmatmul.mubr.bf16.vlgmr.msra.gmra.mrb[12].mxu0 %v819_v37  ;;  %894 = vmatmul.mubr.bf16.vlgmr.msra.gmra.mrb[12].mxu1 %v819_v37 }
 0x374   : > { %966 = vmatpush1.bf16.msra.mxu0 %v2030_v4  ;;  %1007 = vmatpush1.bf16.msra.mxu1 %v2035_v5 }
 0x375   : > { %967 = vmatprep.subr.bf16.mxu0 %v2041_v6  ;;  %1008 = vmatprep.subr.bf16.mxu1 %v2048_v7 }
 0x376   : > { %997 = vmatprep.mubr.bf16.mxu0 %v1969_v3  ;;  %1038 = vmatprep.mubr.bf16.mxu1 %v1969_v3 }
 0x378   : > { %968 = vmatpush1.bf16.msra.mxu0 %v2053_v8  ;;  %1009 = vmatpush1.bf16.msra.mxu1 %v2059_v9 }
 0x379   : > { %969 = vmatprep.subr.bf16.mxu0 %v2065_v10  ;;  %1010 = vmatprep.subr.bf16.mxu1 %v2070_v11 }
 0x37c   : > { %970 = vmatpush1.bf16.msra.mxu0 %v2075_v12  ;;  %1011 = vmatpush1.bf16.msra.mxu1 %v2080_v13 }
 0x37d   : > { %971 = vmatprep.subr.bf16.mxu0 %v2087_v14  ;;  %1012 = vmatprep.subr.bf16.mxu1 %v2094_v15 }
 0x380   : > { %972 = vmatpush1.bf16.msra.mxu0 %v2099_v16  ;;  %1013 = vmatpush1.bf16.msra.mxu1 %v2106_v17 }
 0x381   : > { %973 = vmatprep.subr.bf16.mxu0 %v2111_v18  ;;  %1014 = vmatprep.subr.bf16.mxu1 %v2118_v19 }
 0x384   : > { %974 = vmatpush1.bf16.msra.mxu0 %v2123_v20  ;;  %1015 = vmatpush1.bf16.msra.mxu1 %v2128_v21 }
 0x385   : > { %975 = vmatprep.subr.bf16.mxu0 %v2135_v22  ;;  %1016 = vmatprep.subr.bf16.mxu1 %v2142_v23 }
 0x388   : > { %976 = vmatpush1.bf16.msra.mxu0 %v2149_v24  ;;  %1017 = vmatpush1.bf16.msra.mxu1 %v2154_v25 }
 0x389   : > { %977 = vmatprep.subr.bf16.mxu0 %v2161_v26  ;;  %1018 = vmatprep.subr.bf16.mxu1 %v2166_v27 }
 0x38c   : > { %978 = vmatpush1.bf16.msra.mxu0 %v2173_v28  ;;  %1019 = vmatpush1.bf16.msra.mxu1 %v2178_v29 }
 0x38d   : > { %979 = vmatprep.subr.bf16.mxu0 %v2185_v30  ;;  %1020 = vmatprep.subr.bf16.mxu1 %v2190_v31 }
 0x390   : > { %980 = vmatpush1.bf16.msra.mxu0 %v2197_v32  ;;  %1021 = vmatpush1.bf16.msra.mxu1 %v2202_v33 }
 0x391   : > { %1110 = vmatprep.subr.bf16.mxu0 %v2017_v1  ;;  %1151 = vmatprep.subr.bf16.mxu1 %v2022_v2 }
 0x446   : > { %v854_v38 = vpop.f32.mrb[12].mxu0  ;;  %v895_v39 = vpop.f32.mrb[12].mxu1 }
 0x447   : > { %v856_v40 = vpop.f32.mrb[13].mxu0  ;;  %v897_v41 = vpop.f32.mrb[13].mxu1 }
 0x448   : > { %v906_v42 = vcombine.low %v854_v38, %v856_v40  ;;  %v907_v44 = vcombine.low %v895_v39, %v897_v41  ;;  %v858_v45 = vpop.f32.mrb[14].mxu0  ;;  %v899_v46 = vpop.f32.mrb[14].mxu1  ;;  %v951_v38 = vld [vmem:[#allocation3] sm:$0x3] }
 0x449   : > { %v859_v47 = vpop.f32.mrb[15].mxu0  ;;  %v900_v48 = vpop.f32.mrb[15].mxu1 }
 0x44a   : > { %v914_v49 = vrot.slane %v906_v42, %v2244_v43  ;;  %v921_v50 = vrot.slane %v907_v44, %v2244_v43  ;;  %v1686_v48 = vld [vmem:[%s2007_s18 + $0x20] sm:$0xff] }
 0x44c   : > { %v922_v52 = vcombine.low %v914_v49, %v921_v50 }
 0x44e   : > { %v924_v53 = vadd.f32 %v1681_v51, %v922_v52 }
 0x450   : > { %v1682_v54 = vmul.f32 -1.442695, %v924_v53  ;;  %v932_v55 = vrot.slane %v924_v53, 2  ;;  %v943_v57 = vrot.slane %v924_v53, 6  ;;  %v940_v60 = vrot.slane %v924_v53, 4 }
 0x452   : > { %1832 = vpow2.f32 %v1682_v54  ;;  %v1683_v56 = vmul.f32 -1.442695, %v932_v55  ;;  %v1684_v58 = vmul.f32 -1.442695, %v943_v57 }
 0x454   : > { %1834 = vpow2.f32 %v1683_v56 }
 0x455   : > { %1836 = vpow2.f32 %v1684_v58 }
 0x45c   : > { %v1833_v59 = vpop.eup %1832 }
 0x45d   : > { %v928_v61 = vadd.f32 1.0, %v1833_v59 }
 0x45e   : > { %v1835_v62 = vpop.eup %1834 }
 0x45f   : > { %1838 = vrcp.f32 %v928_v61  ;;  %v937_v63 = vadd.f32 1.0, %v1835_v62  ;;  %v1837_v0 = vpop.eup %1836 }
 0x460   : > { %1840 = vtanh.f32 %v940_v60  ;;  %v948_v37 = vadd.f32 1.0, %v1837_v0 }
 0x461   : > { %1842 = vrcp.f32 %v937_v63 }
 0x462   : > { %1844 = vrcp.f32 %v948_v37 }
 0x469   : > { %v1839_v34 = vpop.eup %1838 }
 0x46a   : > { %v1841_v35 = vpop.eup %1840 }
 0x46b   : > { %v1843_v36 = vpop.eup %1842  ;;  %v953_v40 = vmul.f32 %v1841_v35, %v1839_v34 }
 0x46c   : > { %v952_v39 = vmul.f32 %v1843_v36, %v951_v38  ;;  %v1845_v42 = vpop.eup %1844 }
 0x46e   : > { %v954_v41 = vadd.f32 %v953_v40, %v952_v39 }
 0x470   : > { %1846 = vtanh.f32 %v954_v41  ;;  %957 = vst [vmem:[#allocation3] sm:$0x3] %v954_v41 }
 0x477   : > { %v1096_v0 = vld [vmem:[#allocation3] sm:$0x3] }
 0x47a   : > { %v1847_v44 = vpop.eup %1846 }
 0x47b   : > { %v956_v45 = vmul.f32 %v1847_v44, %v1845_v42  ;;  %v2405_v42 = vld [vmem:[%s2590_s1] ss:$16 sps:$4 sm:$0xff]   ;;  %v2411_v44 = vld [vmem:[%s2590_s1 + $0x8] ss:$16 sps:$4 sm:$0xff]  }
 0x47d   : > { %1685 = vst [vmem:[%s2012_s21 + $0x6] sm:$0x3] %v956_v45  ;;  %958 = vst [vmem:[#allocation2] sm:$0x3] %v956_v45  ;;  %v2417_v45 = vld [vmem:[%s2590_s1 + $0x24] ss:$16 sps:$4 sm:$0xff]  }
 0x484   : > { %v963_v46 = vld [vmem:[#allocation2] sm:$0x3] }
 0x485   : > { %v964_v47 = vpack.c.bf16 %v963_v46, %v963_v46  ;;  %v2423_v46 = vld [vmem:[%s2590_s1 + $0x2c] ss:$16 sps:$4 sm:$0xff]  }
 0x487   : > { %998 = vmatmul.mubr.bf16.vlgmr.msra.gmra.mrb[16].mxu0 %v964_v47  ;;  %1039 = vmatmul.mubr.bf16.vlgmr.msra.gmra.mrb[16].mxu1 %v964_v47  ;;  %v2431_v47 = vld [vmem:[%s2590_s1 + $0x20] ss:$16 sps:$4 sm:$0xff]  }
 0x488   : > { %1111 = vmatpush1.bf16.msra.mxu0 %v2030_v4  ;;  %1152 = vmatpush1.bf16.msra.mxu1 %v2035_v5 }
 0x489   : > { %1112 = vmatprep.subr.bf16.mxu0 %v2041_v6  ;;  %1153 = vmatprep.subr.bf16.mxu1 %v2048_v7 }
 0x48a   : > { %1142 = vmatprep.mubr.bf16.mxu0 %v1969_v3  ;;  %1183 = vmatprep.mubr.bf16.mxu1 %v1969_v3 }
 0x48c   : > { %1113 = vmatpush1.bf16.msra.mxu0 %v2053_v8  ;;  %1154 = vmatpush1.bf16.msra.mxu1 %v2059_v9 }
 0x48d   : > { %1114 = vmatprep.subr.bf16.mxu0 %v2065_v10  ;;  %1155 = vmatprep.subr.bf16.mxu1 %v2070_v11 }
 0x490   : > { %1115 = vmatpush1.bf16.msra.mxu0 %v2075_v12  ;;  %1156 = vmatpush1.bf16.msra.mxu1 %v2080_v13 }
 0x491   : > { %1116 = vmatprep.subr.bf16.mxu0 %v2087_v14  ;;  %1157 = vmatprep.subr.bf16.mxu1 %v2094_v15 }
 0x494   : > { %1117 = vmatpush1.bf16.msra.mxu0 %v2099_v16  ;;  %1158 = vmatpush1.bf16.msra.mxu1 %v2106_v17 }
 0x495   : > { %1118 = vmatprep.subr.bf16.mxu0 %v2111_v18  ;;  %1159 = vmatprep.subr.bf16.mxu1 %v2118_v19 }
 0x498   : > { %1119 = vmatpush1.bf16.msra.mxu0 %v2123_v20  ;;  %1160 = vmatpush1.bf16.msra.mxu1 %v2128_v21 }
 0x499   : > { %1120 = vmatprep.subr.bf16.mxu0 %v2135_v22  ;;  %1161 = vmatprep.subr.bf16.mxu1 %v2142_v23 }
 0x49c   : > { %1121 = vmatpush1.bf16.msra.mxu0 %v2149_v24  ;;  %1162 = vmatpush1.bf16.msra.mxu1 %v2154_v25 }
 0x49d   : > { %1122 = vmatprep.subr.bf16.mxu0 %v2161_v26  ;;  %1163 = vmatprep.subr.bf16.mxu1 %v2166_v27 }
 0x4a0   : > { %1123 = vmatpush1.bf16.msra.mxu0 %v2173_v28  ;;  %1164 = vmatpush1.bf16.msra.mxu1 %v2178_v29 }
 0x4a1   : > { %1124 = vmatprep.subr.bf16.mxu0 %v2185_v30  ;;  %1165 = vmatprep.subr.bf16.mxu1 %v2190_v31 }
 0x4a4   : > { %1125 = vmatpush1.bf16.msra.mxu0 %v2197_v32  ;;  %1166 = vmatpush1.bf16.msra.mxu1 %v2202_v33 }
 0x4a5   : > { %1255 = vmatprep.subr.bf16.mxu0 %v2017_v1  ;;  %1296 = vmatprep.subr.bf16.mxu1 %v2022_v2 }
 0x55a   : > { %v999_v4 = vpop.f32.mrb[16].mxu0  ;;  %v1040_v5 = vpop.f32.mrb[16].mxu1 }
 0x55b   : > { %v1001_v6 = vpop.f32.mrb[17].mxu0  ;;  %v1042_v7 = vpop.f32.mrb[17].mxu1 }
 0x55c   : > { %v1051_v8 = vcombine.low %v999_v4, %v1001_v6  ;;  %v1052_v9 = vcombine.low %v1040_v5, %v1042_v7  ;;  %v1003_v10 = vpop.f32.mrb[18].mxu0  ;;  %v1044_v11 = vpop.f32.mrb[18].mxu1  ;;  %v2437_v4 = vld [vmem:[%s2590_s1 + $0x28] ss:$16 sps:$4 sm:$0xff]   ;;  %v2443_v5 = vld [vmem:[%s2590_s1 + $0x44] ss:$16 sps:$4 sm:$0xff]  }
 0x55d   : > { %v1004_v12 = vpop.f32.mrb[19].mxu0  ;;  %v1045_v13 = vpop.f32.mrb[19].mxu1  ;;  %v2449_v6 = vld [vmem:[%s2590_s1 + $0x4c] ss:$16 sps:$4 sm:$0xff]   ;;  %v2455_v7 = vld [vmem:[%s2590_s1 + $0x40] ss:$16 sps:$4 sm:$0xff]  }
 0x55e   : > { %v1059_v14 = vrot.slane %v1051_v8, %v2244_v43  ;;  %v1066_v15 = vrot.slane %v1052_v9, %v2244_v43  ;;  %v2461_v8 = vld [vmem:[%s2590_s1 + $0x48] ss:$16 sps:$4 sm:$0xff]   ;;  %v2467_v9 = vld [vmem:[%s2590_s1 + $0x64] ss:$16 sps:$4 sm:$0xff]   ;;  %v2473_v10 = vld [vmem:[%s2590_s1 + $0x6c] ss:$16 sps:$4 sm:$0xff]  }
 0x560   : > { %v1067_v49 = vcombine.low %v1059_v14, %v1066_v15 }
 0x562   : > { %v1069_v50 = vadd.f32 %v1686_v48, %v1067_v49 }
 0x564   : > { %v1687_v1 = vmul.f32 -1.442695, %v1069_v50  ;;  %v1077_v51 = vrot.slane %v1069_v50, 2  ;;  %v1088_v52 = vrot.slane %v1069_v50, 6  ;;  %v1085_v55 = vrot.slane %v1069_v50, 4 }
 0x566   : > { %1848 = vpow2.f32 %v1687_v1  ;;  %v1688_v2 = vmul.f32 -1.442695, %v1077_v51  ;;  %v1689_v53 = vmul.f32 -1.442695, %v1088_v52 }
 0x568   : > { %1850 = vpow2.f32 %v1688_v2 }
 0x569   : > { %1852 = vpow2.f32 %v1689_v53 }
 0x570   : > { %v1849_v54 = vpop.eup %1848 }
 0x571   : > { %v1073_v56 = vadd.f32 1.0, %v1849_v54 }
 0x572   : > { %v1851_v57 = vpop.eup %1850 }
 0x573   : > { %1854 = vrcp.f32 %v1073_v56  ;;  %v1082_v58 = vadd.f32 1.0, %v1851_v57  ;;  %v1853_v59 = vpop.eup %1852 }
 0x574   : > { %1856 = vtanh.f32 %v1085_v55  ;;  %v1093_v63 = vadd.f32 1.0, %v1853_v59 }
 0x575   : > { %1858 = vrcp.f32 %v1082_v58 }
 0x576   : > { %1860 = vrcp.f32 %v1093_v63 }
 0x57d   : > { %v1855_v60 = vpop.eup %1854 }
 0x57e   : > { %v1857_v61 = vpop.eup %1856 }
 0x57f   : > { %v1859_v62 = vpop.eup %1858  ;;  %v1098_v35 = vmul.f32 %v1857_v61, %v1855_v60 }
 0x580   : > { %v1097_v34 = vmul.f32 %v1859_v62, %v1096_v0  ;;  %v1861_v37 = vpop.eup %1860  ;;  %v1927_v0 = vld [vmem:[%s2590_s1 + $0x68] ss:$16 sps:$4 sm:$0xff]  }
 0x582   : > { %v1099_v36 = vadd.f32 %v1098_v35, %v1097_v34  ;;  %v1928_v34 = vld [vmem:[%s2590_s1 + $0x84] ss:$16 sps:$4 sm:$0xff]   ;;  %v1929_v35 = vld [vmem:[%s2590_s1 + $0x8c] ss:$16 sps:$4 sm:$0xff]  }
 0x584   : > { %1862 = vtanh.f32 %v1099_v36  ;;  %1102 = vst [vmem:[#allocation3] sm:$0x3] %v1099_v36  ;;  %v1930_v36 = vld [vmem:[%s2590_s1 + $0x80] ss:$16 sps:$4 sm:$0xff]  }
 0x58b   : > { %v1241_v55 = vld [vmem:[#allocation3] sm:$0x3] }
 0x58e   : > { %v1863_v38 = vpop.eup %1862 }
 0x58f   : > { %v1101_v39 = vmul.f32 %v1863_v38, %v1861_v37  ;;  %v1931_v37 = vld [vmem:[%s2590_s1 + $0x88] ss:$16 sps:$4 sm:$0xff]   ;;  %v1932_v38 = vld [vmem:[%s2590_s1 + $0xa4] ss:$16 sps:$4 sm:$0xff]  }
 0x591   : > { %1690 = vst [vmem:[%s2012_s21 + $0x8] sm:$0x3] %v1101_v39  ;;  %1103 = vst [vmem:[#allocation2] sm:$0x3] %v1101_v39  ;;  %v1933_v39 = vld [vmem:[%s2590_s1 + $0xac] ss:$16 sps:$4 sm:$0xff]  }
 0x598   : > { %v1108_v40 = vld [vmem:[#allocation2] sm:$0x3] }
 0x599   : > { %v1109_v41 = vpack.c.bf16 %v1108_v40, %v1108_v40  ;;  %v1934_v40 = vld [vmem:[%s2590_s1 + $0xa0] ss:$16 sps:$4 sm:$0xff]  }
 0x59b   : > { %1143 = vmatmul.mubr.bf16.vlgmr.msra.gmra.mrb[20].mxu0 %v1109_v41  ;;  %1184 = vmatmul.mubr.bf16.vlgmr.msra.gmra.mrb[20].mxu1 %v1109_v41  ;;  %v1935_v41 = vld [vmem:[%s2590_s1 + $0xa8] ss:$16 sps:$4 sm:$0xff]  }
 0x59c   : > { %1256 = vmatpush1.bf16.msra.mxu0 %v2405_v42  ;;  %1297 = vmatpush1.bf16.msra.mxu1 %v2411_v44 }
 0x59d   : > { %1257 = vmatprep.subr.bf16.mxu0 %v2417_v45  ;;  %1298 = vmatprep.subr.bf16.mxu1 %v2423_v46 }
 0x59e   : > { %1287 = vmatprep.mubr.bf16.mxu0 %v1969_v3  ;;  %1328 = vmatprep.mubr.bf16.mxu1 %v1969_v3 }
 0x5a0   : > { %1258 = vmatpush1.bf16.msra.mxu0 %v2431_v47  ;;  %1299 = vmatpush1.bf16.msra.mxu1 %v2437_v4 }
 0x5a1   : > { %1259 = vmatprep.subr.bf16.mxu0 %v2443_v5  ;;  %1300 = vmatprep.subr.bf16.mxu1 %v2449_v6 }
 0x5a4   : > { %1260 = vmatpush1.bf16.msra.mxu0 %v2455_v7  ;;  %1301 = vmatpush1.bf16.msra.mxu1 %v2461_v8 }
 0x5a5   : > { %1261 = vmatprep.subr.bf16.mxu0 %v2467_v9  ;;  %1302 = vmatprep.subr.bf16.mxu1 %v2473_v10 }
 0x5a8   : > { %1262 = vmatpush1.bf16.msra.mxu0 %v2099_v16  ;;  %1303 = vmatpush1.bf16.msra.mxu1 %v2106_v17  ;;  %v1924_v16 = vld [vmem:[%s2590_s1 + $0x4] ss:$16 sps:$4 sm:$0xff]   ;;  %v1925_v17 = vld [vmem:[%s2590_s1 + $0xc] ss:$16 sps:$4 sm:$0xff]  }
 0x5a9   : > { %1263 = vmatprep.subr.bf16.mxu0 %v2111_v18  ;;  %1304 = vmatprep.subr.bf16.mxu1 %v2118_v19 }
 0x5ac   : > { %1264 = vmatpush1.bf16.msra.mxu0 %v2123_v20  ;;  %1305 = vmatpush1.bf16.msra.mxu1 %v2128_v21 }
 0x5ad   : > { %1265 = vmatprep.subr.bf16.mxu0 %v2135_v22  ;;  %1306 = vmatprep.subr.bf16.mxu1 %v2142_v23 }
 0x5b0   : > { %1266 = vmatpush1.bf16.msra.mxu0 %v2149_v24  ;;  %1307 = vmatpush1.bf16.msra.mxu1 %v2154_v25 }
 0x5b1   : > { %1267 = vmatprep.subr.bf16.mxu0 %v2161_v26  ;;  %1308 = vmatprep.subr.bf16.mxu1 %v2166_v27 }
 0x5b4   : > { %1268 = vmatpush1.bf16.msra.mxu0 %v2173_v28  ;;  %1309 = vmatpush1.bf16.msra.mxu1 %v2178_v29 }
 0x5b5   : > { %1269 = vmatprep.subr.bf16.mxu0 %v2185_v30  ;;  %1310 = vmatprep.subr.bf16.mxu1 %v2190_v31  ;;  %v1691_v30 = vld [vmem:[%s2007_s18 + $0x28] sm:$0xff] }
 0x5b8   : > { %1270 = vmatpush1.bf16.msra.mxu0 %v2197_v32  ;;  %1311 = vmatpush1.bf16.msra.mxu1 %v2202_v33 }
 0x5b9   : > { %1400 = vmatprep.subr.bf16.mxu0 %v1924_v16  ;;  %1441 = vmatprep.subr.bf16.mxu1 %v1925_v17 }
 0x66e   : > { %v1144_v18 = vpop.f32.mrb[20].mxu0  ;;  %v1185_v19 = vpop.f32.mrb[20].mxu1 }
 0x66f   : > { %v1146_v20 = vpop.f32.mrb[21].mxu0  ;;  %v1187_v21 = vpop.f32.mrb[21].mxu1 }
 0x670   : > { %v1196_v22 = vcombine.low %v1144_v18, %v1146_v20  ;;  %v1197_v23 = vcombine.low %v1185_v19, %v1187_v21  ;;  %v1148_v24 = vpop.f32.mrb[22].mxu0  ;;  %v1189_v25 = vpop.f32.mrb[22].mxu1 }
 0x671   : > { %v1149_v26 = vpop.f32.mrb[23].mxu0  ;;  %v1190_v27 = vpop.f32.mrb[23].mxu1  ;;  %v1696_v24 = vld [vmem:[%s2007_s18 + $0x30] sm:$0xff] }
 0x672   : > { %v1204_v28 = vrot.slane %v1196_v22, %v2244_v43  ;;  %v1211_v29 = vrot.slane %v1197_v23, %v2244_v43 }
 0x674   : > { %v1212_v31 = vcombine.low %v1204_v28, %v1211_v29 }
 0x676   : > { %v1214_v32 = vadd.f32 %v1691_v30, %v1212_v31 }
 0x678   : > { %v1692_v33 = vmul.f32 -1.442695, %v1214_v32  ;;  %v1222_v11 = vrot.slane %v1214_v32, 2  ;;  %v1233_v13 = vrot.slane %v1214_v32, 6  ;;  %v1230_v48 = vrot.slane %v1214_v32, 4 }
 0x67a   : > { %1864 = vpow2.f32 %v1692_v33  ;;  %v1693_v12 = vmul.f32 -1.442695, %v1222_v11  ;;  %v1694_v14 = vmul.f32 -1.442695, %v1233_v13 }
 0x67c   : > { %1866 = vpow2.f32 %v1693_v12 }
 0x67d   : > { %1868 = vpow2.f32 %v1694_v14 }
 0x684   : > { %v1865_v15 = vpop.eup %1864 }
 0x685   : > { %v1218_v49 = vadd.f32 1.0, %v1865_v15 }
 0x686   : > { %v1867_v50 = vpop.eup %1866 }
 0x687   : > { %1870 = vrcp.f32 %v1218_v49  ;;  %v1227_v1 = vadd.f32 1.0, %v1867_v50  ;;  %v1869_v51 = vpop.eup %1868 }
 0x688   : > { %1872 = vtanh.f32 %v1230_v48  ;;  %v1238_v54 = vadd.f32 1.0, %v1869_v51 }
 0x689   : > { %1874 = vrcp.f32 %v1227_v1 }
 0x68a   : > { %1876 = vrcp.f32 %v1238_v54 }
 0x691   : > { %v1871_v2 = vpop.eup %1870 }
 0x692   : > { %v1873_v52 = vpop.eup %1872 }
 0x693   : > { %v1875_v53 = vpop.eup %1874  ;;  %v1243_v57 = vmul.f32 %v1873_v52, %v1871_v2 }
 0x694   : > { %v1242_v56 = vmul.f32 %v1875_v53, %v1241_v55  ;;  %v1877_v59 = vpop.eup %1876 }
 0x696   : > { %v1244_v58 = vadd.f32 %v1243_v57, %v1242_v56 }
 0x698   : > { %1878 = vtanh.f32 %v1244_v58  ;;  %1247 = vst [vmem:[#allocation3] sm:$0x3] %v1244_v58 }
 0x69f   : > { %v1386_v1 = vld [vmem:[#allocation3] sm:$0x3] }
 0x6a2   : > { %v1879_v60 = vpop.eup %1878 }
 0x6a3   : > { %v1246_v61 = vmul.f32 %v1879_v60, %v1877_v59 }
 0x6a5   : > { %1695 = vst [vmem:[%s2012_s21 + $0xa] sm:$0x3] %v1246_v61  ;;  %1248 = vst [vmem:[#allocation2] sm:$0x3] %v1246_v61 }
 0x6ac   : > { %v1253_v62 = vld [vmem:[#allocation2] sm:$0x3] }
 0x6ad   : > { %v1254_v63 = vpack.c.bf16 %v1253_v62, %v1253_v62 }
 0x6af   : > { %1288 = vmatmul.mubr.bf16.vlgmr.msra.gmra.mrb[24].mxu0 %v1254_v63  ;;  %1329 = vmatmul.mubr.bf16.vlgmr.msra.gmra.mrb[24].mxu1 %v1254_v63 }
 0x6b0   : > { %1401 = vmatpush1.bf16.msra.mxu0 %v2405_v42  ;;  %1442 = vmatpush1.bf16.msra.mxu1 %v2411_v44  ;;  %v1936_v42 = vld [vmem:[%s2590_s1 + $0xc4] ss:$16 sps:$4 sm:$0xff]   ;;  %v1937_v44 = vld [vmem:[%s2590_s1 + $0xcc] ss:$16 sps:$4 sm:$0xff]  }
 0x6b1   : > { %1402 = vmatprep.subr.bf16.mxu0 %v2417_v45  ;;  %1443 = vmatprep.subr.bf16.mxu1 %v2423_v46  ;;  %v1938_v45 = vld [vmem:[%s2590_s1 + $0xc0] ss:$16 sps:$4 sm:$0xff]   ;;  %v1939_v46 = vld [vmem:[%s2590_s1 + $0xc8] ss:$16 sps:$4 sm:$0xff]  }
 0x6b2   : > { %1432 = vmatprep.mubr.bf16.mxu0 %v1969_v3  ;;  %1473 = vmatprep.mubr.bf16.mxu1 %v1969_v3  ;;  %v1926_v3 = vld [vmem:[%s2590_s1 + $0x60] ss:$16 sps:$4 sm:$0xff]  }
 0x6b4   : > { %1403 = vmatpush1.bf16.msra.mxu0 %v2431_v47  ;;  %1444 = vmatpush1.bf16.msra.mxu1 %v2437_v4  ;;  %v1940_v47 = vld [vmem:[%s2590_s1 + $0xe4] ss:$16 sps:$4 sm:$0xff]   ;;  %v1941_v4 = vld [vmem:[%s2590_s1 + $0xec] ss:$16 sps:$4 sm:$0xff]  }
 0x6b5   : > { %1404 = vmatprep.subr.bf16.mxu0 %v2443_v5  ;;  %1445 = vmatprep.subr.bf16.mxu1 %v2449_v6  ;;  %v1942_v5 = vld [vmem:[%s2590_s1 + $0xe0] ss:$16 sps:$4 sm:$0xff]   ;;  %v1943_v6 = vld [vmem:[%s2590_s1 + $0xe8] ss:$16 sps:$4 sm:$0xff]  }
 0x6b8   : > { %1405 = vmatpush1.bf16.msra.mxu0 %v2455_v7  ;;  %1446 = vmatpush1.bf16.msra.mxu1 %v2461_v8 }
 0x6b9   : > { %1406 = vmatprep.subr.bf16.mxu0 %v2467_v9  ;;  %1447 = vmatprep.subr.bf16.mxu1 %v2473_v10 }
 0x6bc   : > { %1407 = vmatpush1.bf16.msra.mxu0 %v1926_v3  ;;  %1448 = vmatpush1.bf16.msra.mxu1 %v1927_v0 }
 0x6bd   : > { %1408 = vmatprep.subr.bf16.mxu0 %v1928_v34  ;;  %1449 = vmatprep.subr.bf16.mxu1 %v1929_v35 }
 0x6c0   : > { %1409 = vmatpush1.bf16.msra.mxu0 %v1930_v36  ;;  %1450 = vmatpush1.bf16.msra.mxu1 %v1931_v37 }
 0x6c1   : > { %1410 = vmatprep.subr.bf16.mxu0 %v1932_v38  ;;  %1451 = vmatprep.subr.bf16.mxu1 %v1933_v39  ;;  %v1701_v38 = vld [vmem:[%s2007_s18 + $0x38] sm:$0xff] }
 0x6c4   : > { %1411 = vmatpush1.bf16.msra.mxu0 %v1934_v40  ;;  %1452 = vmatpush1.bf16.msra.mxu1 %v1935_v41 }
 0x6c5   : > { %1412 = vmatprep.subr.bf16.mxu0 %v1936_v42  ;;  %1453 = vmatprep.subr.bf16.mxu1 %v1937_v44 }
 0x6c8   : > { %1413 = vmatpush1.bf16.msra.mxu0 %v1938_v45  ;;  %1454 = vmatpush1.bf16.msra.mxu1 %v1939_v46 }
 0x6c9   : > { %1414 = vmatprep.subr.bf16.mxu0 %v1940_v47  ;;  %1455 = vmatprep.subr.bf16.mxu1 %v1941_v4 }
 0x6cc   : > { %1415 = vmatpush1.bf16.msra.mxu0 %v1942_v5  ;;  %1456 = vmatpush1.bf16.msra.mxu1 %v1943_v6 }
 0x782   : > { %v1289_v7 = vpop.f32.mrb[24].mxu0  ;;  %v1330_v8 = vpop.f32.mrb[24].mxu1 }
 0x783   : > { %v1291_v9 = vpop.f32.mrb[25].mxu0  ;;  %v1332_v10 = vpop.f32.mrb[25].mxu1 }
 0x784   : > { %v1341_v16 = vcombine.low %v1289_v7, %v1291_v9  ;;  %v1342_v17 = vcombine.low %v1330_v8, %v1332_v10  ;;  %v1293_v18 = vpop.f32.mrb[26].mxu0  ;;  %v1334_v19 = vpop.f32.mrb[26].mxu1 }
 0x785   : > { %v1294_v20 = vpop.f32.mrb[27].mxu0  ;;  %v1335_v21 = vpop.f32.mrb[27].mxu1 }
 0x786   : > { %v1349_v22 = vrot.slane %v1341_v16, %v2244_v43  ;;  %v1356_v23 = vrot.slane %v1342_v17, %v2244_v43 }
 0x788   : > { %v1357_v25 = vcombine.low %v1349_v22, %v1356_v23 }
 0x78a   : > { %v1359_v26 = vadd.f32 %v1696_v24, %v1357_v25 }
 0x78c   : > { %v1697_v27 = vmul.f32 -1.442695, %v1359_v26  ;;  %v1367_v28 = vrot.slane %v1359_v26, 2  ;;  %v1378_v30 = vrot.slane %v1359_v26, 6  ;;  %v1375_v33 = vrot.slane %v1359_v26, 4 }
 0x78e   : > { %1880 = vpow2.f32 %v1697_v27  ;;  %v1698_v29 = vmul.f32 -1.442695, %v1367_v28  ;;  %v1699_v31 = vmul.f32 -1.442695, %v1378_v30 }
 0x790   : > { %1882 = vpow2.f32 %v1698_v29 }
 0x791   : > { %1884 = vpow2.f32 %v1699_v31 }
 0x798   : > { %v1881_v32 = vpop.eup %1880 }
 0x799   : > { %v1363_v11 = vadd.f32 1.0, %v1881_v32 }
 0x79a   : > { %v1883_v12 = vpop.eup %1882 }
 0x79b   : > { %1886 = vrcp.f32 %v1363_v11  ;;  %v1372_v13 = vadd.f32 1.0, %v1883_v12  ;;  %v1885_v14 = vpop.eup %1884 }
 0x79c   : > { %1888 = vtanh.f32 %v1375_v33  ;;  %v1383_v50 = vadd.f32 1.0, %v1885_v14 }
 0x79d   : > { %1890 = vrcp.f32 %v1372_v13 }
 0x79e   : > { %1892 = vrcp.f32 %v1383_v50 }
 0x7a5   : > { %v1887_v15 = vpop.eup %1886 }
 0x7a6   : > { %v1889_v48 = vpop.eup %1888 }
 0x7a7   : > { %v1891_v49 = vpop.eup %1890  ;;  %v1388_v2 = vmul.f32 %v1889_v48, %v1887_v15 }
 0x7a8   : > { %v1387_v51 = vmul.f32 %v1891_v49, %v1386_v1  ;;  %v1893_v53 = vpop.eup %1892 }
 0x7aa   : > { %v1389_v52 = vadd.f32 %v1388_v2, %v1387_v51 }
 0x7ac   : > { %1894 = vtanh.f32 %v1389_v52  ;;  %1392 = vst [vmem:[#allocation3] sm:$0x3] %v1389_v52 }
 0x7b3   : > { %v1531_v17 = vld [vmem:[#allocation3] sm:$0x3] }
 0x7b6   : > { %v1895_v54 = vpop.eup %1894 }
 0x7b7   : > { %v1391_v55 = vmul.f32 %v1895_v54, %v1893_v53 }
 0x7b9   : > { %1700 = vst [vmem:[%s2012_s21 + $0xc] sm:$0x3] %v1391_v55  ;;  %1393 = vst [vmem:[#allocation2] sm:$0x3] %v1391_v55 }
 0x7c0   : > { %v1398_v56 = vld [vmem:[#allocation2] sm:$0x3] }
 0x7c1   : > { %v1399_v57 = vpack.c.bf16 %v1398_v56, %v1398_v56 }
 0x7c3   : > { %1433 = vmatmul.mubr.bf16.vlgmr.msra.gmra.mrb[28].mxu0 %v1399_v57  ;;  %1474 = vmatmul.mubr.bf16.vlgmr.msra.gmra.mrb[28].mxu1 %v1399_v57 }
 0x896   : > { %v1434_v58 = vpop.f32.mrb[28].mxu0  ;;  %v1475_v59 = vpop.f32.mrb[28].mxu1 }
 0x897   : > { %v1436_v60 = vpop.f32.mrb[29].mxu0  ;;  %v1477_v61 = vpop.f32.mrb[29].mxu1 }
 0x898   : > { %v1486_v62 = vcombine.low %v1434_v58, %v1436_v60  ;;  %v1487_v63 = vcombine.low %v1475_v59, %v1477_v61  ;;  %v1438_v3 = vpop.f32.mrb[30].mxu0  ;;  %v1479_v0 = vpop.f32.mrb[30].mxu1 }
 0x899   : > { %v1439_v34 = vpop.f32.mrb[31].mxu0  ;;  %v1480_v35 = vpop.f32.mrb[31].mxu1 }
 0x89a   : > { %v1494_v36 = vrot.slane %v1486_v62, %v2244_v43  ;;  %v1501_v37 = vrot.slane %v1487_v63, %v2244_v43 }
 0x89c   : > { %v1502_v39 = vcombine.low %v1494_v36, %v1501_v37 }
 0x89e   : > { %v1504_v40 = vadd.f32 %v1701_v38, %v1502_v39 }
 0x8a0   : > { %v1702_v41 = vmul.f32 -1.442695, %v1504_v40  ;;  %v1512_v42 = vrot.slane %v1504_v40, 2  ;;  %v1523_v45 = vrot.slane %v1504_v40, 6  ;;  %v1520_v4 = vrot.slane %v1504_v40, 4 }
 0x8a2   : > { %1896 = vpow2.f32 %v1702_v41  ;;  %v1703_v44 = vmul.f32 -1.442695, %v1512_v42  ;;  %v1704_v46 = vmul.f32 -1.442695, %v1523_v45 }
 0x8a4   : > { %1898 = vpow2.f32 %v1703_v44 }
 0x8a5   : > { %1900 = vpow2.f32 %v1704_v46 }
 0x8ac   : > { %v1897_v47 = vpop.eup %1896 }
 0x8ad   : > { %v1508_v5 = vadd.f32 1.0, %v1897_v47 }
 0x8ae   : > { %v1899_v6 = vpop.eup %1898 }
 0x8af   : > { %1902 = vrcp.f32 %v1508_v5  ;;  %v1517_v7 = vadd.f32 1.0, %v1899_v6  ;;  %v1901_v43 = vpop.eup %1900 }
 0x8b0   : > { %1904 = vtanh.f32 %v1520_v4  ;;  %v1528_v16 = vadd.f32 1.0, %v1901_v43 }
 0x8b1   : > { %1906 = vrcp.f32 %v1517_v7 }
 0x8b2   : > { %1908 = vrcp.f32 %v1528_v16 }
 0x8b9   : > { %v1903_v8 = vpop.eup %1902 }
 0x8ba   : > { %v1905_v9 = vpop.eup %1904 }
 0x8bb   : > { %v1907_v10 = vpop.eup %1906  ;;  %v1533_v19 = vmul.f32 %v1905_v9, %v1903_v8 }
 0x8bc   : > { %v1532_v18 = vmul.f32 %v1907_v10, %v1531_v17  ;;  %v1909_v21 = vpop.eup %1908 }
 0x8be   : > { %v1534_v20 = vadd.f32 %v1533_v19, %v1532_v18 }
 0x8c0   : > { %1910 = vtanh.f32 %v1534_v20  ;;  %1537 = vst [vmem:[#allocation3] sm:$0x3] %v1534_v20 }
 0x8ca   : > { %v1911_v22 = vpop.eup %1910 }
 0x8cb   : > { %v1536_v23 = vmul.f32 %v1911_v22, %v1909_v21 }
 0x8cd   : > { %1538 = vst [vmem:[#allocation2] sm:$0x3] %v1536_v23  ;;  %1705 = vst [vmem:[%s2012_s21 + $0xe] sm:$0x3] %v1536_v23 }
 0x8ce PF: > { %s12_s11 = sadd.s32 1, %s1966_s11   ;;  %s2592_s9 = smov %s1962_s10 }
 0x8cf   : > { %p9_p6 = scmp.ge.s32.totalorder %s12_s11, 4   ;;  %s2593_s10 = smov %s2595_s12 }
 0x8d1   :  { %11 = sbr.rel (!%p9_p6) target bundleno = 2 (0x2), region = 76 }

// kernel: brain_encoder_forward.5
= control target key start
LH: loop header
LB: loop body
LE: loop exit
PB: predicated region body
PF: predicated region fallthrough
CT: control target
= control target key end

     0   :  { %v2743_v2 = vmov 0   ;;  %v46_v4 = vlaneseq  ;;  %v2744_v5 = vmov 1983009808   ;;  %s3505_s0 = inlined_call_operand.vmem [shape: f32[16,2,128], index: 0, kind: input, shape index: {}]   ;;  %s3506_s1 = inlined_call_operand.vmem [shape: bf16[128,384], index: 1, kind: input, shape index: {}]   ;;  %s3507_s2 = inlined_call_operand.vmem [shape: f32[1,384], index: 2, kind: input, shape index: {}]   ;;  %s3508_s3 = inlined_call_operand.vmem [shape: bf16[128,128], index: 3, kind: input, shape index: {}]   ;;  %s3509_s4 = inlined_call_operand.vmem [shape: f32[1,128], index: 4, kind: input, shape index: {}]   ;;  %s3510_s5 = inlined_call_operand.vmem [shape: f32[1,128], index: 5, kind: input, shape index: {}]   ;;  %s3511_s6 = inlined_call_operand.vmem [shape: f32[1,128], index: 6, kind: input, shape index: {}]   ;;  %s3512_s7 = inlined_call_operand.vmem [shape: bf16[128,256], index: 7, kind: input, shape index: {}]   ;;  %s3513_s8 = inlined_call_operand.vmem [shape: f32[1,256], index: 8, kind: input, shape index: {}]   ;;  %s3514_s9 = inlined_call_operand.vmem [shape: bf16[256,128], index: 9, kind: input, shape index: {}]   ;;  %s3515_s10 = inlined_call_operand.vmem [shape: f32[1,128], index: 10, kind: input, shape index: {}]   ;;  %s3516_s11 = inlined_call_operand.vmem [shape: f32[1,128], index: 11, kind: input, shape index: {}]   ;;  %s3517_s12 = inlined_call_operand.vmem [shape: f32[1,128], index: 12, kind: input, shape index: {}]   ;;  %s3518_s13 = inlined_call_operand.hbm [shape: f32[16,2,128], index: 13, kind: output, shape index: {}]  }
   0x1   :  { %v2607_v0 = vld [vmem:[%s3506_s1 + $0x4] ss:$12 sps:$4 sm:$0xff]   ;;  %v2609_v1 = vld [vmem:[%s3506_s1] ss:$12 sps:$4 sm:$0xff]   ;;  %366 = vmatprep.mubr.bf16.mxu0 %v2743_v2  ;;  %v2610_v3 = vld [vmem:[%s3506_s1 + $0x1c] ss:$12 sps:$4 sm:$0xff]   ;;  %v86_v6 = vunpack.c.l.s4 %v2744_v5 }
   0x2   :  { %334 = vmatprep.subr.bf16.mxu0 %v2607_v0  ;;  %v2612_v7 = vld [vmem:[%s3506_s1 + $0x18] ss:$12 sps:$4 sm:$0xff]   ;;  %v2613_v8 = vld [vmem:[%s3506_s1 + $0x34] ss:$12 sps:$4 sm:$0xff]   ;;  %v2838_v10 = vshrl.u32 %v46_v4, 7 }
   0x3   :  { %335 = vmatpush1.bf16.msra.mxu0 %v2609_v1  ;;  %v87_v9 = vunpack.c.0.s8 %v86_v6  ;;  %v2615_v11 = vld [vmem:[%s3506_s1 + $0x30] ss:$12 sps:$4 sm:$0xff]   ;;  %v2616_v12 = vld [vmem:[%s3506_s1 + $0x4c] ss:$12 sps:$4 sm:$0xff]   ;;  %v2618_v13 = vld [vmem:[%s3506_s1 + $0x48] ss:$12 sps:$4 sm:$0xff]  }
   0x4   :  { %336 = vmatprep.subr.bf16.mxu0 %v2610_v3  ;;  %v2619_v14 = vld [vmem:[%s3506_s1 + $0x64] ss:$12 sps:$4 sm:$0xff]   ;;  %v51_v15 = vld [vmem:[%s3505_s0] sm:$0x3]  ;;  %v52_v17 = vld [vmem:[%s3505_s0 + $0x2] sm:$0x3] }
   0x5   :  { %v2856_v16 = vsub.s32 %v87_v9, %v2838_v10  ;;  %v53_v18 = vld [vmem:[%s3505_s0 + $0x4] sm:$0x3]  ;;  %v54_v19 = vld [vmem:[%s3505_s0 + $0x6] sm:$0x3]  ;;  %v55_v20 = vld [vmem:[%s3505_s0 + $0x8] sm:$0x3]  ;;  %v83_v23 = vcombine.low %v51_v15, %v52_v17 }
   0x6   :  { %v56_v21 = vld [vmem:[%s3505_s0 + $0xa] sm:$0x3]  ;;  %v57_v22 = vld [vmem:[%s3505_s0 + $0xc] sm:$0x3]  ;;  %v84_v24 = vcombine.low %v53_v18, %v54_v19  ;;  %v58_v25 = vld [vmem:[%s3505_s0 + $0xe] sm:$0x3] }
   0x7   :  { %337 = vmatpush1.bf16.msra.mxu0 %v2612_v7  ;;  %v100_v26 = vcombine.low %v55_v20, %v56_v21  ;;  %v91_v27 = vrot.slane %v83_v23, %v2856_v16  ;;  %v101_v29 = vcombine.low %v57_v22, %v58_v25  ;;  %v2621_v30 = vld [vmem:[%s3506_s1 + $0x60] ss:$12 sps:$4 sm:$0xff]   ;;  %v2622_v31 = vld [vmem:[%s3506_s1 + $0x7c] ss:$12 sps:$4 sm:$0xff]   ;;  %v2624_v36 = vld [vmem:[%s3506_s1 + $0x78] ss:$12 sps:$4 sm:$0xff]  }
   0x8   :  { %338 = vmatprep.subr.bf16.mxu0 %v2613_v8  ;;  %v98_v28 = vrot.slane %v84_v24, %v2856_v16  ;;  %v2631_v35 = vld [vmem:[%s3506_s1 + $0x8] ss:$12 sps:$4 sm:$0xff]   ;;  %v2632_v37 = vld [vmem:[%s3506_s1 + $0x20] ss:$12 sps:$4 sm:$0xff]   ;;  %v2627_v41 = vld [vmem:[%s3506_s1 + $0x90] ss:$12 sps:$4 sm:$0xff]  }
   0x9   :  { %v108_v32 = vrot.slane %v100_v26, %v2856_v16  ;;  %v115_v34 = vrot.slane %v101_v29, %v2856_v16  ;;  %v2625_v38 = vld [vmem:[%s3506_s1 + $0x94] ss:$12 sps:$4 sm:$0xff]   ;;  %2535 = vmatprep.subr.bf16.mxu1 %v2631_v35  ;;  %v59_v42 = vld [vmem:[%s3505_s0 + $0x10] sm:$0x3]  ;;  %v60_v43 = vld [vmem:[%s3505_s0 + $0x12] sm:$0x3] }
   0xa   :  { %v99_v33 = vcombine.low %v91_v27, %v98_v28  ;;  %2536 = vmatpush3.bf16.msra.mxu1 %v2631_v35  ;;  %v61_v44 = vld [vmem:[%s3505_s0 + $0x14] sm:$0x3]  ;;  %v62_v45 = vld [vmem:[%s3505_s0 + $0x16] sm:$0x3]  ;;  %v63_v46 = vld [vmem:[%s3505_s0 + $0x18] sm:$0x3]  ;;  %v117_v52 = vcombine.low %v59_v42, %v60_v43 }
   0xb   :  { %339 = vmatpush1.bf16.msra.mxu0 %v2615_v11  ;;  %v116_v39 = vcombine.low %v108_v32, %v115_v34  ;;  %2537 = vmatprep.subr.bf16.mxu1 %v2632_v37  ;;  %v64_v47 = vld [vmem:[%s3505_s0 + $0x1a] sm:$0x3]  ;;  %v65_v48 = vld [vmem:[%s3505_s0 + $0x1c] sm:$0x3]  ;;  %v66_v49 = vld [vmem:[%s3505_s0 + $0x1e] sm:$0x3]  ;;  %v118_v53 = vcombine.low %v61_v44, %v62_v45 }
   0xc   :  { %340 = vmatprep.subr.bf16.mxu0 %v2616_v12  ;;  %v2628_v50 = vld [vmem:[%s3506_s1 + $0xac] ss:$12 sps:$4 sm:$0xff]   ;;  %v2630_v51 = vld [vmem:[%s3506_s1 + $0xa8] ss:$12 sps:$4 sm:$0xff]   ;;  %v134_v54 = vcombine.low %v63_v46, %v64_v47  ;;  %v135_v55 = vcombine.low %v65_v48, %v66_v49  ;;  %v125_v56 = vrot.slane %v117_v52, %v2856_v16 }
   0xd   :  { %v155_v40 = vpack.c.bf16 %v116_v39, %v99_v33  ;;  %v132_v57 = vrot.slane %v118_v53, %v2856_v16 }
   0xe   :  { %2538 = vmatpush3.bf16.msra.mxu1 %v2632_v37  ;;  %v142_v58 = vrot.slane %v134_v54, %v2856_v16  ;;  %v149_v59 = vrot.slane %v135_v55, %v2856_v16 }
   0xf   :  { %341 = vmatpush1.bf16.msra.mxu0 %v2618_v13  ;;  %2551 = vmatprep.mubr.bf16.mxu1 %v155_v40  ;;  %v133_v60 = vcombine.low %v125_v56, %v132_v57 }
  0x10   :  { %342 = vmatprep.subr.bf16.mxu0 %v2619_v14  ;;  %v150_v61 = vcombine.low %v142_v58, %v149_v59 }
  0x12   :  { %v156_v62 = vpack.c.bf16 %v150_v61, %v133_v60 }
  0x13   :  { %343 = vmatpush1.bf16.msra.mxu0 %v2621_v30 }
  0x14   :  { %344 = vmatprep.subr.bf16.mxu0 %v2622_v31 }
  0x17   :  { %345 = vmatpush1.bf16.msra.mxu0 %v2624_v36 }
  0x18   :  { %346 = vmatprep.subr.bf16.mxu0 %v2625_v38 }
  0x1b   :  { %347 = vmatpush1.bf16.msra.mxu0 %v2627_v41 }
  0x1c   :  { %348 = vmatprep.subr.bf16.mxu0 %v2628_v50 }
  0x1f   :  { %349 = vmatpush1.bf16.msra.mxu0 %v2630_v51 }
  0x22   :  { %367 = vmatmul.mubr.bf16.vlgmr.msra.gmra.mrb[0].mxu0 %v155_v40 }
  0x23   :  { %376 = vmatprep.mubr.bf16.mxu0 %v2743_v2 }
  0x2a   :  { %377 = vmatmul.mubr.bf16.gmra.mrb[4].mxu0 %v156_v62 }
  0x2b   :  { %18 = vsyncpa [#allocation3], 0  ;;  %v2633_v63 = vld [vmem:[%s3506_s1 + $0x38] ss:$12 sps:$4 sm:$0xff]   ;;  %v2634_v0 = vld [vmem:[%s3506_s1 + $0x50] ss:$12 sps:$4 sm:$0xff]  }
  0x2c   :  { %2539 = vmatprep.subr.bf16.mxu1 %v2633_v63  ;;  %v2635_v1 = vld [vmem:[%s3506_s1 + $0x68] ss:$12 sps:$4 sm:$0xff]   ;;  %v2636_v3 = vld [vmem:[%s3506_s1 + $0x80] ss:$12 sps:$4 sm:$0xff]   ;;  %v2637_v5 = vld [vmem:[%s3506_s1 + $0x98] ss:$12 sps:$4 sm:$0xff]  }
  0x2d   :  { %2540 = vmatpush3.bf16.msra.mxu1 %v2633_v63  ;;  %v2638_v6 = vld [vmem:[%s3506_s1 + $0xb0] ss:$12 sps:$4 sm:$0xff]   ;;  %v2745_v7 = vmov 0.0   ;;  %vm2746_vm0 = vmmov 0   ;;  %v2964_v8 = vsub.s32 0, %v2838_v10  ;;  %v197_v11 = vsub.s32 1, %v2838_v10 }
  0x2e   :  { %2541 = vmatprep.subr.bf16.mxu1 %v2634_v0  ;;  %2555 = vmatprep.subr.bf16.mxu0 %v2745_v7  ;;  %v2969_v9 = vld [vmem:[%s3507_s2] sm:$0x7]  ;;  %vm781_vm1 = vcmask 1041409   ;;  %vm784_vm2 = vcmask 1042434   ;;  %vm787_vm3 = vcmask 1043459   ;;  %vm790_vm4 = vcmask 1044484  }
  0x2f   :  { %2557 = vmatprep.mubr.msk.bf16.mxu0 %vm2746_vm0, %v2745_v7  ;;  %v2974_v12 = vrot.slane %v2969_v9, %v2964_v8  ;;  %v2979_v13 = vrot.slane %v2969_v9, %v197_v11  ;;  %vm793_vm5 = vcmask 1045509   ;;  %vm796_vm6 = vcmask 1046534  }
  0x30   :  { %vm799_vm7 = vcmask 1047559   ;;  %vm922_vm8 = vcmask 130048   ;;  %vm1548_vm9 = vcmask 1040384  }
  0x31   :  { %2542 = vmatpush3.bf16.msra.mxu1 %v2634_v0 }
  0x32   :  { %2543 = vmatprep.subr.bf16.mxu1 %v2635_v1 }
  0x35   :  { %2544 = vmatpush3.bf16.msra.mxu1 %v2635_v1 }
  0x36   :  { %2545 = vmatprep.subr.bf16.mxu1 %v2636_v3 }
  0x39   :  { %2546 = vmatpush3.bf16.msra.mxu1 %v2636_v3 }
  0x3a   :  { %2547 = vmatprep.subr.bf16.mxu1 %v2637_v5 }
  0x3d   :  { %2548 = vmatpush3.bf16.msra.mxu1 %v2637_v5 }
  0x3e   :  { %2549 = vmatprep.subr.bf16.mxu1 %v2638_v6 }
  0x41   :  { %2550 = vmatpush3.bf16.msra.mxu1 %v2638_v6 }
  0x42   :  { %2567 = vmatprep.subr.bf16.mxu1 %v2745_v7 }
  0x44   :  { %2552 = vmatmul.mubr.bf16.vlgmr.msra.gmra.mrb[0].mxu1 %v156_v62 }
  0x45   :  { %2569 = vmatprep.mubr.msk.bf16.mxu1 %vm2746_vm0, %v2745_v7 }
  0xf5   :  { %v368_v14 = vpop.f32.mrb[0].mxu0 }
  0xf6   :  { %v369_v15 = vadd.f32 %v368_v14, %v2974_v12  ;;  %v370_v17 = vpop.f32.mrb[1].mxu0 }
  0xf7   :  { %v371_v18 = vadd.f32 %v370_v17, %v2979_v13  ;;  %v372_v19 = vpop.f32.mrb[2].mxu0 }
  0xf8   :  { %v440_v20 = vcombine.high %v369_v15, %v369_v15  ;;  %v447_v21 = vrot.slane %v369_v15, %v2856_v16  ;;  %v373_v22 = vadd.f32 %v372_v19, %v2974_v12  ;;  %v374_v23 = vpop.f32.mrb[3].mxu0 }
  0xf9   :  { %v544_v24 = vcombine.high %v371_v18, %v371_v18  ;;  %v551_v25 = vrot.slane %v371_v18, %v2856_v16  ;;  %v2987_v26 = vadd.f32 %v374_v23, %v2979_v13 }
  0xfa   :  { %v454_v27 = vrot.slane %v440_v20, %v2856_v16  ;;  %v455_v28 = vcombine.high %v447_v21, %v447_v21  ;;  %v524_v29 = vpack.c.bf16 %v447_v21, %v447_v21  ;;  %v457_v30 = vcombine.high %v373_v22, %v373_v22 }
  0xfb   :  { %v558_v31 = vrot.slane %v544_v24, %v2856_v16  ;;  %v559_v32 = vcombine.high %v551_v25, %v551_v25  ;;  %v628_v33 = vpack.c.bf16 %v551_v25, %v551_v25  ;;  %v464_v34 = vrot.slane %v373_v22, %v2856_v16 }
  0xfc   :  { %v456_v35 = vcombine.high %v454_v27, %v454_v27  ;;  %v525_v36 = vpack.c.bf16 %v455_v28, %v455_v28  ;;  %v526_v37 = vpack.c.bf16 %v454_v27, %v454_v27  ;;  %v764_v38 = vunpack.c.l.b16 %v524_v29 }
  0xfd   :  { %v560_v39 = vcombine.high %v558_v31, %v558_v31  ;;  %v629_v40 = vpack.c.bf16 %v559_v32, %v559_v32  ;;  %v630_v41 = vpack.c.bf16 %v558_v31, %v558_v31  ;;  %v833_v42 = vunpack.c.l.b16 %v628_v33  ;;  %v2992_v43 = vpop.f32.mrb[4].mxu0 }
  0xfe   :  { %v527_v44 = vpack.c.bf16 %v456_v35, %v456_v35  ;;  %v765_v45 = vunpack.c.l.b16 %v525_v36  ;;  %v766_v46 = vunpack.c.l.b16 %v526_v37  ;;  %v1052_v47 = vrot.slane %v764_v38, 1  ;;  %v2994_v48 = vpop.f32.mrb[5].mxu0 }
  0xff   :  { %v631_v49 = vpack.c.bf16 %v560_v39, %v560_v39  ;;  %v834_v50 = vunpack.c.l.b16 %v629_v40  ;;  %v835_v51 = vunpack.c.l.b16 %v630_v41  ;;  %v1082_v52 = vrot.slane %v833_v42, 1  ;;  %v2996_v53 = vpop.f32.mrb[6].mxu0 }
 0x100   :  { %v767_v54 = vunpack.c.l.b16 %v527_v44  ;;  %v780_v55 = vrot.slane %v765_v45, 7  ;;  %v783_v56 = vrot.slane %v766_v46, 6  ;;  %v1053_v57 = vsel %vm781_vm1, %v765_v45, %v1052_v47  ;;  %v2999_v58 = vpop.f32.mrb[7].mxu0 }
 0x101   :  { %v1054_v59 = vrot.slane %v766_v46, 7  ;;  %v836_v60 = vunpack.c.l.b16 %v631_v49  ;;  %v849_v61 = vrot.slane %v834_v50, 7  ;;  %v851_v62 = vrot.slane %v835_v51, 6 }
 0x102   :  { %v782_v63 = vsel %vm781_vm1, %v780_v55, %v764_v38  ;;  %v786_v0 = vrot.slane %v767_v54, 5  ;;  %v1056_v1 = vrot.slane %v767_v54, 6  ;;  %v1083_v3 = vsel %vm781_vm1, %v834_v50, %v1082_v52 }
 0x103   :  { %v785_v5 = vsel %vm784_vm2, %v783_v56, %v782_v63  ;;  %v1055_v6 = vsel %vm784_vm2, %v1054_v59, %v1053_v57  ;;  %v850_v14 = vsel %vm781_vm1, %v849_v61, %v833_v42  ;;  %v853_v15 = vrot.slane %v836_v60, 5 }
 0x104   :  { %v852_v17 = vsel %vm784_vm2, %v851_v62, %v850_v14  ;;  %v1084_v18 = vrot.slane %v835_v51, 7  ;;  %v1086_v19 = vrot.slane %v836_v60, 6  ;;  %v471_v20 = vrot.slane %v457_v30, %v2856_v16 }
 0x105   :  { %v472_v21 = vcombine.high %v464_v34, %v464_v34  ;;  %v528_v22 = vpack.c.bf16 %v464_v34, %v464_v34  ;;  %v788_v23 = vsel %vm787_vm3, %v786_v0, %v785_v5  ;;  %v1057_v24 = vsel %vm787_vm3, %v1056_v1, %v1055_v6 }
 0x106   :  { %v1085_v25 = vsel %vm784_vm2, %v1084_v18, %v1083_v3  ;;  %v473_v27 = vcombine.high %v471_v20, %v471_v20  ;;  %v530_v28 = vpack.c.bf16 %v471_v20, %v471_v20  ;;  %v561_v29 = vcombine.high %v2987_v26, %v2987_v26 }
 0x107   :  { %v529_v31 = vpack.c.bf16 %v472_v21, %v472_v21  ;;  %v768_v32 = vunpack.c.l.b16 %v528_v22  ;;  %v568_v33 = vrot.slane %v2987_v26, %v2856_v16  ;;  %v854_v30 = vsel %vm787_vm3, %v853_v15, %v852_v17 }
 0x108   :  { %v531_v35 = vpack.c.bf16 %v473_v27, %v473_v27  ;;  %v3016_v34 = vunpack.c.l.b16 %v530_v28  ;;  %v575_v36 = vrot.slane %v561_v29, %v2856_v16  ;;  %v1087_v37 = vsel %vm787_vm3, %v1086_v19, %v1085_v25 }
 0x109   :  { %v769_v38 = vunpack.c.l.b16 %v529_v31  ;;  %v789_v39 = vrot.slane %v768_v32, 4  ;;  %v1058_v40 = vrot.slane %v768_v32, 5  ;;  %v576_v41 = vcombine.high %v568_v33, %v568_v33 }
 0x10a   :  { %v3020_v42 = vunpack.c.l.b16 %v531_v35  ;;  %v795_v44 = vrot.slane %v3016_v34, 2  ;;  %v1062_v45 = vrot.slane %v3016_v34, 3  ;;  %v577_v26 = vcombine.high %v575_v36, %v575_v36 }
 0x10b   :  { %v791_v46 = vsel %vm790_vm4, %v789_v39, %v788_v23  ;;  %v792_v47 = vrot.slane %v769_v38, 3  ;;  %v1059_v49 = vsel %vm790_vm4, %v1058_v40, %v1057_v24  ;;  %v1060_v50 = vrot.slane %v769_v38, 4 }
 0x10c   :  { %v798_v51 = vrot.slane %v3020_v42, 1  ;;  %v1064_v52 = vrot.slane %v3020_v42, 2  ;;  %v632_v54 = vpack.c.bf16 %v568_v33, %v568_v33  ;;  %v633_v55 = vpack.c.bf16 %v576_v41, %v576_v41 }
 0x10d   :  { %v794_v56 = vsel %vm793_vm5, %v792_v47, %v791_v46  ;;  %v3030_v57 = vsel %vm793_vm5, %v1060_v50, %v1059_v49  ;;  %v634_v59 = vpack.c.bf16 %v575_v36, %v575_v36  ;;  %v635_v60 = vpack.c.bf16 %v577_v26, %v577_v26 }
 0x10e   :  { %v3033_v61 = vsel %vm796_vm6, %v795_v44, %v794_v56  ;;  %v837_v62 = vunpack.c.l.b16 %v632_v54  ;;  %v838_v63 = vunpack.c.l.b16 %v633_v55  ;;  %v379_v0 = vadd.f32 %v2992_v43, %v2974_v12 }
 0x10f   :  { %v3037_v1 = vunpack.c.l.b16 %v634_v59  ;;  %v3039_v3 = vunpack.c.l.b16 %v635_v60  ;;  %v381_v5 = vadd.f32 %v2994_v48, %v2979_v13  ;;  %v383_v6 = vadd.f32 %v2996_v53, %v2974_v12 }
 0x110   :  { %v855_v14 = vrot.slane %v837_v62, 4  ;;  %v857_v15 = vrot.slane %v838_v63, 3  ;;  %v1088_v17 = vrot.slane %v837_v62, 5  ;;  %v1090_v18 = vrot.slane %v838_v63, 4 }
 0x111   :  { %v859_v19 = vrot.slane %v3037_v1, 2  ;;  %v861_v20 = vrot.slane %v3039_v3, 1  ;;  %v1092_v43 = vrot.slane %v3037_v1, 3  ;;  %v1094_v21 = vrot.slane %v3039_v3, 2 }
 0x112   :  { %v856_v22 = vsel %vm790_vm4, %v855_v14, %v854_v30  ;;  %v1089_v23 = vsel %vm790_vm4, %v1088_v17, %v1087_v37  ;;  %v474_v48 = vcombine.high %v379_v0, %v379_v0  ;;  %v481_v24 = vrot.slane %v379_v0, %v2856_v16 }
 0x113   :  { %v3053_v12 = vsel %vm793_vm5, %v857_v15, %v856_v22  ;;  %v3056_v53 = vsel %vm793_vm5, %v1090_v18, %v1089_v23  ;;  %v578_v25 = vcombine.high %v381_v5, %v381_v5  ;;  %v585_v27 = vrot.slane %v381_v5, %v2856_v16 }
 0x114   :  { %v488_v28 = vrot.slane %v474_v48, %v2856_v16  ;;  %v489_v29 = vcombine.high %v481_v24, %v481_v24  ;;  %v532_v31 = vpack.c.bf16 %v481_v24, %v481_v24  ;;  %v491_v32 = vcombine.high %v383_v6, %v383_v6 }
 0x115   :  { %v592_v33 = vrot.slane %v578_v25, %v2856_v16  ;;  %v593_v30 = vcombine.high %v585_v27, %v585_v27  ;;  %v636_v35 = vpack.c.bf16 %v585_v27, %v585_v27  ;;  %v498_v36 = vrot.slane %v383_v6, %v2856_v16 }
 0x116   :  { %v490_v37 = vcombine.high %v488_v28, %v488_v28  ;;  %v533_v38 = vpack.c.bf16 %v489_v29, %v489_v29  ;;  %v534_v39 = vpack.c.bf16 %v488_v28, %v488_v28  ;;  %v772_v40 = vunpack.c.l.b16 %v532_v31 }
 0x117   :  { %v594_v41 = vcombine.high %v592_v33, %v592_v33  ;;  %v637_v44 = vpack.c.bf16 %v593_v30, %v593_v30  ;;  %v638_v26 = vpack.c.bf16 %v592_v33, %v592_v33  ;;  %v841_v46 = vunpack.c.l.b16 %v636_v35 }
 0x118   :  { %v535_v47 = vpack.c.bf16 %v490_v37, %v490_v37  ;;  %v773_v49 = vunpack.c.l.b16 %v533_v38  ;;  %v774_v50 = vunpack.c.l.b16 %v534_v39  ;;  %v1066_v54 = vrot.slane %v772_v40, 1 }
 0x119   :  { %v639_v55 = vpack.c.bf16 %v594_v41, %v594_v41  ;;  %v842_v56 = vunpack.c.l.b16 %v637_v44  ;;  %v843_v59 = vunpack.c.l.b16 %v638_v26  ;;  %v1096_v60 = vrot.slane %v841_v46, 1 }
 0x11a   :  { %v775_v62 = vunpack.c.l.b16 %v535_v47  ;;  %v801_v63 = vrot.slane %v773_v49, 7  ;;  %v803_v0 = vrot.slane %v774_v50, 6  ;;  %v1067_v5 = vsel %vm781_vm1, %v773_v49, %v1066_v54 }
 0x11b   :  { %v1068_v6 = vrot.slane %v774_v50, 7  ;;  %v844_v14 = vunpack.c.l.b16 %v639_v55  ;;  %v863_v15 = vrot.slane %v842_v56, 7  ;;  %v865_v17 = vrot.slane %v843_v59, 6 }
 0x11c   :  { %v802_v18 = vsel %vm781_vm1, %v801_v63, %v772_v40  ;;  %v805_v22 = vrot.slane %v775_v62, 5  ;;  %v1070_v23 = vrot.slane %v775_v62, 6  ;;  %v1097_v48 = vsel %vm781_vm1, %v842_v56, %v1096_v60 }
 0x11d   :  { %v804_v24 = vsel %vm784_vm2, %v803_v0, %v802_v18  ;;  %v1069_v25 = vsel %vm784_vm2, %v1068_v6, %v1067_v5  ;;  %v864_v27 = vsel %vm781_vm1, %v863_v15, %v841_v46  ;;  %v867_v28 = vrot.slane %v844_v14, 5 }
 0x11e   :  { %v866_v29 = vsel %vm784_vm2, %v865_v17, %v864_v27  ;;  %v1098_v31 = vrot.slane %v843_v59, 7  ;;  %v1100_v33 = vrot.slane %v844_v14, 6  ;;  %v505_v30 = vrot.slane %v491_v32, %v2856_v16 }
 0x11f   :  { %v506_v35 = vcombine.high %v498_v36, %v498_v36  ;;  %v536_v37 = vpack.c.bf16 %v498_v36, %v498_v36  ;;  %v806_v38 = vsel %vm787_vm3, %v805_v22, %v804_v24  ;;  %v1071_v39 = vsel %vm787_vm3, %v1070_v23, %v1069_v25 }
 0x120   :  { %v1099_v40 = vsel %vm784_vm2, %v1098_v31, %v1097_v48  ;;  %v507_v41 = vcombine.high %v505_v30, %v505_v30  ;;  %v538_v44 = vpack.c.bf16 %v505_v30, %v505_v30  ;;  %v385_v26 = vadd.f32 %v2999_v58, %v2979_v13 }
 0x121   :  { %v537_v46 = vpack.c.bf16 %v506_v35, %v506_v35  ;;  %v776_v47 = vunpack.c.l.b16 %v536_v37  ;;  %v868_v49 = vsel %vm787_vm3, %v867_v28, %v866_v29  ;;  %v1101_v50 = vsel %vm787_vm3, %v1100_v33, %v1099_v40 }
 0x122   :  { %v539_v32 = vpack.c.bf16 %v507_v41, %v507_v41  ;;  %v778_v54 = vunpack.c.l.b16 %v538_v44  ;;  %v595_v36 = vcombine.high %v385_v26, %v385_v26  ;;  %v602_v55 = vrot.slane %v385_v26, %v2856_v16 }
 0x123   :  { %v777_v56 = vunpack.c.l.b16 %v537_v46  ;;  %v807_v59 = vrot.slane %v776_v47, 4  ;;  %v1072_v60 = vrot.slane %v776_v47, 5  ;;  %v860_v62 = vsel %vm796_vm6, %v859_v19, %v3053_v12 }
 0x124   :  { %v779_v13 = vunpack.c.l.b16 %v539_v32  ;;  %v811_v58 = vrot.slane %v778_v54, 2  ;;  %v1076_v63 = vrot.slane %v778_v54, 3  ;;  %v609_v0 = vrot.slane %v595_v36, %v2856_v16 }
 0x125   :  { %v808_v5 = vsel %vm790_vm4, %v807_v59, %v806_v38  ;;  %v809_v6 = vrot.slane %v777_v56, 3  ;;  %v1073_v14 = vsel %vm790_vm4, %v1072_v60, %v1071_v39  ;;  %v1074_v15 = vrot.slane %v777_v56, 4  ;;  %v2553_v60 = vpop.f32.mrb[0].mxu1 }
 0x126   :  { %v813_v17 = vrot.slane %v779_v13, 1  ;;  %v1078_v18 = vrot.slane %v779_v13, 2  ;;  %v610_v22 = vcombine.high %v602_v55, %v602_v55  ;;  %v611_v23 = vcombine.high %v609_v0, %v609_v0  ;;  %v421_v13 = vpop.f32.mrb[1].mxu1 }
 0x127   :  { %v810_v48 = vsel %vm793_vm5, %v809_v6, %v808_v5  ;;  %v1075_v24 = vsel %vm793_vm5, %v1074_v15, %v1073_v14  ;;  %v640_v19 = vpack.c.bf16 %v602_v55, %v602_v55  ;;  %v642_v12 = vpack.c.bf16 %v609_v0, %v609_v0 }
 0x128   :  { %v812_v25 = vsel %vm796_vm6, %v811_v58, %v810_v48  ;;  %v641_v27 = vpack.c.bf16 %v610_v22, %v610_v22  ;;  %v643_v28 = vpack.c.bf16 %v611_v23, %v611_v23  ;;  %v862_v29 = vsel %vm799_vm7, %v861_v20, %v860_v62 }
 0x129   :  { %v845_v31 = vunpack.c.l.b16 %v640_v19  ;;  %v847_v33 = vunpack.c.l.b16 %v642_v12  ;;  %v1093_v30 = vsel %vm796_vm6, %v1092_v43, %v3056_v53  ;;  %v800_v35 = vsel %vm799_vm7, %v798_v51, %v3033_v61 }
 0x12a   :  { %v846_v37 = vunpack.c.l.b16 %v641_v27  ;;  %v848_v38 = vunpack.c.l.b16 %v643_v28  ;;  %v1095_v39 = vsel %vm799_vm7, %v1094_v21, %v1093_v30  ;;  %v814_v20 = vsel %vm799_vm7, %v813_v17, %v812_v25 }
 0x12b   :  { %v869_v40 = vrot.slane %v845_v31, 4  ;;  %v873_v41 = vrot.slane %v847_v33, 2  ;;  %v1102_v44 = vrot.slane %v845_v31, 5  ;;  %v1106_v26 = vrot.slane %v847_v33, 3 }
 0x12c   :  { %v871_v1 = vrot.slane %v846_v37, 3  ;;  %v875_v46 = vrot.slane %v848_v38, 1  ;;  %v1104_v43 = vrot.slane %v846_v37, 4  ;;  %v1108_v53 = vrot.slane %v848_v38, 2 }
 0x12d   :  { %v870_v47 = vsel %vm790_vm4, %v869_v40, %v868_v49  ;;  %v1103_v51 = vsel %vm790_vm4, %v1102_v44, %v1101_v50  ;;  %v815_v61 = vpack.c.b16 %v814_v20, %v800_v35  ;;  %v1063_v3 = vsel %vm796_vm6, %v1062_v45, %v3030_v57 }
 0x12e   :  { %v872_v21 = vsel %vm793_vm5, %v871_v1, %v870_v47  ;;  %v1105_v32 = vsel %vm793_vm5, %v1104_v43, %v1103_v51  ;;  %v1065_v54 = vsel %vm799_vm7, %v1064_v52, %v1063_v3  ;;  %v1077_v36 = vsel %vm796_vm6, %v1076_v63, %v1075_v24  ;;  %v2554_v63 = vpop.f32.mrb[2].mxu1 }
 0x12f   :  { %v874_v49 = vsel %vm796_vm6, %v873_v41, %v872_v21  ;;  %v1107_v50 = vsel %vm796_vm6, %v1106_v26, %v1105_v32  ;;  %v1079_v55 = vsel %vm799_vm7, %v1078_v18, %v1077_v36  ;;  %v201_v42 = vsub.s32 2, %v2838_v10  ;;  %v424_v14 = vpop.f32.mrb[3].mxu1 }
 0x130   :  { %v876_v34 = vsel %vm799_vm7, %v875_v46, %v874_v49  ;;  %v1109_v45 = vsel %vm799_vm7, %v1108_v53, %v1107_v50  ;;  %v1080_v57 = vpack.c.b16 %v1079_v55, %v1065_v54 }
 0x131   :  { %v877_v56 = vpack.c.b16 %v876_v34, %v862_v29  ;;  %v1110_v59 = vpack.c.b16 %v1109_v45, %v1095_v39  ;;  %v202_v52 = vrot.slane %v2969_v9, %v201_v42 }
 0x133   :  { %2556 = vmatpush3.bf16.xpose.msra.mxu0 %v877_v56  ;;  %2568 = vmatpush3.bf16.xpose.msra.mxu1 %v1110_v59  ;;  %v430_v62 = vadd.f32 %v2553_v60, %v202_v52  ;;  %v422_v58 = vadd.f32 %v421_v13, %v202_v52  ;;  %v433_v6 = vadd.f32 %v2554_v63, %v202_v52 }
 0x134   :  { %2561 = vmatprep.subr.bf16.mxu0 %v2745_v7  ;;  %v425_v36 = vadd.f32 %v424_v14, %v202_v52 }
 0x135   :  { %v682_v0 = vcombine.high %v430_v62, %v430_v62  ;;  %v689_v5 = vrot.slane %v430_v62, %v2856_v16  ;;  %v648_v15 = vcombine.high %v422_v58, %v422_v58  ;;  %v655_v17 = vrot.slane %v422_v58, %v2856_v16 }
 0x136   :  { %v699_v48 = vcombine.high %v433_v6, %v433_v6  ;;  %v706_v12 = vrot.slane %v433_v6, %v2856_v16 }
 0x137   :  { %v696_v18 = vrot.slane %v682_v0, %v2856_v16  ;;  %v697_v22 = vcombine.high %v689_v5, %v689_v5  ;;  %v740_v23 = vpack.c.bf16 %v689_v5, %v689_v5  ;;  %v662_v9 = vrot.slane %v648_v15, %v2856_v16 }
 0x138   :  { %v663_v24 = vcombine.high %v655_v17, %v655_v17  ;;  %v732_v19 = vpack.c.bf16 %v655_v17, %v655_v17  ;;  %v713_v59 = vrot.slane %v699_v48, %v2856_v16  ;;  %v714_v60 = vcombine.high %v706_v12, %v706_v12 }
 0x139   :  { %v698_v25 = vcombine.high %v696_v18, %v696_v18  ;;  %v741_v27 = vpack.c.bf16 %v697_v22, %v697_v22  ;;  %v742_v28 = vpack.c.bf16 %v696_v18, %v696_v18  ;;  %v970_v29 = vunpack.c.l.b16 %v740_v23 }
 0x13a   :  { %2558 = vmatmul.mubr.bf16.vlgmr.msra.gmra.mrb[8].mxu0 %v815_v61  ;;  %2570 = vmatmul.mubr.bf16.vlgmr.msra.gmra.mrb[4].mxu1 %v1080_v57  ;;  %v664_v31 = vcombine.high %v662_v9, %v662_v9  ;;  %v733_v33 = vpack.c.bf16 %v663_v24, %v663_v24  ;;  %v734_v30 = vpack.c.bf16 %v662_v9, %v662_v9  ;;  %v962_v35 = vunpack.c.l.b16 %v732_v19 }
 0x13b   :  { %2563 = vmatprep.mubr.msk.bf16.mxu0 %vm2746_vm0, %v2745_v7  ;;  %v743_v37 = vpack.c.bf16 %v698_v25, %v698_v25  ;;  %v971_v38 = vunpack.c.l.b16 %v741_v27  ;;  %v972_v39 = vunpack.c.l.b16 %v742_v28  ;;  %v1192_v20 = vrot.slane %v970_v29, 1 }
 0x13c   :  { %v735_v40 = vpack.c.bf16 %v664_v31, %v664_v31  ;;  %v963_v41 = vunpack.c.l.b16 %v733_v33  ;;  %v964_v44 = vunpack.c.l.b16 %v734_v30  ;;  %v1178_v26 = vrot.slane %v962_v35, 1 }
 0x13d   :  { %v973_v1 = vunpack.c.l.b16 %v743_v37  ;;  %v992_v46 = vrot.slane %v971_v38, 7  ;;  %v994_v43 = vrot.slane %v972_v39, 6  ;;  %v1193_v53 = vsel %vm781_vm1, %v971_v38, %v1192_v20 }
 0x13e   :  { %v1194_v47 = vrot.slane %v972_v39, 7  ;;  %v965_v51 = vunpack.c.l.b16 %v735_v40  ;;  %v978_v61 = vrot.slane %v963_v41, 7  ;;  %v980_v3 = vrot.slane %v964_v44, 6 }
 0x13f   :  { %v993_v21 = vsel %vm781_vm1, %v992_v46, %v970_v29  ;;  %v1196_v32 = vrot.slane %v973_v1, 6  ;;  %v1179_v54 = vsel %vm781_vm1, %v963_v41, %v1178_v26  ;;  %v996_v50 = vrot.slane %v973_v1, 5 }
 0x140   :  { %v995_v49 = vsel %vm784_vm2, %v994_v43, %v993_v21  ;;  %v1195_v55 = vsel %vm784_vm2, %v1194_v47, %v1193_v53  ;;  %v979_v34 = vsel %vm781_vm1, %v978_v61, %v962_v35  ;;  %v982_v45 = vrot.slane %v965_v51, 5 }
 0x141   :  { %v1180_v57 = vrot.slane %v964_v44, 7  ;;  %v1182_v56 = vrot.slane %v965_v51, 6  ;;  %v981_v42 = vsel %vm784_vm2, %v980_v3, %v979_v34  ;;  %v744_v62 = vpack.c.bf16 %v706_v12, %v706_v12 }
 0x142   :  { %v1197_v13 = vsel %vm787_vm3, %v1196_v32, %v1195_v55  ;;  %v715_v58 = vcombine.high %v713_v59, %v713_v59  ;;  %v746_v63 = vpack.c.bf16 %v713_v59, %v713_v59  ;;  %v665_v0 = vcombine.high %v425_v36, %v425_v36 }
 0x143   :  { %v1181_v52 = vsel %vm784_vm2, %v1180_v57, %v1179_v54  ;;  %v745_v5 = vpack.c.bf16 %v714_v60, %v714_v60  ;;  %v974_v6 = vunpack.c.l.b16 %v744_v62  ;;  %v997_v14 = vsel %vm787_vm3, %v996_v50, %v995_v49 }
 0x144   :  { %v672_v15 = vrot.slane %v425_v36, %v2856_v16  ;;  %v747_v17 = vpack.c.bf16 %v715_v58, %v715_v58  ;;  %v976_v18 = vunpack.c.l.b16 %v746_v63  ;;  %v679_v22 = vrot.slane %v665_v0, %v2856_v16 }
 0x145   :  { %v1183_v23 = vsel %vm787_vm3, %v1182_v56, %v1181_v52  ;;  %v975_v48 = vunpack.c.l.b16 %v745_v5  ;;  %v998_v9 = vrot.slane %v974_v6, 4  ;;  %v1198_v24 = vrot.slane %v974_v6, 5 }
 0x146   :  { %v680_v19 = vcombine.high %v672_v15, %v672_v15  ;;  %v977_v12 = vunpack.c.l.b16 %v747_v17  ;;  %v1002_v25 = vrot.slane %v976_v18, 2  ;;  %v681_v27 = vcombine.high %v679_v22, %v679_v22 }
 0x147   :  { %v999_v28 = vsel %vm790_vm4, %v998_v9, %v997_v14  ;;  %v1000_v29 = vrot.slane %v975_v48, 3  ;;  %v1199_v31 = vsel %vm790_vm4, %v1198_v24, %v1197_v13  ;;  %v1200_v33 = vrot.slane %v975_v48, 4 }
 0x148   :  { %v1004_v30 = vrot.slane %v977_v12, 1  ;;  %v736_v35 = vpack.c.bf16 %v672_v15, %v672_v15  ;;  %v737_v37 = vpack.c.bf16 %v680_v19, %v680_v19  ;;  %v983_v38 = vsel %vm787_vm3, %v982_v45, %v981_v42 }
 0x149   :  { %v1001_v39 = vsel %vm793_vm5, %v1000_v29, %v999_v28  ;;  %v1201_v20 = vsel %vm793_vm5, %v1200_v33, %v1199_v31  ;;  %v738_v40 = vpack.c.bf16 %v679_v22, %v679_v22  ;;  %v739_v41 = vpack.c.bf16 %v681_v27, %v681_v27 }
 0x14a   :  { %v1202_v44 = vrot.slane %v976_v18, 3  ;;  %v966_v26 = vunpack.c.l.b16 %v736_v35  ;;  %v967_v1 = vunpack.c.l.b16 %v737_v37  ;;  %v1003_v46 = vsel %vm796_vm6, %v1002_v25, %v1001_v39 }
 0x14b   :  { %v1204_v43 = vrot.slane %v977_v12, 2  ;;  %v968_v53 = vunpack.c.l.b16 %v738_v40  ;;  %v969_v47 = vunpack.c.l.b16 %v739_v41  ;;  %v1005_v51 = vsel %vm799_vm7, %v1004_v30, %v1003_v46 }
 0x14c   :  { %v984_v61 = vrot.slane %v966_v26, 4  ;;  %v986_v3 = vrot.slane %v967_v1, 3  ;;  %v1184_v21 = vrot.slane %v966_v26, 5  ;;  %v1186_v32 = vrot.slane %v967_v1, 4 }
 0x14d   :  { %v988_v54 = vrot.slane %v968_v53, 2  ;;  %v990_v36 = vrot.slane %v969_v47, 1  ;;  %v1188_v49 = vrot.slane %v968_v53, 3  ;;  %v1190_v50 = vrot.slane %v969_v47, 2 }
 0x14e   :  { %v985_v55 = vsel %vm790_vm4, %v984_v61, %v983_v38  ;;  %v1185_v34 = vsel %vm790_vm4, %v1184_v21, %v1183_v23  ;;  %v1203_v56 = vsel %vm796_vm6, %v1202_v44, %v1201_v20 }
 0x14f   :  { %v987_v45 = vsel %vm793_vm5, %v986_v3, %v985_v55  ;;  %v1187_v57 = vsel %vm793_vm5, %v1186_v32, %v1185_v34  ;;  %v3159_v60 = vsel %vm799_vm7, %v1204_v43, %v1203_v56 }
 0x150   :  { %v989_v59 = vsel %vm796_vm6, %v988_v54, %v987_v45  ;;  %v1189_v42 = vsel %vm796_vm6, %v1188_v49, %v1187_v57 }
 0x151   :  { %v991_v62 = vsel %vm799_vm7, %v990_v36, %v989_v59  ;;  %v3163_v13 = vsel %vm799_vm7, %v1190_v50, %v1189_v42  ;;  %v2639_v59 = vld [vmem:[%s3508_s3] sm:$0xff]   ;;  %v2640_v42 = vld [vmem:[%s3508_s3 + $0x8] sm:$0xff]  }
 0x152   :  { %v1006_v52 = vpack.c.b16 %v1005_v51, %v991_v62  ;;  %v1206_v58 = vpack.c.b16 %v3159_v60, %v3163_v13  ;;  %2579 = vmatprep.subr.bf16.mxu1 %v2639_v59  ;;  %v2641_v60 = vld [vmem:[%s3508_s3 + $0x10] sm:$0xff]   ;;  %v2642_v62 = vld [vmem:[%s3508_s3 + $0x18] sm:$0xff]   ;;  %v2643_v13 = vld [vmem:[%s3508_s3 + $0x20] sm:$0xff]  }
 0x153   :  { %2580 = vmatpush3.bf16.msra.mxu1 %v2639_v59 }
 0x154   :  { %2562 = vmatpush3.bf16.msra.mxu0 %v1006_v52  ;;  %2581 = vmatprep.subr.bf16.mxu1 %v2640_v42  ;;  %v2644_v52 = vld [vmem:[%s3508_s3 + $0x28] sm:$0xff]  }
 0x155   :  { %2573 = vmatprep.subr.bf16.mxu0 %v2745_v7 }
 0x157   :  { %2582 = vmatpush3.bf16.msra.mxu1 %v2640_v42 }
 0x158   :  { %2583 = vmatprep.subr.bf16.mxu1 %v2641_v60 }
 0x15b   :  { %2584 = vmatpush3.bf16.msra.mxu1 %v2641_v60 }
 0x15c   :  { %2585 = vmatprep.subr.bf16.mxu1 %v2642_v62 }
 0x15f   :  { %2586 = vmatpush3.bf16.msra.mxu1 %v2642_v62 }
 0x160   :  { %2587 = vmatprep.subr.bf16.mxu1 %v2643_v13 }
 0x163   :  { %2588 = vmatpush3.bf16.msra.mxu1 %v2643_v13 }
 0x164   :  { %2589 = vmatprep.subr.bf16.mxu1 %v2644_v52 }
 0x167   :  { %2590 = vmatpush3.bf16.msra.mxu1 %v2644_v52 }
 0x20d   :  { %v913_v63 = vpop.f32.mrb[8].mxu0  ;;  %v1146_v0 = vpop.f32.mrb[4].mxu1 }
 0x20e   :  { %v920_v5 = vmul.f32 0.17677669, %v913_v63  ;;  %v1153_v6 = vmul.f32 0.17677669, %v1146_v0  ;;  %v2559_v14 = vpop.f32.mrb[9].mxu0  ;;  %v2571_v15 = vpop.f32.mrb[5].mxu1 }
 0x20f   :  { %v916_v17 = vpop.f32.mrb[10].mxu0  ;;  %v1149_v18 = vpop.f32.mrb[6].mxu1  ;;  %v2646_v63 = vld [vmem:[%s3508_s3 + $0x38] sm:$0xff]   ;;  %v2747_v0 = vmov 1966171168  }
 0x210   :  { %v2560_v22 = vpop.f32.mrb[11].mxu0  ;;  %v2572_v23 = vpop.f32.mrb[7].mxu1  ;;  %v921_v48 = vmul.f32 0.17677669, %v916_v17  ;;  %v1154_v9 = vmul.f32 0.17677669, %v1149_v18 }
 0x211   :  { %v1155_v24 = vsel %vm922_vm8, %v1153_v6, -inf  ;;  %v923_v19 = vsel %vm922_vm8, %v920_v5, -inf }
 0x212   :  { %1156 = vmax.xlane.f32.xlu1 %v1155_v24  ;;  %924 = vmax.xlane.f32.xlu0 %v923_v19  ;;  %v1158_v12 = vsel %vm922_vm8, %v1154_v9, -inf  ;;  %v926_v25 = vsel %vm922_vm8, %v921_v48, -inf }
 0x216   :  { %1159 = vmax.xlane.f32.xlu1 %v1158_v12  ;;  %927 = vmax.xlane.f32.xlu0 %v926_v25 }
 0x29f   :  { %v1157_v27 = vpop.xlane.xlu1 %1156  ;;  %v925_v28 = vpop.xlane.xlu0 %924 }
 0x2a0   :  { %v1161_v29 = vsub.f32 %v1153_v6, %v1157_v27  ;;  %v929_v31 = vsub.f32 %v920_v5, %v925_v28  ;;  %v1256_v5 = vunpack.c.l.s4 %v2747_v0 }
 0x2a2   :  { %v931_v33 = vmul.f32 1.442695, %v929_v31  ;;  %v1163_v30 = vmul.f32 1.442695, %v1161_v29  ;;  %v1257_v6 = vunpack.c.0.s8 %v1256_v5 }
 0x2a3   :  { %v1160_v35 = vpop.xlane.xlu1 %1159  ;;  %v928_v37 = vpop.xlane.xlu0 %927 }
 0x2a4   :  { %v1162_v38 = vsub.f32 %v1154_v9, %v1160_v35  ;;  %v930_v39 = vsub.f32 %v921_v48, %v928_v37  ;;  %2687 = vpow2.f32 %v931_v33  ;;  %v3209_v14 = vsub.s32 %v1257_v6, %v2838_v10 }
 0x2a5   :  { %2689 = vpow2.f32 %v1163_v30 }
 0x2a6   :  { %v933_v20 = vmul.f32 1.442695, %v930_v39  ;;  %v1165_v40 = vmul.f32 1.442695, %v1162_v38 }
 0x2a8   :  { %2691 = vpow2.f32 %v933_v20 }
 0x2a9   :  { %2693 = vpow2.f32 %v1165_v40 }
 0x2ae   :  { %v2688_v41 = vpop.eup %2687 }
 0x2af   :  { %v935_v44 = vsel %vm922_vm8, %v2688_v41, 0.0  ;;  %v2690_v26 = vpop.eup %2689 }
 0x2b0   :  { %936 = vadd.xlane.f32.xlu0 %v935_v44  ;;  %v1167_v46 = vsel %vm922_vm8, %v2690_v26, 0.0 }
 0x2b2   :  { %v2692_v1 = vpop.eup %2691 }
 0x2b3   :  { %v938_v43 = vsel %vm922_vm8, %v2692_v1, 0.0  ;;  %v2694_v53 = vpop.eup %2693 }
 0x2b4   :  { %1168 = vadd.xlane.f32.xlu0 %v1167_v46  ;;  %939 = vadd.xlane.f32.xlu1 %v938_v43  ;;  %v1170_v47 = vsel %vm922_vm8, %v2694_v53, 0.0 }
 0x2b8   :  { %1171 = vadd.xlane.f32.xlu1 %v1170_v47 }
 0x33d   :  { %v937_v51 = vpop.xlane.xlu0 %936 }
 0x33e   :  { %2695 = vrcp.f32 %v937_v51 }
 0x341   :  { %v940_v61 = vpop.xlane.xlu1 %939  ;;  %v1169_v3 = vpop.xlane.xlu0 %1168 }
 0x342   :  { %2697 = vrcp.f32 %v940_v61 }
 0x345   :  { %v1172_v21 = vpop.xlane.xlu1 %1171 }
 0x346   :  { %2699 = vrcp.f32 %v1172_v21 }
 0x347   :  { %2701 = vrcp.f32 %v1169_v3 }
 0x348   :  { %v2696_v32 = vpop.eup %2695 }
 0x349   :  { %v943_v36 = vmul.f32 %v2696_v32, %v2688_v41 }
 0x34c   :  { %v2698_v54 = vpop.eup %2697 }
 0x34d   :  { %v944_v49 = vmul.f32 %v2698_v54, %v2692_v1 }
 0x34f   :  { %v945_v50 = vpack.c.bf16 %v944_v49, %v943_v36 }
 0x350   :  { %v2700_v55 = vpop.eup %2699 }
 0x351   :  { %2564 = vmatmul.mubr.msk.bf16.vlgmr.msra.gmra.mrb[12].mxu0 %vm922_vm8, %v945_v50  ;;  %v2702_v34 = vpop.eup %2701  ;;  %v1176_v45 = vmul.f32 %v2700_v55, %v2694_v53 }
 0x352   :  { %2574 = vmatpush3.bf16.msra.mxu0 %v1206_v58  ;;  %2575 = vmatprep.mubr.msk.bf16.mxu0 %vm2746_vm0, %v2745_v7  ;;  %v1175_v57 = vmul.f32 %v2702_v34, %v2690_v26  ;;  %v2645_v58 = vld [vmem:[%s3508_s3 + $0x30] sm:$0xff]  }
 0x353   :  { %2591 = vmatprep.subr.bf16.mxu1 %v2645_v58 }
 0x354   :  { %v1177_v56 = vpack.c.bf16 %v1176_v45, %v1175_v57  ;;  %2592 = vmatpush3.bf16.msra.mxu1 %v2645_v58 }
 0x355   :  { %2593 = vmatprep.subr.bf16.mxu1 %v2646_v63 }
 0x358   :  { %2594 = vmatpush3.bf16.msra.mxu1 %v2646_v63 }
 0x359   :  { %2576 = vmatmul.mubr.msk.bf16.vlgmr.msra.gmra.mrb[16].mxu0 %vm922_vm8, %v1177_v56 }
 0x35a   :  { %1987 = vmatprep.mubr.bf16.mxu0 %v2743_v2 }
 0x424   :  { %v1045_v15 = vpop.f32.mrb[12].mxu0 }
 0x425   :  { %v1254_v17 = vcombine.high %v1045_v15, %v1045_v15  ;;  %v1261_v18 = vrot.slane %v1045_v15, %v3209_v14  ;;  %v2565_v22 = vpop.f32.mrb[13].mxu0 }
 0x426   :  { %v1048_v23 = vpop.f32.mrb[14].mxu0 }
 0x427   :  { %v1268_v48 = vrot.slane %v1254_v17, %v3209_v14  ;;  %v1269_v9 = vcombine.high %v1261_v18, %v1261_v18  ;;  %v1303_v24 = vcombine.high %v1048_v23, %v1048_v23  ;;  %v2566_v19 = vpop.f32.mrb[15].mxu0  ;;  %v1310_v12 = vrot.slane %v1048_v23, %v3209_v14 }
 0x428   :  { %v1277_v27 = vrot.slane %v1261_v18, %v3209_v14 }
 0x429   :  { %v1270_v25 = vcombine.high %v1268_v48, %v1268_v48  ;;  %v3216_v28 = vrot.slane %v1268_v48, %v3209_v14  ;;  %v3219_v29 = vrot.slane %v1269_v9, %v3209_v14  ;;  %v1317_v31 = vrot.slane %v1303_v24, %v3209_v14 }
 0x42a   :  { %v1318_v33 = vcombine.high %v1310_v12, %v1310_v12  ;;  %v3223_v30 = vrot.slane %v1310_v12, %v3209_v14  ;;  %v1299_v40 = vcombine.high %v1277_v27, %v1277_v27 }
 0x42b   :  { %v3226_v35 = vrot.slane %v1270_v25, %v3209_v14  ;;  %v1319_v37 = vcombine.high %v1317_v31, %v1317_v31  ;;  %v3229_v38 = vrot.slane %v1317_v31, %v3209_v14  ;;  %v1300_v41 = vcombine.high %v3216_v28, %v3216_v28 }
 0x42c   :  { %v3232_v39 = vrot.slane %v1318_v33, %v3209_v14  ;;  %v1245_v20 = vpop.f32.mrb[16].mxu0  ;;  %v1301_v46 = vcombine.high %v3219_v29, %v3219_v29  ;;  %v1348_v47 = vcombine.high %v3223_v30, %v3223_v30 }
 0x42d   :  { %v1370_v44 = vcombine.high %v1245_v20, %v1245_v20  ;;  %v1377_v26 = vrot.slane %v1245_v20, %v3209_v14  ;;  %v2577_v1 = vpop.f32.mrb[17].mxu0  ;;  %v1302_v43 = vcombine.high %v3226_v35, %v3226_v35  ;;  %v3242_v53 = vrot.slane %v1319_v37, %v3209_v14 }
 0x42e   :  { %v1248_v51 = vpop.f32.mrb[18].mxu0  ;;  %v1349_v36 = vcombine.high %v3229_v38, %v3229_v38  ;;  %v1350_v49 = vcombine.high %v3232_v39, %v3232_v39 }
 0x42f   :  { %v1384_v61 = vrot.slane %v1370_v44, %v3209_v14  ;;  %v1385_v3 = vcombine.high %v1377_v26, %v1377_v26  ;;  %v1393_v21 = vrot.slane %v1377_v26, %v3209_v14  ;;  %v1419_v32 = vcombine.high %v1248_v51, %v1248_v51  ;;  %v2578_v54 = vpop.f32.mrb[19].mxu0 }
 0x430   :  { %v1351_v50 = vcombine.high %v3242_v53, %v3242_v53  ;;  %v1426_v55 = vrot.slane %v1248_v51, %v3209_v14 }
 0x431   :  { %v1386_v34 = vcombine.high %v1384_v61, %v1384_v61  ;;  %v1400_v45 = vrot.slane %v1384_v61, %v3209_v14  ;;  %v1407_v57 = vrot.slane %v1385_v3, %v3209_v14  ;;  %v1415_v56 = vcombine.high %v1393_v21, %v1393_v21 }
 0x432   :  { %v1471_v59 = vrot.slane %v1393_v21, %v2964_v8  ;;  %v1433_v42 = vrot.slane %v1419_v32, %v3209_v14  ;;  %v1434_v60 = vcombine.high %v1426_v55, %v1426_v55  ;;  %v1442_v62 = vrot.slane %v1426_v55, %v3209_v14 }
 0x433   :  { %v1414_v13 = vrot.slane %v1386_v34, %v3209_v14  ;;  %v1416_v52 = vcombine.high %v1400_v45, %v1400_v45  ;;  %v1417_v58 = vcombine.high %v1407_v57, %v1407_v57  ;;  %v1475_v63 = vrot.slane %v1407_v57, %v2964_v8 }
 0x434   :  { %v1479_v0 = vrot.slane %v1415_v56, %v2964_v8  ;;  %v1487_v5 = vrot.slane %v1400_v45, %v2964_v8  ;;  %v1549_v6 = vsel %vm1548_vm9, %v1277_v27, %v1471_v59  ;;  %v1435_v15 = vcombine.high %v1433_v42, %v1433_v42 }
 0x435   :  { %v1418_v17 = vcombine.high %v1414_v13, %v1414_v13  ;;  %v1483_v18 = vrot.slane %v1417_v58, %v2964_v8  ;;  %v1491_v22 = vrot.slane %v1414_v13, %v2964_v8  ;;  %v1495_v23 = vrot.slane %v1416_v52, %v2964_v8 }
 0x436   :  { %v1449_v48 = vrot.slane %v1433_v42, %v3209_v14  ;;  %v1456_v9 = vrot.slane %v1434_v60, %v3209_v14  ;;  %v1463_v24 = vrot.slane %v1435_v15, %v3209_v14  ;;  %v1464_v19 = vcombine.high %v1442_v62, %v1442_v62 }
 0x437   :  { %v1499_v12 = vrot.slane %v1418_v17, %v2964_v8  ;;  %v1503_v25 = vrot.slane %v1442_v62, %v2964_v8  ;;  %v1550_v27 = vsel %vm1548_vm9, %v3219_v29, %v1475_v63  ;;  %v1551_v31 = vsel %vm1548_vm9, %v1299_v40, %v1479_v0  ;;  %v2425_v17 = vld [vmem:[%s3509_s4] ss:$0 sm:$0xff] }
 0x438   :  { %v1465_v33 = vcombine.high %v1449_v48, %v1449_v48  ;;  %v1466_v37 = vcombine.high %v1456_v9, %v1456_v9  ;;  %v1467_v20 = vcombine.high %v1463_v24, %v1463_v24  ;;  %v1507_v44 = vrot.slane %v1456_v9, %v2964_v8 }
 0x439   :  { %v1511_v26 = vrot.slane %v1464_v19, %v2964_v8  ;;  %v1519_v1 = vrot.slane %v1449_v48, %v2964_v8  ;;  %v1523_v14 = vrot.slane %v1463_v24, %v2964_v8  ;;  %v1557_v51 = vsel %vm1548_vm9, %v3223_v30, %v1503_v25  ;;  %v2647_v25 = vld [vmem:[%s3512_s7] ss:$8 sps:$4 sm:$0xff]  }
 0x43a   :  { %v1515_v61 = vrot.slane %v1466_v37, %v2964_v8  ;;  %v1527_v29 = vrot.slane %v1465_v33, %v2964_v8  ;;  %v1531_v40 = vrot.slane %v1467_v20, %v2964_v8  ;;  %v1558_v3 = vsel %vm1548_vm9, %v3232_v39, %v1507_v44  ;;  %v2650_v33 = vld [vmem:[%s3512_s7 + $0x10] ss:$8 sps:$4 sm:$0xff]  }
 0x43b   :  { %v1559_v21 = vsel %vm1548_vm9, %v1348_v47, %v1511_v26  ;;  %v1561_v32 = vsel %vm1548_vm9, %v3229_v38, %v1519_v1  ;;  %v1562_v54 = vsel %vm1548_vm9, %v3242_v53, %v1523_v14  ;;  %v1615_v55 = vcombine.low %v1557_v51, %v1558_v3 }
 0x43c   :  { %v1560_v30 = vsel %vm1548_vm9, %v1350_v49, %v1515_v61  ;;  %v1563_v34 = vsel %vm1548_vm9, %v1349_v36, %v1527_v29  ;;  %v1632_v45 = vcombine.low %v1561_v32, %v1562_v54  ;;  %v1552_v57 = vsel %vm1548_vm9, %v1301_v46, %v1483_v18 }
 0x43d   :  { %v1616_v56 = vcombine.low %v1559_v21, %v1560_v30  ;;  %v1553_v39 = vsel %vm1548_vm9, %v3216_v28, %v1487_v5  ;;  %v1554_v47 = vsel %vm1548_vm9, %v3226_v35, %v1491_v22  ;;  %v1555_v38 = vsel %vm1548_vm9, %v1300_v41, %v1495_v23 }
 0x43e   :  { %v1556_v53 = vsel %vm1548_vm9, %v1302_v43, %v1499_v12  ;;  %v1581_v36 = vcombine.low %v1549_v6, %v1550_v27  ;;  %v1582_v49 = vcombine.low %v1551_v31, %v1552_v57  ;;  %v1598_v46 = vcombine.low %v1553_v39, %v1554_v47  ;;  %v2649_v27 = vld [vmem:[%s3512_s7 + $0x4] ss:$8 sps:$4 sm:$0xff]   ;;  %v2652_v31 = vld [vmem:[%s3512_s7 + $0x14] ss:$8 sps:$4 sm:$0xff]   ;;  %v2653_v47 = vld [vmem:[%s3512_s7 + $0x20] ss:$8 sps:$4 sm:$0xff]  }
 0x43f   :  { %v1599_v59 = vcombine.low %v1555_v38, %v1556_v53  ;;  %v1564_v42 = vsel %vm1548_vm9, %v1351_v50, %v1531_v40  ;;  %v1623_v60 = vrot.slane %v1615_v55, %v2856_v16  ;;  %v1630_v62 = vrot.slane %v1616_v56, %v2856_v16  ;;  %1955 = vmatprep.subr.bf16.mxu0 %v2649_v27  ;;  %v2655_v39 = vld [vmem:[%s3512_s7 + $0x24] ss:$8 sps:$4 sm:$0xff]   ;;  %v2658_v38 = vld [vmem:[%s3512_s7 + $0x34] ss:$8 sps:$4 sm:$0xff]   ;;  %v2656_v53 = vld [vmem:[%s3512_s7 + $0x30] ss:$8 sps:$4 sm:$0xff]  }
 0x440   :  { %v1589_v13 = vrot.slane %v1581_v36, %v2856_v16  ;;  %v1596_v28 = vrot.slane %v1582_v49, %v2856_v16  ;;  %v1633_v41 = vcombine.low %v1563_v34, %v1564_v42  ;;  %v1606_v52 = vrot.slane %v1598_v46, %v2856_v16  ;;  %1956 = vmatpush1.bf16.msra.mxu0 %v2647_v25  ;;  %v2661_v36 = vld [vmem:[%s3512_s7 + $0x44] ss:$8 sps:$4 sm:$0xff]   ;;  %v2659_v49 = vld [vmem:[%s3512_s7 + $0x40] ss:$8 sps:$4 sm:$0xff]   ;;  %v2664_v46 = vld [vmem:[%s3512_s7 + $0x54] ss:$8 sps:$4 sm:$0xff]  }
 0x441   :  { %v1613_v35 = vrot.slane %v1599_v59, %v2856_v16  ;;  %v1631_v43 = vcombine.low %v1623_v60, %v1630_v62  ;;  %v1640_v63 = vrot.slane %v1632_v45, %v2856_v16  ;;  %1957 = vmatprep.subr.bf16.mxu0 %v2652_v31  ;;  %v47_v37 = vand.u32 127, %v46_v4  ;;  %v2662_v59 = vld [vmem:[%s3512_s7 + $0x50] ss:$8 sps:$4 sm:$0xff]   ;;  %v2667_v42 = vld [vmem:[%s3512_s7 + $0x64] ss:$8 sps:$4 sm:$0xff]  }
 0x442   :  { %v1597_v58 = vcombine.low %v1589_v13, %v1596_v28  ;;  %v1647_v0 = vrot.slane %v1633_v41, %v2856_v16  ;;  %v2665_v60 = vld [vmem:[%s3512_s7 + $0x60] ss:$8 sps:$4 sm:$0xff]   ;;  %v2670_v62 = vld [vmem:[%s3512_s7 + $0x74] ss:$8 sps:$4 sm:$0xff]   ;;  %v2668_v13 = vld [vmem:[%s3512_s7 + $0x70] ss:$8 sps:$4 sm:$0xff]  }
 0x443   :  { %v1614_v50 = vcombine.low %v1606_v52, %v1613_v35  ;;  %vm48_vm10 = vcmp.lt.s32.totalorder %v47_v37, 32  ;;  %v2671_v28 = vld [vmem:[%s3514_s9 + $0x40] sm:$0xff]   ;;  %v2673_v52 = vld [vmem:[%s3514_s9 + $0x48] sm:$0xff]  }
 0x444   :  { %v1648_v5 = vcombine.low %v1640_v63, %v1647_v0  ;;  %1958 = vmatpush1.bf16.msra.mxu0 %v2650_v33  ;;  %v3333_v1 = vsel %vm48_vm10, 1.0, %v2745_v7  ;;  %v2672_v41 = vld [vmem:[%s3514_s9] sm:$0xff]   ;;  %2507 = vmatprep.subr.bf16.mxu1 %v2671_v28  ;;  %v2674_v35 = vld [vmem:[%s3514_s9 + $0x8] sm:$0xff]   ;;  %v2677_v63 = vld [vmem:[%s3514_s9 + $0x58] sm:$0xff]  }
 0x445   :  { %v1653_v6 = vpack.c.bf16 %v1614_v50, %v1597_v58  ;;  %1959 = vmatprep.subr.bf16.mxu0 %v2655_v39  ;;  %v2676_v58 = vld [vmem:[%s3514_s9 + $0x10] sm:$0xff]   ;;  %v2678_v0 = vld [vmem:[%s3514_s9 + $0x18] sm:$0xff]   ;;  %v2679_v50 = vld [vmem:[%s3514_s9 + $0x60] sm:$0xff]  }
 0x446   :  { %v1654_v15 = vpack.c.bf16 %v1648_v5, %v1631_v43  ;;  %v2675_v43 = vld [vmem:[%s3514_s9 + $0x50] sm:$0xff]   ;;  %v2680_v5 = vld [vmem:[%s3514_s9 + $0x20] sm:$0xff]   ;;  %v2686_v39 = vld [vmem:[%s3514_s9 + $0x38] sm:$0xff]  }
 0x447   :  { %2595 = vmatprep.mubr.bf16.mxu1 %v1653_v6  ;;  %v2681_v6 = vld [vmem:[%s3514_s9 + $0x68] sm:$0xff]   ;;  %v2434_v33 = vld [vmem:[%s3510_s5] ss:$0 sm:$0xff] }
 0x448   :  { %2596 = vmatmul.mubr.bf16.vlgmr.msra.gmra.mrb[8].mxu1 %v1654_v15  ;;  %1960 = vmatpush1.bf16.msra.mxu0 %v2653_v47  ;;  %v1863_v47 = vld [vmem:[%s3513_s8] sm:$0x3] }
 0x449   :  { %1961 = vmatprep.subr.bf16.mxu0 %v2658_v38  ;;  %2508 = vmatpush3.bf16.msra.mxu1 %v2672_v41  ;;  %v1868_v38 = vrot.slane %v1863_v47, %v2964_v8 }
 0x44a   :  { %2509 = vmatprep.subr.bf16.mxu1 %v2673_v52 }
 0x44c   :  { %1962 = vmatpush1.bf16.msra.mxu0 %v2656_v53  ;;  %v1872_v53 = vrot.slane %v1863_v47, %v197_v11 }
 0x44d   :  { %1963 = vmatprep.subr.bf16.mxu0 %v2661_v36  ;;  %2510 = vmatpush3.bf16.msra.mxu1 %v2674_v35 }
 0x44e   :  { %2511 = vmatprep.subr.bf16.mxu1 %v2675_v43 }
 0x450   :  { %1964 = vmatpush1.bf16.msra.mxu0 %v2659_v49 }
 0x451   :  { %1965 = vmatprep.subr.bf16.mxu0 %v2664_v46  ;;  %2512 = vmatpush3.bf16.msra.mxu1 %v2676_v58 }
 0x452   :  { %2513 = vmatprep.subr.bf16.mxu1 %v2677_v63 }
 0x454   :  { %1966 = vmatpush1.bf16.msra.mxu0 %v2662_v59 }
 0x455   :  { %1967 = vmatprep.subr.bf16.mxu0 %v2667_v42  ;;  %2514 = vmatpush3.bf16.msra.mxu1 %v2678_v0 }
 0x456   :  { %2515 = vmatprep.subr.bf16.mxu1 %v2679_v50 }
 0x458   :  { %1968 = vmatpush1.bf16.msra.mxu0 %v2665_v60 }
 0x459   :  { %1969 = vmatprep.subr.bf16.mxu0 %v2670_v62  ;;  %2516 = vmatpush3.bf16.msra.mxu1 %v2680_v5 }
 0x45a   :  { %2517 = vmatprep.subr.bf16.mxu1 %v2681_v6 }
 0x45c   :  { %1970 = vmatpush1.bf16.msra.mxu0 %v2668_v13 }
 0x51b   :  { %v2597_v18 = vpop.f32.mrb[8].mxu1 }
 0x51c   :  { %v1760_v22 = vpop.f32.mrb[9].mxu1  ;;  %v1769_v19 = vadd.f32 %v2597_v18, %v2425_v17 }
 0x51d   :  { %v1761_v23 = vadd.f32 %v2425_v17, %v1760_v22  ;;  %v2598_v48 = vpop.f32.mrb[10].mxu1 }
 0x51e   :  { %v1763_v9 = vpop.f32.mrb[11].mxu1  ;;  %v1772_v12 = vadd.f32 %v2598_v48, %v2425_v17 }
 0x51f   :  { %v1764_v24 = vadd.f32 %v2425_v17, %v1763_v9  ;;  %1777 = vadd.xlane.f32.xlu0 %v1761_v23 }
 0x521   :  { %1779 = vadd.xlane.f32.xlu1 %v1764_v24 }
 0x523   :  { %1781 = vadd.xlane.f32.xlu0 %v1769_v19 }
 0x525   :  { %1783 = vadd.xlane.f32.xlu1 %v1772_v12 }
 0x5ac   :  { %v1778_v20 = vpop.xlane.xlu0 %1777 }
 0x5ad   :  { %v1785_v44 = vmul.f32 0.03125, %v1778_v20 }
 0x5ae   :  { %v1780_v26 = vpop.xlane.xlu1 %1779 }
 0x5af   :  { %v1789_v14 = vsub.f32 %v1761_v23, %v1785_v44  ;;  %v1786_v51 = vmul.f32 0.03125, %v1780_v26 }
 0x5b0   :  { %v1782_v61 = vpop.xlane.xlu0 %1781 }
 0x5b1   :  { %v1790_v29 = vsub.f32 %v1764_v24, %v1786_v51  ;;  %v1787_v40 = vmul.f32 0.03125, %v1782_v61  ;;  %v3336_v3 = vmul.f32 %v3333_v1, %v1789_v14  ;;  %v2435_v51 = vld [vmem:[%s3511_s6] ss:$0 sm:$0xff] }
 0x5b2   :  { %v1784_v21 = vpop.xlane.xlu1 %1783 }
 0x5b3   :  { %v1791_v32 = vsub.f32 %v1769_v19, %v1787_v40  ;;  %v1788_v54 = vmul.f32 0.03125, %v1784_v21  ;;  %v1797_v4 = vmul.f32 %v3336_v3, %v3336_v3  ;;  %v3341_v55 = vmul.f32 %v3333_v1, %v1790_v29 }
 0x5b5   :  { %v1792_v30 = vsub.f32 %v1772_v12, %v1788_v54  ;;  %1801 = vadd.xlane.f32.xlu0 %v1797_v4  ;;  %v1798_v7 = vmul.f32 %v3341_v55, %v3341_v55  ;;  %v3346_v34 = vmul.f32 %v3333_v1, %v1791_v32 }
 0x5b7   :  { %1803 = vadd.xlane.f32.xlu1 %v1798_v7  ;;  %v1799_v45 = vmul.f32 %v3346_v34, %v3346_v34  ;;  %v3351_v57 = vmul.f32 %v3333_v1, %v1792_v30 }
 0x5b9   :  { %1805 = vadd.xlane.f32.xlu0 %v1799_v45  ;;  %v1800_v56 = vmul.f32 %v3351_v57, %v3351_v57 }
 0x5bb   :  { %1807 = vadd.xlane.f32.xlu1 %v1800_v56  ;;  %v2685_v56 = vld [vmem:[%s3514_s9 + $0x78] sm:$0xff]  }
 0x642   :  { %v1802_v15 = vpop.xlane.xlu0 %1801 }
 0x643   :  { %v1809_v17 = vmul.f32 0.03125, %v1802_v15 }
 0x644   :  { %v1804_v18 = vpop.xlane.xlu1 %1803 }
 0x645   :  { %v1813_v22 = vadd.f32 1e-05, %v1809_v17  ;;  %v1810_v23 = vmul.f32 0.03125, %v1804_v18 }
 0x646   :  { %v1806_v48 = vpop.xlane.xlu0 %1805 }
 0x647   :  { %2703 = vrsqrt.f32 %v1813_v22  ;;  %v1814_v9 = vadd.f32 1e-05, %v1810_v23  ;;  %v1811_v24 = vmul.f32 0.03125, %v1806_v48 }
 0x648   :  { %v1808_v19 = vpop.xlane.xlu1 %1807 }
 0x649   :  { %2705 = vrsqrt.f32 %v1814_v9  ;;  %v1815_v12 = vadd.f32 1e-05, %v1811_v24  ;;  %v1812_v25 = vmul.f32 0.03125, %v1808_v19  ;;  %v2452_v24 = vld [vmem:[%s3515_s10] ss:$0 sm:$0xff] }
 0x64b   :  { %2707 = vrsqrt.f32 %v1815_v12  ;;  %v1816_v27 = vadd.f32 1e-05, %v1812_v25 }
 0x64d   :  { %2709 = vrsqrt.f32 %v1816_v27 }
 0x651   :  { %v2704_v31 = vpop.eup %2703 }
 0x652   :  { %v1821_v37 = vmul.f32 %v2704_v31, %v3336_v3 }
 0x653   :  { %v2706_v20 = vpop.eup %2705 }
 0x654   :  { %v1822_v44 = vmul.f32 %v2706_v20, %v3341_v55  ;;  %v1831_v26 = vmul.f32 %v2434_v33, %v1821_v37 }
 0x655   :  { %v2708_v14 = vpop.eup %2707 }
 0x656   :  { %v1832_v61 = vmul.f32 %v2434_v33, %v1822_v44  ;;  %v3432_v40 = vadd.f32 %v2435_v51, %v1831_v26  ;;  %v1823_v32 = vmul.f32 %v2708_v14, %v3346_v34  ;;  %v2682_v34 = vld [vmem:[%s3514_s9 + $0x28] sm:$0xff]  }
 0x657   :  { %v2710_v29 = vpop.eup %2709  ;;  %2518 = vmatpush3.bf16.msra.mxu1 %v2682_v34 }
 0x658   :  { %v3434_v21 = vadd.f32 %v2435_v51, %v1832_v61  ;;  %v1824_v54 = vmul.f32 %v2710_v29, %v3351_v57  ;;  %v1833_v55 = vmul.f32 %v2434_v33, %v1823_v32  ;;  %v2683_v57 = vld [vmem:[%s3514_s9 + $0x70] sm:$0xff]  }
 0x659   :  { %2519 = vmatprep.subr.bf16.mxu1 %v2683_v57 }
 0x65a   :  { %v1845_v3 = vpack.c.bf16 %v3434_v21, %v3432_v40  ;;  %v1834_v4 = vmul.f32 %v2434_v33, %v1824_v54  ;;  %v3443_v7 = vadd.f32 %v2435_v51, %v1833_v55 }
 0x65c   :  { %1988 = vmatmul.mubr.bf16.vlgmr.msra.gmra.mrb[20].mxu0 %v1845_v3  ;;  %v3441_v30 = vadd.f32 %v2435_v51, %v1834_v4 }
 0x65d   :  { %1997 = vmatprep.mubr.bf16.mxu0 %v2743_v2  ;;  %v2684_v2 = vld [vmem:[%s3514_s9 + $0x30] sm:$0xff]  }
 0x65e   :  { %v1846_v45 = vpack.c.bf16 %v3441_v30, %v3443_v7  ;;  %2520 = vmatpush3.bf16.msra.mxu1 %v2684_v2 }
 0x65f   :  { %2521 = vmatprep.subr.bf16.mxu1 %v2685_v56 }
 0x662   :  { %2522 = vmatpush3.bf16.msra.mxu1 %v2686_v39 }
 0x664   :  { %1998 = vmatmul.mubr.bf16.gmra.mrb[24].mxu0 %v1846_v45 }
 0x72f   :  { %v1989_v36 = vpop.f32.mrb[20].mxu0 }
 0x730   :  { %v1990_v49 = vadd.f32 %v1989_v36, %v1868_v38  ;;  %v1991_v46 = vpop.f32.mrb[21].mxu0 }
 0x731   :  { %v1992_v59 = vadd.f32 %v1991_v46, %v1872_v53  ;;  %v1993_v42 = vpop.f32.mrb[22].mxu0 }
 0x732   :  { %v1994_v60 = vadd.f32 %v1993_v42, %v1868_v38  ;;  %v1995_v62 = vpop.f32.mrb[23].mxu0  ;;  %v2008_v28 = vmax.f32 %v1990_v49, 0.0 }
 0x733   :  { %v1996_v13 = vadd.f32 %v1995_v62, %v1872_v53  ;;  %v2009_v52 = vmax.f32 %v1992_v59, 0.0 }
 0x734   :  { %v2010_v41 = vmax.f32 %v1994_v60, 0.0 }
 0x735   :  { %v2011_v35 = vmax.f32 %v1996_v13, 0.0 }
 0x736   :  { %v2016_v43 = vpack.c.bf16 %v2010_v41, %v2008_v28 }
 0x737   :  { %v2017_v58 = vpack.c.bf16 %v2011_v35, %v2009_v52  ;;  %v1999_v63 = vpop.f32.mrb[24].mxu0 }
 0x738   :  { %v2000_v0 = vadd.f32 %v1999_v63, %v1868_v38  ;;  %v2001_v8 = vpop.f32.mrb[25].mxu0 }
 0x739   :  { %v2002_v50 = vadd.f32 %v2001_v8, %v1872_v53  ;;  %v2003_v10 = vpop.f32.mrb[26].mxu0  ;;  %2187 = vmatprep.mubr.bf16.mxu1 %v2017_v58 }
 0x73a   :  { %v2004_v11 = vadd.f32 %v2003_v10, %v1868_v38  ;;  %v2005_v5 = vpop.f32.mrb[27].mxu0  ;;  %2188 = vmatmul.mubr.bf16.vlgmr.msra.gmra.mrb[12].mxu1 %v2016_v43  ;;  %v2012_v15 = vmax.f32 %v2000_v0, 0.0 }
 0x73b   :  { %v2006_v6 = vadd.f32 %v2005_v5, %v1872_v53  ;;  %v2013_v18 = vmax.f32 %v2002_v50, 0.0 }
 0x73c   :  { %v2014_v17 = vmax.f32 %v2004_v11, 0.0 }
 0x73d   :  { %v2015_v22 = vmax.f32 %v2006_v6, 0.0 }
 0x73e   :  { %v2018_v23 = vpack.c.bf16 %v2014_v17, %v2012_v15  ;;  %v2470_v15 = vld [vmem:[%s3517_s12] ss:$0 sm:$0xff] }
 0x73f   :  { %v2019_v48 = vpack.c.bf16 %v2015_v22, %v2013_v18 }
 0x741   :  { %2195 = vmatprep.mubr.bf16.mxu1 %v2019_v48 }
 0x742   :  { %2196 = vmatmul.mubr.bf16.gmra.mrb[16].mxu1 %v2018_v23 }
 0x80d   :  { %v2523_v9 = vpop.f32.mrb[12].mxu1 }
 0x80e   :  { %v2524_v19 = vpop.f32.mrb[13].mxu1 }
 0x80f   :  { %v2525_v12 = vadd.f32 %v2524_v19, %v2523_v9  ;;  %v2526_v25 = vpop.f32.mrb[14].mxu1 }
 0x810   :  { %v2527_v27 = vpop.f32.mrb[15].mxu1 }
 0x811   :  { %v2190_v31 = vadd.f32 %v2525_v12, %v2452_v24  ;;  %v2528_v33 = vadd.f32 %v2527_v27, %v2526_v25 }
 0x813   :  { %v2193_v37 = vadd.f32 %v2528_v33, %v2452_v24  ;;  %v2204_v20 = vadd.f32 %v2190_v31, %v3432_v40 }
 0x815   :  { %2210 = vadd.xlane.f32.xlu0 %v2204_v20  ;;  %v2529_v44 = vpop.f32.mrb[16].mxu1  ;;  %v2205_v26 = vadd.f32 %v2193_v37, %v3434_v21 }
 0x816   :  { %v2530_v14 = vpop.f32.mrb[17].mxu1 }
 0x817   :  { %v2531_v51 = vadd.f32 %v2530_v14, %v2529_v44  ;;  %2212 = vadd.xlane.f32.xlu1 %v2205_v26  ;;  %v2532_v61 = vpop.f32.mrb[18].mxu1 }
 0x818   :  { %v2533_v29 = vpop.f32.mrb[19].mxu1 }
 0x819   :  { %v2198_v32 = vadd.f32 %v2531_v51, %v2452_v24  ;;  %v2534_v54 = vadd.f32 %v2533_v29, %v2532_v61 }
 0x81b   :  { %v2201_v3 = vadd.f32 %v2534_v54, %v2452_v24  ;;  %v2206_v4 = vadd.f32 %v2198_v32, %v3443_v7 }
 0x81d   :  { %2214 = vadd.xlane.f32.xlu0 %v2206_v4  ;;  %v2207_v55 = vadd.f32 %v2201_v3, %v3441_v30 }
 0x81f   :  { %2216 = vadd.xlane.f32.xlu1 %v2207_v55 }
 0x8a2   :  { %v2211_v45 = vpop.xlane.xlu0 %2210 }
 0x8a3   :  { %v2218_v40 = vmul.f32 0.03125, %v2211_v45 }
 0x8a4   :  { %v2213_v34 = vpop.xlane.xlu1 %2212 }
 0x8a5   :  { %v2222_v57 = vsub.f32 %v2204_v20, %v2218_v40  ;;  %v2219_v2 = vmul.f32 0.03125, %v2213_v34 }
 0x8a7   :  { %v2223_v21 = vsub.f32 %v2205_v26, %v2219_v2  ;;  %v2226_v56 = vmul.f32 %v3333_v1, %v2222_v57 }
 0x8a9   :  { %v2230_v39 = vmul.f32 %v2226_v56, %v2226_v56  ;;  %v2227_v47 = vmul.f32 %v3333_v1, %v2223_v21 }
 0x8aa   :  { %v2215_v38 = vpop.xlane.xlu0 %2214 }
 0x8ab   :  { %v2220_v53 = vmul.f32 0.03125, %v2215_v38  ;;  %2234 = vadd.xlane.f32.xlu0 %v2230_v39  ;;  %v2231_v36 = vmul.f32 %v2227_v47, %v2227_v47 }
 0x8ac   :  { %v2217_v7 = vpop.xlane.xlu1 %2216 }
 0x8ad   :  { %v2224_v49 = vsub.f32 %v2206_v4, %v2220_v53  ;;  %v2221_v46 = vmul.f32 0.03125, %v2217_v7  ;;  %2236 = vadd.xlane.f32.xlu1 %v2231_v36 }
 0x8af   :  { %v2225_v30 = vsub.f32 %v2207_v55, %v2221_v46  ;;  %v2228_v59 = vmul.f32 %v3333_v1, %v2224_v49 }
 0x8b1   :  { %v2232_v42 = vmul.f32 %v2228_v59, %v2228_v59  ;;  %v2229_v60 = vmul.f32 %v3333_v1, %v2225_v30  ;;  %v2469_v1 = vld [vmem:[%s3516_s11] ss:$0 sm:$0xff]  ;;  %s2748_s11 = smov [#allocation2]  }
 0x8b2   :  { %s2387_s12 = sshll.u32 %s2748_s11, 4  ;;  %s2388_s12 = int_to_ptr.vmem [resolvable:$true] %s2387_s12 }
 0x8b3   :  { %2238 = vadd.xlane.f32.xlu0 %v2232_v42  ;;  %v2233_v62 = vmul.f32 %v2229_v60, %v2229_v60  ;;  %s2719_s2 = scalar_lea.vmem %s2388_s12, 512  ;;  %p2724_p1 = scmp.lt.s32.totalorder %s2388_s12, %s2388_s12 }
 0x8b4   :  { %p2720_p0 = scmp.ne.s32.totalorder %s2388_s12, %s2719_s2  ;;  %p2725_p2 = scmp.lt.s32.totalorder %s2719_s2, %s2719_s2 }
 0x8b5   :  { %2240 = vadd.xlane.f32.xlu1 %v2233_v62 }
 0x8b6   :  { %p2726_p3 = por %p2725_p2, %p2724_p1 }
 0x8b8   :  { %p2727_p4 = pnand %p2726_p3, %p2720_p0 }
 0x938   :  { %v2235_v13 = vpop.xlane.xlu0 %2234 }
 0x939   :  { %v2242_v28 = vmul.f32 0.03125, %v2235_v13 }
 0x93a   :  { %v2237_v41 = vpop.xlane.xlu1 %2236 }
 0x93b   :  { %v2246_v52 = vadd.f32 1e-05, %v2242_v28  ;;  %v2243_v35 = vmul.f32 0.03125, %v2237_v41 }
 0x93d   :  { %2711 = vrsqrt.f32 %v2246_v52  ;;  %v2247_v43 = vadd.f32 1e-05, %v2243_v35 }
 0x93f   :  { %2713 = vrsqrt.f32 %v2247_v43 }
 0x940   :  { %v2239_v58 = vpop.xlane.xlu0 %2238 }
 0x941   :  { %v2244_v63 = vmul.f32 0.03125, %v2239_v58 }
 0x942   :  { %v2241_v0 = vpop.xlane.xlu1 %2240 }
 0x943   :  { %v2248_v8 = vadd.f32 1e-05, %v2244_v63  ;;  %v2245_v50 = vmul.f32 0.03125, %v2241_v0 }
 0x945   :  { %2715 = vrsqrt.f32 %v2248_v8  ;;  %v2249_v10 = vadd.f32 1e-05, %v2245_v50 }
 0x947   :  { %v2712_v11 = vpop.eup %2711  ;;  %2717 = vrsqrt.f32 %v2249_v10 }
 0x948   :  { %v2254_v5 = vmul.f32 %v2712_v11, %v2226_v56 }
 0x949   :  { %v2714_v6 = vpop.eup %2713 }
 0x94a   :  { %v2264_v17 = vmul.f32 %v2469_v1, %v2254_v5  ;;  %v2255_v18 = vmul.f32 %v2714_v6, %v2227_v47 }
 0x94c   :  { %v2274_v22 = vadd.f32 %v2470_v15, %v2264_v17  ;;  %v2265_v23 = vmul.f32 %v2469_v1, %v2255_v18 }
 0x94e   :  { %v2282_v48 = vcombine.high %v2274_v22, %v2274_v22  ;;  %v2289_v9 = vrot.slane %v2274_v22, %v2856_v16  ;;  %2471 = vst.sshfl [vmem:[#allocation2] sm:$0x3 pattern:$0x76325410] %v2274_v22  ;;  %v2275_v24 = vadd.f32 %v2470_v15, %v2265_v23 }
 0x94f   :  { %v2716_v19 = vpop.eup %2715 }
 0x950   :  { %v2296_v12 = vrot.slane %v2282_v48, %v2856_v16  ;;  %v2297_v25 = vcombine.high %v2289_v9, %v2289_v9  ;;  %2472 = vst.sshfl [vmem:[#allocation2 + $0x4] sm:$0x3 pattern:$0x76325410] %v2282_v48  ;;  %v2299_v27 = vcombine.high %v2275_v24, %v2275_v24  ;;  %v2306_v31 = vrot.slane %v2275_v24, %v2856_v16 }
 0x951   :  { %2473 = vst.sshfl [vmem:[#allocation2 + $0x8] sm:$0x3 pattern:$0x76325410] %v2275_v24  ;;  %v2718_v33 = vpop.eup %2717  ;;  %v2256_v37 = vmul.f32 %v2716_v19, %v2228_v59 }
 0x952   :  { %v2298_v20 = vcombine.high %v2296_v12, %v2296_v12  ;;  %2367 = vst [vmem:[#allocation2 + $0x2] sm:$0x3] %v2297_v25  ;;  %v2313_v44 = vrot.slane %v2299_v27, %v2856_v16  ;;  %v2314_v26 = vcombine.high %v2306_v31, %v2306_v31  ;;  %2474 = vst.sshfl [vmem:[#allocation2 + $0xc] sm:$0x3 pattern:$0x76325410] %v2299_v27 }
 0x953   :  { %v2257_v14 = vmul.f32 %v2718_v33, %v2229_v60  ;;  %v2266_v51 = vmul.f32 %v2469_v1, %v2256_v37 }
 0x954   :  { %2369 = vst [vmem:[#allocation2 + $0x6] sm:$0x3] %v2298_v20  ;;  %v2315_v61 = vcombine.high %v2313_v44, %v2313_v44  ;;  %2371 = vst [vmem:[#allocation2 + $0xa] sm:$0x3] %v2314_v26 }
 0x955   :  { %v2267_v29 = vmul.f32 %v2469_v1, %v2257_v14  ;;  %v2276_v32 = vadd.f32 %v2470_v15, %v2266_v51 }
 0x956   :  { %2373 = vst [vmem:[#allocation2 + $0xe] sm:$0x3] %v2315_v61 }
 0x957   :  { %v2277_v54 = vadd.f32 %v2470_v15, %v2267_v29  ;;  %v2316_v3 = vcombine.high %v2276_v32, %v2276_v32  ;;  %v2323_v4 = vrot.slane %v2276_v32, %v2856_v16  ;;  %2475 = vst.sshfl [vmem:[#allocation2 + $0x10] sm:$0x3 pattern:$0x76325410] %v2276_v32 }
 0x959   :  { %v2333_v55 = vcombine.high %v2277_v54, %v2277_v54  ;;  %v2340_v45 = vrot.slane %v2277_v54, %v2856_v16  ;;  %2477 = vst.sshfl [vmem:[#allocation2 + $0x18] sm:$0x3 pattern:$0x76325410] %v2277_v54  ;;  %v2330_v40 = vrot.slane %v2316_v3, %v2856_v16  ;;  %v2331_v34 = vcombine.high %v2323_v4, %v2323_v4 }
 0x95a   :  { %2476 = vst.sshfl [vmem:[#allocation2 + $0x14] sm:$0x3 pattern:$0x76325410] %v2316_v3 }
 0x95b   :  { %v2347_v57 = vrot.slane %v2333_v55, %v2856_v16  ;;  %v2348_v2 = vcombine.high %v2340_v45, %v2340_v45  ;;  %2478 = vst.sshfl [vmem:[#allocation2 + $0x1c] sm:$0x3 pattern:$0x76325410] %v2333_v55  ;;  %v2332_v21 = vcombine.high %v2330_v40, %v2330_v40  ;;  %2375 = vst [vmem:[#allocation2 + $0x12] sm:$0x3] %v2331_v34 }
 0x95d   :  { %v2349_v56 = vcombine.high %v2347_v57, %v2347_v57  ;;  %2379 = vst [vmem:[#allocation2 + $0x1a] sm:$0x3] %v2348_v2  ;;  %2377 = vst [vmem:[#allocation2 + $0x16] sm:$0x3] %v2332_v21 }
 0x95f   :  { %2381 = vst [vmem:[#allocation2 + $0x1e] sm:$0x3] %v2349_v56 }
 0x960   :  { %2730 = shalt.err (!%p2727_p4)
}
 0x961   :  { %s2731_s21 = scalar_lea.hbm %s3518_s13, 512 }
 0x962   :  { %p2732_p5 = scmp.ne.s32.totalorder %s3518_s13, %s2731_s21  ;;  %p2735_p6 = scmp.lt.u32.totalorder %s2731_s21, %s3518_s13 }
 0x964   :  { %p2737_p7 = pnand %p2735_p6, %p2732_p5 }
 0x966   :  { %2740 = shalt.err (!%p2737_p7)
}
 0x967   :  { %s2749_s25 = smov 32   ;;  %s2750_s26 = smov 2  }
 0x968   :  { %2393 = dma.vmem_to_hbm [thread:$0]  %s2388_s12, 512, %s3518_s13, [#allocation3], %s2749_s25, %s2749_s25, %s2750_s26  }
 0x969   :  { %2741 = dma.done.wait [#allocation3], 512  }
 0x96a   :  { %2742 = vsyncadd [#allocation3], 4294966784 }
 0x96b   :  { %2397 = vsyncpa [#allocation3], 1 }

</bundles_post_ra>
